<compile_context>
chip_gen: v5e
topology: v5e:2x2
jax: 0.10.0
libtpu: 0.0.40
codegen_flags: <defaults>
</compile_context>

<pallas_src>
import functools

import jax
import jax.numpy as jnp
from jax.experimental import pallas as pl
from jax.experimental.pallas import tpu as pltpu

EMBED_DIM = 32
NUM_HEADS = 4
HEAD_DIM = EMBED_DIM // NUM_HEADS
MLP_HIDDEN = 4 * EMBED_DIM
NUM_LAYERS = 2
POS_HIDDEN = 32
PADDING_VALUE = 0.0
CENTER_PAD = 8          # 3 xyz coords padded to 8 lanes with PADDING_VALUE
LN_EPS = 1e-5
MAX_BATCH_TILE = 8      # tb*N = 128 rows at N=16 -> one full sublane tile of MXU feed
VEC_LANES = 128         # every bias / LN vector zero-padded to one lane tile

# Row layout of the packed bias/LN slab ("vecs"); every vector starts at lane 0.
ROW_BP1 = 0
ROW_BP2 = 1
ROW_LAYER0 = 2
ROWS_PER_LAYER = 8      # ln1_g, ln1_b, bqkv, bo, ln2_g, ln2_b, bm1, bm2
ROW_LNF_G = ROW_LAYER0 + NUM_LAYERS * ROWS_PER_LAYER
ROW_LNF_B = ROW_LNF_G + 1
VEC_ROWS = ((ROW_LNF_B + 1 + 7) // 8) * 8   # pad row count to a sublane multiple


def _layer_norm(x, g, b):
    mu = jnp.mean(x, axis=-1, keepdims=True)
    var = jnp.mean((x - mu) ** 2, axis=-1, keepdims=True)
    return (x - mu) * jax.lax.rsqrt(var + LN_EPS) * g + b


def _dot_bf16(a, b):
    # TODO(synk): bf16 MXU inputs (f32 accumulation) deviate slightly from torch's f32 matmuls.
    return jnp.dot(a.astype(jnp.bfloat16), b.astype(jnp.bfloat16),
                   preferred_element_type=jnp.float32)


def masked_decoder_kernel(tb, n_tok, n_vis, out_lanes,
                          center_ref, x_ref, bias_ref,
                          pos_w_ref, w_in_ref, w_m2_ref, vecs_ref,
                          out_ref):
    C = EMBED_DIM
    center = center_ref[0]            # [M, 8]   f32
    x = x_ref[0]                      # [M, C]   f32
    bias = bias_ref[0]                # [M, M]   f32, precomputed (0 / -1e9 / -inf)
    vecs = vecs_ref[...]              # [VEC_ROWS, 128] f32

    def vec(row, width):              # (1, width) row-vector -> broadcasts over rows
        return vecs[row:row + 1, :width]

    # --- positional embedding MLP: 3(->8) -> POS_HIDDEN -> C, on the full slab ---
    pw = pos_w_ref[...]                                     # [8+POS_HIDDEN, 32]
    wp1 = pw[0:CENTER_PAD, :]
    wp2 = pw[CENTER_PAD:CENTER_PAD + POS_HIDDEN, :]
    ph = _dot_bf16(center, wp1) + vec(ROW_BP1, POS_HIDDEN)
    # TODO(synk): torch nn.GELU is exact erf; tanh approximation used for TPU lowering.
    ph = jax.nn.gelu(ph, approximate=True)
    pos = _dot_bf16(ph, wp2) + vec(ROW_BP2, C)

    scale = 1.0 / (HEAD_DIM ** 0.5)
    for l in range(NUM_LAYERS):
        base = ROW_LAYER0 + l * ROWS_PER_LAYER
        ln1_g = vec(base + 0, C)
        ln1_b = vec(base + 1, C)
        bqkv = vec(base + 2, 3 * C)
        bo = vec(base + 3, C)
        ln2_g = vec(base + 4, C)
        ln2_b = vec(base + 5, C)
        bm1 = vec(base + 6, MLP_HIDDEN)
        bm2 = vec(base + 7, C)
        w_l = w_in_ref[l]                                   # [C, 3C + C + MLP_HIDDEN]
        wqkv = w_l[:, 0:3 * C]
        wo = w_l[:, 3 * C:4 * C]
        wm1 = w_l[:, 4 * C:4 * C + MLP_HIDDEN]
        wm2 = w_m2_ref[l]                                   # [MLP_HIDDEN, C]

        y = x + pos                                         # pos re-added before every block
        # --- attention sub-block (pre-norm) ---
        a = _layer_norm(y, ln1_g, ln1_b)
        qkv = _dot_bf16(a, wqkv) + bqkv
        q = qkv[:, 0 * C:1 * C] * scale                     # scale folded into Q
        k = qkv[:, 1 * C:2 * C]
        v = qkv[:, 2 * C:3 * C]
        attn = jnp.zeros_like(y)
        for hh in range(NUM_HEADS):
            s = hh * HEAD_DIM
            qh = q[:, s:s + HEAD_DIM]
            kh = k[:, s:s + HEAD_DIM]
            vh = v[:, s:s + HEAD_DIM]
            scores = jax.lax.dot_general(                   # q @ k^T without explicit transpose
                qh.astype(jnp.bfloat16), kh.astype(jnp.bfloat16),
                (((1,), (1,)), ((), ())),
                preferred_element_type=jnp.float32) + bias
            mx = jnp.max(scores, axis=-1, keepdims=True)
            e = jnp.exp(scores - mx)
            p = e * pl.reciprocal(jnp.sum(e, axis=-1, keepdims=True), approx=True)
            vw = _dot_bf16(vh, wo[s:s + HEAD_DIM, :])       # fold Wo head slice into PV
            attn = attn + _dot_bf16(p, vw)                  # [M, C]-wide PV output
        y = y + attn + bo
        # --- MLP sub-block (pre-norm) ---
        h = _layer_norm(y, ln2_g, ln2_b)
        h = _dot_bf16(h, wm1) + bm1
        h = jax.nn.gelu(h, approximate=True)
        h = _dot_bf16(h, wm2) + bm2
        y = y + h
        x = y

    # One fused final LayerNorm over the whole slab; pack the trailing num_masked
    # tokens of each batch lane-dense: out[m, b*C:(b+1)*C] = x_ln[b*N + n_vis + m].
    x_ln = _layer_norm(x, vec(ROW_LNF_G, C), vec(ROW_LNF_B, C))
    num_masked = n_tok - n_vis
    outs = [x_ln[b * n_tok + n_vis:(b + 1) * n_tok, :] for b in range(tb)]
    if out_lanes > tb * C:                                  # lane-pad to a full 128 tile
        outs.append(jnp.zeros((num_masked, out_lanes - tb * C), jnp.float32))
    out_ref[0] = jnp.concatenate(outs, axis=-1)             # [num_masked, out_lanes]


def _tensorcores_per_chip():
    """v7x has 2 TensorCores per chip; v5e/v6e have 1 (fallback: 1)."""
    try:
        kind = jax.devices()[0].device_kind.lower()
    except Exception:
        return 1
    return 2 if "7" in kind else 1


def _choose_batch_tile(b, cores):
    """Pick the number of batch elements fused per grid step.

    Rules: minimize grid steps (the grid is a serial loop on 1-TC chips); keep
    the packed output lane-dense (tb*C >= 128) when B allows; cap M = tb*N via
    MAX_BATCH_TILE to bound the O(M^2) block-diagonal waste; on 2-TC chips keep
    >= `cores` grid steps only if that doesn't cost lane density.
    """
    divisors = [t for t in range(1, min(b, MAX_BATCH_TILE) + 1) if b % t == 0]
    dense = [t for t in divisors if t * EMBED_DIM >= 128] or divisors
    if cores >= 2:
        multi = [t for t in dense if b // t >= cores]
        if multi:
            return max(multi)
    return max(dense)


def _pack_params(params):
    """Pack the 18 parameter arrays into 4 refs to cut DMA-descriptor count."""
    pos_w = jnp.concatenate([params["wp1"], params["wp2"]], axis=0)            # [8+32, 32]
    w_in = jnp.concatenate([params["wqkv"], params["wo"], params["wm1"]],
                           axis=-1)                                            # [L, C, 256]
    w_m2 = params["wm2"]                                                       # [L, 128, C]

    def row(v):
        v = jnp.reshape(v, (-1,))
        return jnp.pad(v, (0, VEC_LANES - v.shape[0]))

    rows = [row(params["bp1"]), row(params["bp2"])]
    for l in range(NUM_LAYERS):
        rows += [row(params["ln1_g"][l]), row(params["ln1_b"][l]),
                 row(params["bqkv"][l]), row(params["bo"][l]),
                 row(params["ln2_g"][l]), row(params["ln2_b"][l]),
                 row(params["bm1"][l]), row(params["bm2"][l])]
    rows += [row(params["lnf_g"]), row(params["lnf_b"])]
    vecs = jnp.stack(rows, axis=0)
    vecs = jnp.pad(vecs, ((0, VEC_ROWS - vecs.shape[0]), (0, 0)))              # [VEC_ROWS, 128]
    return pos_w, w_in, w_m2, vecs


def masked_decoder_forward(params, x_vis, mask, center_points):
    B, n_vis, C = x_vis.shape
    N = center_points.shape[1]
    num_masked = N - n_vis
    assert C == EMBED_DIM

    tb = _choose_batch_tile(B, _tensorcores_per_chip())
    G = B // tb
    M = tb * N
    out_lanes = 128 * pl.cdiv(tb * C, 128)                  # lane-dense output slab

    # glue: reorder centers (visible first, then masked; per-row order preserved).
    order = jnp.argsort(mask.astype(jnp.int32), axis=1, stable=True)           # [B, N]
    idx = jnp.broadcast_to(order[..., None], (B, N, 3))
    center_full = jnp.take_along_axis(center_points, idx, axis=1)              # [B, N, 3]

    # glue: key-padding + block-diagonal attention bias fully precomputed (hoisted
    # out of the kernel body): 0 within batch, -1e9 padded keys, -inf cross-batch.
    padding_mask = jnp.all(center_full == PADDING_VALUE, axis=-1)              # [B, N]
    pad_bias = jnp.where(padding_mask, -1e9, 0.0).astype(jnp.float32)
    batch_of = jnp.arange(M) // N
    same_batch = batch_of[:, None] == batch_of[None, :]                        # [M, M]
    bias = jnp.where(same_batch[None, :, :], pad_bias.reshape(G, 1, M),
                     -jnp.inf).astype(jnp.float32)                             # [G, M, M]

    center_padded = jnp.pad(center_full, ((0, 0), (0, 0), (0, CENTER_PAD - 3)),
                            constant_values=PADDING_VALUE).reshape(G, M, CENTER_PAD)

    mask_tok = jnp.broadcast_to(params["mask_token"][None, None, :], (B, num_masked, C))
    x_full = jnp.concatenate([x_vis, mask_tok], axis=1).reshape(G, M, C)

    pos_w, w_in, w_m2, vecs = _pack_params(params)

    # Advisory cost estimate so XLA schedules the glue ops around this tiny call.
    flops_layer = (2 * M * C * 3 * C
                   + NUM_HEADS * (2 * M * M * HEAD_DIM + 2 * M * HEAD_DIM * C + 2 * M * M * C)
                   + 2 * M * C * MLP_HIDDEN + 2 * M * MLP_HIDDEN * C)
    flops = G * (2 * M * CENTER_PAD * POS_HIDDEN + 2 * M * POS_HIDDEN * C
                 + NUM_LAYERS * flops_layer)
    transcendentals = G * (M * POS_HIDDEN
                           + NUM_LAYERS * (NUM_HEADS * M * M + M * MLP_HIDDEN))
    bytes_accessed = 4 * int(center_padded.size + x_full.size + bias.size
                             + pos_w.size + w_in.size + w_m2.size + vecs.size
                             + G * num_masked * out_lanes)

    out = pl.pallas_call(
        functools.partial(masked_decoder_kernel, tb, N, n_vis, out_lanes),
        out_shape=jax.ShapeDtypeStruct((G, num_masked, out_lanes), jnp.float32),
        grid_spec=pltpu.PrefetchScalarGridSpec(
            num_scalar_prefetch=0,
            grid=(G,),
            in_specs=[
                pl.BlockSpec((1, M, CENTER_PAD), lambda g: (g, 0, 0)),
                pl.BlockSpec((1, M, C), lambda g: (g, 0, 0)),
                pl.BlockSpec((1, M, M), lambda g: (g, 0, 0)),
                pl.BlockSpec(pos_w.shape, lambda g: (0, 0)),
                pl.BlockSpec(w_in.shape, lambda g: (0, 0, 0)),
                pl.BlockSpec(w_m2.shape, lambda g: (0, 0, 0)),
                pl.BlockSpec(vecs.shape, lambda g: (0, 0)),
            ],
            out_specs=pl.BlockSpec((1, num_masked, out_lanes), lambda g: (g, 0, 0)),
        ),
        compiler_params=pltpu.CompilerParams(dimension_semantics=("parallel",)),
        cost_estimate=pl.CostEstimate(flops=int(flops),
                                      transcendentals=int(transcendentals),
                                      bytes_accessed=bytes_accessed),
    )(center_padded, x_full, bias, pos_w, w_in, w_m2, vecs)

    # drop lane padding, then un-interleave [num_masked, tb*C] slabs -> [B, num_masked, C]
    out = out[..., :tb * C]
    out = out.reshape(G, num_masked, tb, C).transpose(0, 2, 1, 3).reshape(B, num_masked, C)
    return out


def init_params(key):
    ks = jax.random.split(key, 8)

    def tn(k, shape, std=0.02):
        return std * jax.random.truncated_normal(k, -2.0, 2.0, shape, jnp.float32)

    C, L = EMBED_DIM, NUM_LAYERS
    wp1 = tn(ks[1], (CENTER_PAD, POS_HIDDEN)).at[3:].set(0.0)  # rows >=3 unused (pad lanes)
    return {
        "mask_token": tn(ks[0], (C,)),
        "wp1": wp1,
        "bp1": jnp.zeros((1, POS_HIDDEN), jnp.float32),
        "wp2": tn(ks[2], (POS_HIDDEN, C)),
        "bp2": jnp.zeros((1, C), jnp.float32),
        "ln1_g": jnp.ones((L, 1, C), jnp.float32),
        "ln1_b": jnp.zeros((L, 1, C), jnp.float32),
        "wqkv": tn(ks[3], (L, C, 3 * C)),
        "bqkv": jnp.zeros((L, 1, 3 * C), jnp.float32),
        "wo": tn(ks[4], (L, C, C)),
        "bo": jnp.zeros((L, 1, C), jnp.float32),
        "ln2_g": jnp.ones((L, 1, C), jnp.float32),
        "ln2_b": jnp.zeros((L, 1, C), jnp.float32),
        "wm1": tn(ks[5], (L, C, MLP_HIDDEN)),
        "bm1": jnp.zeros((L, 1, MLP_HIDDEN), jnp.float32),
        "wm2": tn(ks[6], (L, MLP_HIDDEN, C)),
        "bm2": jnp.zeros((L, 1, C), jnp.float32),
        "lnf_g": jnp.ones((1, C), jnp.float32),
        "lnf_b": jnp.zeros((1, C), jnp.float32),
    }


def reference_forward(params, x_vis, mask, center_points):
    """Pure-JAX reference (same bf16-input matmul convention), for a sanity check."""
    B, n_vis, C = x_vis.shape
    N = center_points.shape[1]
    num_masked = N - n_vis
    order = jnp.argsort(mask.astype(jnp.int32), axis=1, stable=True)
    idx = jnp.broadcast_to(order[..., None], (B, N, 3))
    center_full = jnp.take_along_axis(center_points, idx, axis=1)
    padding_mask = jnp.all(center_full == PADDING_VALUE, axis=-1)              # [B, N]
    pad_bias = jnp.where(padding_mask, -1e9, 0.0)                              # [B, N]

    bf = jnp.bfloat16

    def mm(a, b):
        return jnp.matmul(a.astype(bf), b.astype(bf), preferred_element_type=jnp.float32)

    ph = jax.nn.gelu(mm(center_full, params["wp1"][:3]) + params["bp1"], approximate=True)
    pos = mm(ph, params["wp2"]) + params["bp2"]

    mask_tok = jnp.broadcast_to(params["mask_token"][None, None, :], (B, num_masked, C))
    x = jnp.concatenate([x_vis, mask_tok], axis=1)

    def ln(v, g, b):
        mu = v.mean(-1, keepdims=True)
        var = ((v - mu) ** 2).mean(-1, keepdims=True)
        return (v - mu) * jax.lax.rsqrt(var + LN_EPS) * g + b

    scale = 1.0 / (HEAD_DIM ** 0.5)
    for l in range(NUM_LAYERS):
        y = x + pos
        a = ln(y, params["ln1_g"][l], params["ln1_b"][l])
        qkv = mm(a, params["wqkv"][l]) + params["bqkv"][l]
        q, k, v = jnp.split(qkv, 3, axis=-1)
        qh = (q * scale).reshape(B, N, NUM_HEADS, HEAD_DIM)
        kh = k.reshape(B, N, NUM_HEADS, HEAD_DIM)
        vh = v.reshape(B, N, NUM_HEADS, HEAD_DIM)
        sc = jnp.einsum("bqhd,bkhd->bhqk", qh.astype(bf), kh.astype(bf),
                        preferred_element_type=jnp.float32) + pad_bias[:, None, None, :]
        p = jax.nn.softmax(sc, axis=-1)
        o = jnp.einsum("bhqk,bkhd->bqhd", p.astype(bf), vh.astype(bf),
                       preferred_element_type=jnp.float32).reshape(B, N, C)
        y = y + mm(o, params["wo"][l]) + params["bo"][l]
        m = ln(y, params["ln2_g"][l], params["ln2_b"][l])
        m = jax.nn.gelu(mm(m, params["wm1"][l]) + params["bm1"][l], approximate=True)
        y = y + mm(m, params["wm2"][l]) + params["bm2"][l]
        x = y
    return ln(x[:, N - num_masked:], params["lnf_g"], params["lnf_b"])


if __name__ == "__main__":
    key = jax.random.PRNGKey(0)
    k_param, k_x, k_c = jax.random.split(key, 3)
    B, N, N_VIS = 4, 16, 8

    params = init_params(k_param)

    x_vis = jax.random.normal(k_x, (B, N_VIS, EMBED_DIM), jnp.float32)
    center_points = jax.random.normal(k_c, (B, N, 3), jnp.float32)
    # mark a few tokens as padding (all coords == padding_value)
    center_points = center_points.at[0, 5].set(PADDING_VALUE)
    center_points = center_points.at[1, 14].set(PADDING_VALUE)
    center_points = center_points.at[3, 0].set(PADDING_VALUE)
    # boolean mask with exactly N - N_VIS masked tokens per row
    ar = jnp.arange(N)
    mask = jnp.stack([ar % 2 == 0, ar >= N_VIS, ar % 2 == 1, ar < N_VIS], axis=0)

    out = masked_decoder_forward(params, x_vis, mask, center_points)
    out = jax.block_until_ready(out)

    ref = reference_forward(params, x_vis, mask, center_points)
    assert out.shape == (B, N - N_VIS, EMBED_DIM)
    max_err = float(jnp.max(jnp.abs(out - ref)))
    # tolerance covers bf16 MXU inputs, the folded-Wo association and the
    # approx-reciprocal softmax vs. the f32-accumulation reference
    assert jnp.allclose(out, ref, atol=5e-3, rtol=5e-3), max_err
    print("KERNEL_OK")
</pallas_src>

<mosaic_0001>
module attributes {stable_mosaic.version = 11 : i64} {
  func.func @masked_decoder_kernel(%arg0: i32, %arg1: memref<1x64x8xf32, #tpu.memory_space<vmem>>, %arg2: memref<1x64x32xf32, #tpu.memory_space<vmem>>, %arg3: memref<1x64x64xf32, #tpu.memory_space<vmem>>, %arg4: memref<40x32xf32, #tpu.memory_space<vmem>>, %arg5: memref<2x32x256xf32, #tpu.memory_space<vmem>>, %arg6: memref<2x128x32xf32, #tpu.memory_space<vmem>>, %arg7: memref<24x128xf32, #tpu.memory_space<vmem>>, %arg8: memref<1x8x128xf32, #tpu.memory_space<vmem>>) attributes {dimension_semantics = [#tpu.dimension_semantics<parallel>], iteration_bounds = array<i64: 1>, scalar_prefetch = 0 : i64, scratch_operands = 0 : i64, tpu.core_type = #tpu.core_type<tc>, window_params = [{transform_indices = @transform_0, window_bounds = array<i64: 1, 64, 8>}, {transform_indices = @transform_1, window_bounds = array<i64: 1, 64, 32>}, {transform_indices = @transform_2, window_bounds = array<i64: 1, 64, 64>}, {pipeline_mode = #tpu.pipeline_mode<synchronous>, transform_indices = @transform_3, window_bounds = array<i64: 40, 32>}, {pipeline_mode = #tpu.pipeline_mode<synchronous>, transform_indices = @transform_4, window_bounds = array<i64: 2, 32, 256>}, {pipeline_mode = #tpu.pipeline_mode<synchronous>, transform_indices = @transform_5, window_bounds = array<i64: 2, 128, 32>}, {pipeline_mode = #tpu.pipeline_mode<synchronous>, transform_indices = @transform_6, window_bounds = array<i64: 24, 128>}, {transform_indices = @transform_7, window_bounds = array<i64: 1, 8, 128>}]} {
    %c0 = arith.constant 0 : index
    %c0_0 = arith.constant 0 : index
    %c0_1 = arith.constant 0 : index
    %0 = vector.load %arg1[%c0, %c0_0, %c0_1] : memref<1x64x8xf32, #tpu.memory_space<vmem>>, vector<1x64x8xf32>
    %1 = vector.shape_cast %0 : vector<1x64x8xf32> to vector<64x8xf32>
    %c0_2 = arith.constant 0 : index
    %c0_3 = arith.constant 0 : index
    %c0_4 = arith.constant 0 : index
    %2 = vector.load %arg2[%c0_2, %c0_3, %c0_4] : memref<1x64x32xf32, #tpu.memory_space<vmem>>, vector<1x64x32xf32>
    %3 = vector.shape_cast %2 : vector<1x64x32xf32> to vector<64x32xf32>
    %c0_5 = arith.constant 0 : index
    %c0_6 = arith.constant 0 : index
    %c0_7 = arith.constant 0 : index
    %4 = vector.load %arg3[%c0_5, %c0_6, %c0_7] : memref<1x64x64xf32, #tpu.memory_space<vmem>>, vector<1x64x64xf32>
    %5 = vector.shape_cast %4 : vector<1x64x64xf32> to vector<64x64xf32>
    %c0_8 = arith.constant 0 : index
    %c0_9 = arith.constant 0 : index
    %6 = vector.load %arg7[%c0_8, %c0_9] : memref<24x128xf32, #tpu.memory_space<vmem>>, vector<24x128xf32>
    %c0_10 = arith.constant 0 : index
    %c0_11 = arith.constant 0 : index
    %7 = vector.load %arg4[%c0_10, %c0_11] : memref<40x32xf32, #tpu.memory_space<vmem>>, vector<40x32xf32>
    %8 = vector.extract_strided_slice %7 {offsets = [0, 0], sizes = [8, 32], strides = [1, 1]} : vector<40x32xf32> to vector<8x32xf32>
    %9 = vector.extract_strided_slice %7 {offsets = [8, 0], sizes = [32, 32], strides = [1, 1]} : vector<40x32xf32> to vector<32x32xf32>
    %10 = arith.truncf %1 : vector<64x8xf32> to vector<64x8xbf16>
    %11 = arith.truncf %8 : vector<8x32xf32> to vector<8x32xbf16>
    %cst = arith.constant dense<0.000000e+00> : vector<64x32xf32>
    %12 = tpu.matmul %10, %11, %cst {dimension_numbers = #tpu.dot_dimension_numbers<[1], [0], [0], [1], [0, 0, 1, 1], [], []>} : vector<64x8xbf16>, vector<8x32xbf16>, vector<64x32xf32> -> vector<64x32xf32>
    %13 = vector.extract_strided_slice %6 {offsets = [0, 0], sizes = [1, 32], strides = [1, 1]} : vector<24x128xf32> to vector<1x32xf32>
    %14 = vector.broadcast %13 : vector<1x32xf32> to vector<64x32xf32>
    %15 = arith.addf %12, %14 : vector<64x32xf32>
    %16 = arith.mulf %15, %15 : vector<64x32xf32>
    %17 = arith.mulf %15, %16 : vector<64x32xf32>
    %cst_12 = arith.constant 4.471500e-02 : f32
    %18 = vector.broadcast %cst_12 : f32 to vector<64x32xf32>
    %19 = arith.mulf %18, %17 : vector<64x32xf32>
    %20 = arith.addf %15, %19 : vector<64x32xf32>
    %cst_13 = arith.constant 0.797884583 : f32
    %21 = vector.broadcast %cst_13 : f32 to vector<64x32xf32>
    %22 = arith.mulf %21, %20 : vector<64x32xf32>
    %23 = math.tanh %22 : vector<64x32xf32>
    %cst_14 = arith.constant 1.000000e+00 : f32
    %24 = vector.broadcast %cst_14 : f32 to vector<64x32xf32>
    %25 = arith.addf %24, %23 : vector<64x32xf32>
    %cst_15 = arith.constant 5.000000e-01 : f32
    %26 = vector.broadcast %cst_15 : f32 to vector<64x32xf32>
    %27 = arith.mulf %26, %25 : vector<64x32xf32>
    %28 = arith.mulf %15, %27 : vector<64x32xf32>
    %29 = arith.truncf %28 : vector<64x32xf32> to vector<64x32xbf16>
    %30 = arith.truncf %9 : vector<32x32xf32> to vector<32x32xbf16>
    %cst_16 = arith.constant dense<0.000000e+00> : vector<64x32xf32>
    %31 = tpu.matmul %29, %30, %cst_16 {dimension_numbers = #tpu.dot_dimension_numbers<[1], [0], [0], [1], [0, 0, 1, 1], [], []>} : vector<64x32xbf16>, vector<32x32xbf16>, vector<64x32xf32> -> vector<64x32xf32>
    %32 = vector.extract_strided_slice %6 {offsets = [1, 0], sizes = [1, 32], strides = [1, 1]} : vector<24x128xf32> to vector<1x32xf32>
    %33 = vector.broadcast %32 : vector<1x32xf32> to vector<64x32xf32>
    %34 = arith.addf %31, %33 : vector<64x32xf32>
    %35 = vector.extract_strided_slice %6 {offsets = [2, 0], sizes = [1, 32], strides = [1, 1]} : vector<24x128xf32> to vector<1x32xf32>
    %36 = vector.extract_strided_slice %6 {offsets = [3, 0], sizes = [1, 32], strides = [1, 1]} : vector<24x128xf32> to vector<1x32xf32>
    %37 = vector.extract_strided_slice %6 {offsets = [4, 0], sizes = [1, 96], strides = [1, 1]} : vector<24x128xf32> to vector<1x96xf32>
    %38 = vector.extract_strided_slice %6 {offsets = [5, 0], sizes = [1, 32], strides = [1, 1]} : vector<24x128xf32> to vector<1x32xf32>
    %39 = vector.extract_strided_slice %6 {offsets = [6, 0], sizes = [1, 32], strides = [1, 1]} : vector<24x128xf32> to vector<1x32xf32>
    %40 = vector.extract_strided_slice %6 {offsets = [7, 0], sizes = [1, 32], strides = [1, 1]} : vector<24x128xf32> to vector<1x32xf32>
    %41 = vector.extract_strided_slice %6 {offsets = [8, 0], sizes = [1, 128], strides = [1, 1]} : vector<24x128xf32> to vector<1x128xf32>
    %42 = vector.extract_strided_slice %6 {offsets = [9, 0], sizes = [1, 32], strides = [1, 1]} : vector<24x128xf32> to vector<1x32xf32>
    %c0_17 = arith.constant 0 : index
    %c0_18 = arith.constant 0 : index
    %c0_19 = arith.constant 0 : index
    %43 = vector.load %arg5[%c0_17, %c0_18, %c0_19] : memref<2x32x256xf32, #tpu.memory_space<vmem>>, vector<1x32x256xf32>
    %44 = vector.shape_cast %43 : vector<1x32x256xf32> to vector<32x256xf32>
    %45 = vector.extract_strided_slice %44 {offsets = [0, 0], sizes = [32, 96], strides = [1, 1]} : vector<32x256xf32> to vector<32x96xf32>
    %46 = vector.extract_strided_slice %44 {offsets = [0, 96], sizes = [32, 32], strides = [1, 1]} : vector<32x256xf32> to vector<32x32xf32>
    %47 = vector.extract_strided_slice %44 {offsets = [0, 128], sizes = [32, 128], strides = [1, 1]} : vector<32x256xf32> to vector<32x128xf32>
    %c0_20 = arith.constant 0 : index
    %c0_21 = arith.constant 0 : index
    %c0_22 = arith.constant 0 : index
    %48 = vector.load %arg6[%c0_20, %c0_21, %c0_22] : memref<2x128x32xf32, #tpu.memory_space<vmem>>, vector<1x128x32xf32>
    %49 = vector.shape_cast %48 : vector<1x128x32xf32> to vector<128x32xf32>
    %50 = arith.addf %3, %34 : vector<64x32xf32>
    %cst_23 = arith.constant dense<0.000000e+00> : vector<64xf32>
    %51 = vector.multi_reduction <add>, %50, %cst_23 [1] : vector<64x32xf32> to vector<64xf32>
    %52 = vector.shape_cast %51 : vector<64xf32> to vector<64x1xf32>
    %cst_24 = arith.constant 3.200000e+01 : f32
    %53 = vector.broadcast %cst_24 : f32 to vector<64x1xf32>
    %54 = arith.divf %52, %53 : vector<64x1xf32>
    %55 = vector.broadcast %54 : vector<64x1xf32> to vector<64x32xf32>
    %56 = arith.subf %50, %55 : vector<64x32xf32>
    %57 = arith.mulf %56, %56 : vector<64x32xf32>
    %cst_25 = arith.constant dense<0.000000e+00> : vector<64xf32>
    %58 = vector.multi_reduction <add>, %57, %cst_25 [1] : vector<64x32xf32> to vector<64xf32>
    %59 = vector.shape_cast %58 : vector<64xf32> to vector<64x1xf32>
    %cst_26 = arith.constant 3.200000e+01 : f32
    %60 = vector.broadcast %cst_26 : f32 to vector<64x1xf32>
    %61 = arith.divf %59, %60 : vector<64x1xf32>
    %62 = vector.broadcast %54 : vector<64x1xf32> to vector<64x32xf32>
    %63 = arith.subf %50, %62 : vector<64x32xf32>
    %cst_27 = arith.constant 9.99999974E-6 : f32
    %64 = vector.broadcast %cst_27 : f32 to vector<64x1xf32>
    %65 = arith.addf %61, %64 : vector<64x1xf32>
    %66 = math.rsqrt %65 : vector<64x1xf32>
    %67 = vector.broadcast %66 : vector<64x1xf32> to vector<64x32xf32>
    %68 = arith.mulf %63, %67 : vector<64x32xf32>
    %69 = vector.broadcast %35 : vector<1x32xf32> to vector<64x32xf32>
    %70 = arith.mulf %68, %69 : vector<64x32xf32>
    %71 = vector.broadcast %36 : vector<1x32xf32> to vector<64x32xf32>
    %72 = arith.addf %70, %71 : vector<64x32xf32>
    %73 = arith.truncf %72 : vector<64x32xf32> to vector<64x32xbf16>
    %74 = arith.truncf %45 : vector<32x96xf32> to vector<32x96xbf16>
    %cst_28 = arith.constant dense<0.000000e+00> : vector<64x96xf32>
    %75 = tpu.matmul %73, %74, %cst_28 {dimension_numbers = #tpu.dot_dimension_numbers<[1], [0], [0], [1], [0, 0, 1, 1], [], []>} : vector<64x32xbf16>, vector<32x96xbf16>, vector<64x96xf32> -> vector<64x96xf32>
    %76 = vector.broadcast %37 : vector<1x96xf32> to vector<64x96xf32>
    %77 = arith.addf %75, %76 : vector<64x96xf32>
    %78 = vector.extract_strided_slice %77 {offsets = [0, 0], sizes = [64, 32], strides = [1, 1]} : vector<64x96xf32> to vector<64x32xf32>
    %cst_29 = arith.constant 0.353553385 : f32
    %79 = vector.broadcast %cst_29 : f32 to vector<64x32xf32>
    %80 = arith.mulf %78, %79 : vector<64x32xf32>
    %81 = vector.extract_strided_slice %77 {offsets = [0, 32], sizes = [64, 32], strides = [1, 1]} : vector<64x96xf32> to vector<64x32xf32>
    %82 = vector.extract_strided_slice %77 {offsets = [0, 64], sizes = [64, 32], strides = [1, 1]} : vector<64x96xf32> to vector<64x32xf32>
    %cst_30 = arith.constant 0.000000e+00 : f32
    %83 = vector.broadcast %cst_30 : f32 to vector<64x32xf32>
    %84 = vector.extract_strided_slice %80 {offsets = [0, 0], sizes = [64, 8], strides = [1, 1]} : vector<64x32xf32> to vector<64x8xf32>
    %85 = vector.extract_strided_slice %81 {offsets = [0, 0], sizes = [64, 8], strides = [1, 1]} : vector<64x32xf32> to vector<64x8xf32>
    %86 = vector.extract_strided_slice %82 {offsets = [0, 0], sizes = [64, 8], strides = [1, 1]} : vector<64x32xf32> to vector<64x8xf32>
    %87 = arith.truncf %84 : vector<64x8xf32> to vector<64x8xbf16>
    %88 = arith.truncf %85 : vector<64x8xf32> to vector<64x8xbf16>
    %cst_31 = arith.constant dense<0.000000e+00> : vector<64x64xf32>
    %89 = tpu.matmul %87, %88, %cst_31 {dimension_numbers = #tpu.dot_dimension_numbers<[1], [1], [0], [0], [0, 0, 1, 0], [], []>} : vector<64x8xbf16>, vector<64x8xbf16>, vector<64x64xf32> -> vector<64x64xf32>
    %90 = arith.addf %89, %5 : vector<64x64xf32>
    %cst_32 = arith.constant dense<0xFF800000> : vector<64xf32>
    %91 = vector.multi_reduction <maximumf>, %90, %cst_32 [1] : vector<64x64xf32> to vector<64xf32>
    %92 = vector.shape_cast %91 : vector<64xf32> to vector<64x1xf32>
    %93 = vector.broadcast %92 : vector<64x1xf32> to vector<64x64xf32>
    %94 = arith.subf %90, %93 : vector<64x64xf32>
    %95 = math.exp %94 : vector<64x64xf32>
    %cst_33 = arith.constant dense<0.000000e+00> : vector<64xf32>
    %96 = vector.multi_reduction <add>, %95, %cst_33 [1] : vector<64x64xf32> to vector<64xf32>
    %97 = vector.shape_cast %96 : vector<64xf32> to vector<64x1xf32>
    %98 = tpu.reciprocal %97 {approx = true} : vector<64x1xf32> -> vector<64x1xf32>
    %99 = vector.broadcast %98 : vector<64x1xf32> to vector<64x64xf32>
    %100 = arith.mulf %95, %99 : vector<64x64xf32>
    %101 = vector.extract_strided_slice %46 {offsets = [0, 0], sizes = [8, 32], strides = [1, 1]} : vector<32x32xf32> to vector<8x32xf32>
    %102 = arith.truncf %86 : vector<64x8xf32> to vector<64x8xbf16>
    %103 = arith.truncf %101 : vector<8x32xf32> to vector<8x32xbf16>
    %cst_34 = arith.constant dense<0.000000e+00> : vector<64x32xf32>
    %104 = tpu.matmul %102, %103, %cst_34 {dimension_numbers = #tpu.dot_dimension_numbers<[1], [0], [0], [1], [0, 0, 1, 1], [], []>} : vector<64x8xbf16>, vector<8x32xbf16>, vector<64x32xf32> -> vector<64x32xf32>
    %105 = arith.truncf %100 : vector<64x64xf32> to vector<64x64xbf16>
    %106 = arith.truncf %104 : vector<64x32xf32> to vector<64x32xbf16>
    %cst_35 = arith.constant dense<0.000000e+00> : vector<64x32xf32>
    %107 = tpu.matmul %105, %106, %cst_35 {dimension_numbers = #tpu.dot_dimension_numbers<[1], [0], [0], [1], [0, 0, 1, 1], [], []>} : vector<64x64xbf16>, vector<64x32xbf16>, vector<64x32xf32> -> vector<64x32xf32>
    %108 = arith.addf %83, %107 : vector<64x32xf32>
    %109 = vector.extract_strided_slice %80 {offsets = [0, 8], sizes = [64, 8], strides = [1, 1]} : vector<64x32xf32> to vector<64x8xf32>
    %110 = vector.extract_strided_slice %81 {offsets = [0, 8], sizes = [64, 8], strides = [1, 1]} : vector<64x32xf32> to vector<64x8xf32>
    %111 = vector.extract_strided_slice %82 {offsets = [0, 8], sizes = [64, 8], strides = [1, 1]} : vector<64x32xf32> to vector<64x8xf32>
    %112 = arith.truncf %109 : vector<64x8xf32> to vector<64x8xbf16>
    %113 = arith.truncf %110 : vector<64x8xf32> to vector<64x8xbf16>
    %cst_36 = arith.constant dense<0.000000e+00> : vector<64x64xf32>
    %114 = tpu.matmul %112, %113, %cst_36 {dimension_numbers = #tpu.dot_dimension_numbers<[1], [1], [0], [0], [0, 0, 1, 0], [], []>} : vector<64x8xbf16>, vector<64x8xbf16>, vector<64x64xf32> -> vector<64x64xf32>
    %115 = arith.addf %114, %5 : vector<64x64xf32>
    %cst_37 = arith.constant dense<0xFF800000> : vector<64xf32>
    %116 = vector.multi_reduction <maximumf>, %115, %cst_37 [1] : vector<64x64xf32> to vector<64xf32>
    %117 = vector.shape_cast %116 : vector<64xf32> to vector<64x1xf32>
    %118 = vector.broadcast %117 : vector<64x1xf32> to vector<64x64xf32>
    %119 = arith.subf %115, %118 : vector<64x64xf32>
    %120 = math.exp %119 : vector<64x64xf32>
    %cst_38 = arith.constant dense<0.000000e+00> : vector<64xf32>
    %121 = vector.multi_reduction <add>, %120, %cst_38 [1] : vector<64x64xf32> to vector<64xf32>
    %122 = vector.shape_cast %121 : vector<64xf32> to vector<64x1xf32>
    %123 = tpu.reciprocal %122 {approx = true} : vector<64x1xf32> -> vector<64x1xf32>
    %124 = vector.broadcast %123 : vector<64x1xf32> to vector<64x64xf32>
    %125 = arith.mulf %120, %124 : vector<64x64xf32>
    %126 = vector.extract_strided_slice %46 {offsets = [8, 0], sizes = [8, 32], strides = [1, 1]} : vector<32x32xf32> to vector<8x32xf32>
    %127 = arith.truncf %111 : vector<64x8xf32> to vector<64x8xbf16>
    %128 = arith.truncf %126 : vector<8x32xf32> to vector<8x32xbf16>
    %cst_39 = arith.constant dense<0.000000e+00> : vector<64x32xf32>
    %129 = tpu.matmul %127, %128, %cst_39 {dimension_numbers = #tpu.dot_dimension_numbers<[1], [0], [0], [1], [0, 0, 1, 1], [], []>} : vector<64x8xbf16>, vector<8x32xbf16>, vector<64x32xf32> -> vector<64x32xf32>
    %130 = arith.truncf %125 : vector<64x64xf32> to vector<64x64xbf16>
    %131 = arith.truncf %129 : vector<64x32xf32> to vector<64x32xbf16>
    %cst_40 = arith.constant dense<0.000000e+00> : vector<64x32xf32>
    %132 = tpu.matmul %130, %131, %cst_40 {dimension_numbers = #tpu.dot_dimension_numbers<[1], [0], [0], [1], [0, 0, 1, 1], [], []>} : vector<64x64xbf16>, vector<64x32xbf16>, vector<64x32xf32> -> vector<64x32xf32>
    %133 = arith.addf %108, %132 : vector<64x32xf32>
    %134 = vector.extract_strided_slice %80 {offsets = [0, 16], sizes = [64, 8], strides = [1, 1]} : vector<64x32xf32> to vector<64x8xf32>
    %135 = vector.extract_strided_slice %81 {offsets = [0, 16], sizes = [64, 8], strides = [1, 1]} : vector<64x32xf32> to vector<64x8xf32>
    %136 = vector.extract_strided_slice %82 {offsets = [0, 16], sizes = [64, 8], strides = [1, 1]} : vector<64x32xf32> to vector<64x8xf32>
    %137 = arith.truncf %134 : vector<64x8xf32> to vector<64x8xbf16>
    %138 = arith.truncf %135 : vector<64x8xf32> to vector<64x8xbf16>
    %cst_41 = arith.constant dense<0.000000e+00> : vector<64x64xf32>
    %139 = tpu.matmul %137, %138, %cst_41 {dimension_numbers = #tpu.dot_dimension_numbers<[1], [1], [0], [0], [0, 0, 1, 0], [], []>} : vector<64x8xbf16>, vector<64x8xbf16>, vector<64x64xf32> -> vector<64x64xf32>
    %140 = arith.addf %139, %5 : vector<64x64xf32>
    %cst_42 = arith.constant dense<0xFF800000> : vector<64xf32>
    %141 = vector.multi_reduction <maximumf>, %140, %cst_42 [1] : vector<64x64xf32> to vector<64xf32>
    %142 = vector.shape_cast %141 : vector<64xf32> to vector<64x1xf32>
    %143 = vector.broadcast %142 : vector<64x1xf32> to vector<64x64xf32>
    %144 = arith.subf %140, %143 : vector<64x64xf32>
    %145 = math.exp %144 : vector<64x64xf32>
    %cst_43 = arith.constant dense<0.000000e+00> : vector<64xf32>
    %146 = vector.multi_reduction <add>, %145, %cst_43 [1] : vector<64x64xf32> to vector<64xf32>
    %147 = vector.shape_cast %146 : vector<64xf32> to vector<64x1xf32>
    %148 = tpu.reciprocal %147 {approx = true} : vector<64x1xf32> -> vector<64x1xf32>
    %149 = vector.broadcast %148 : vector<64x1xf32> to vector<64x64xf32>
    %150 = arith.mulf %145, %149 : vector<64x64xf32>
    %151 = vector.extract_strided_slice %46 {offsets = [16, 0], sizes = [8, 32], strides = [1, 1]} : vector<32x32xf32> to vector<8x32xf32>
    %152 = arith.truncf %136 : vector<64x8xf32> to vector<64x8xbf16>
    %153 = arith.truncf %151 : vector<8x32xf32> to vector<8x32xbf16>
    %cst_44 = arith.constant dense<0.000000e+00> : vector<64x32xf32>
    %154 = tpu.matmul %152, %153, %cst_44 {dimension_numbers = #tpu.dot_dimension_numbers<[1], [0], [0], [1], [0, 0, 1, 1], [], []>} : vector<64x8xbf16>, vector<8x32xbf16>, vector<64x32xf32> -> vector<64x32xf32>
    %155 = arith.truncf %150 : vector<64x64xf32> to vector<64x64xbf16>
    %156 = arith.truncf %154 : vector<64x32xf32> to vector<64x32xbf16>
    %cst_45 = arith.constant dense<0.000000e+00> : vector<64x32xf32>
    %157 = tpu.matmul %155, %156, %cst_45 {dimension_numbers = #tpu.dot_dimension_numbers<[1], [0], [0], [1], [0, 0, 1, 1], [], []>} : vector<64x64xbf16>, vector<64x32xbf16>, vector<64x32xf32> -> vector<64x32xf32>
    %158 = arith.addf %133, %157 : vector<64x32xf32>
    %159 = vector.extract_strided_slice %80 {offsets = [0, 24], sizes = [64, 8], strides = [1, 1]} : vector<64x32xf32> to vector<64x8xf32>
    %160 = vector.extract_strided_slice %81 {offsets = [0, 24], sizes = [64, 8], strides = [1, 1]} : vector<64x32xf32> to vector<64x8xf32>
    %161 = vector.extract_strided_slice %82 {offsets = [0, 24], sizes = [64, 8], strides = [1, 1]} : vector<64x32xf32> to vector<64x8xf32>
    %162 = arith.truncf %159 : vector<64x8xf32> to vector<64x8xbf16>
    %163 = arith.truncf %160 : vector<64x8xf32> to vector<64x8xbf16>
    %cst_46 = arith.constant dense<0.000000e+00> : vector<64x64xf32>
    %164 = tpu.matmul %162, %163, %cst_46 {dimension_numbers = #tpu.dot_dimension_numbers<[1], [1], [0], [0], [0, 0, 1, 0], [], []>} : vector<64x8xbf16>, vector<64x8xbf16>, vector<64x64xf32> -> vector<64x64xf32>
    %165 = arith.addf %164, %5 : vector<64x64xf32>
    %cst_47 = arith.constant dense<0xFF800000> : vector<64xf32>
    %166 = vector.multi_reduction <maximumf>, %165, %cst_47 [1] : vector<64x64xf32> to vector<64xf32>
    %167 = vector.shape_cast %166 : vector<64xf32> to vector<64x1xf32>
    %168 = vector.broadcast %167 : vector<64x1xf32> to vector<64x64xf32>
    %169 = arith.subf %165, %168 : vector<64x64xf32>
    %170 = math.exp %169 : vector<64x64xf32>
    %cst_48 = arith.constant dense<0.000000e+00> : vector<64xf32>
    %171 = vector.multi_reduction <add>, %170, %cst_48 [1] : vector<64x64xf32> to vector<64xf32>
    %172 = vector.shape_cast %171 : vector<64xf32> to vector<64x1xf32>
    %173 = tpu.reciprocal %172 {approx = true} : vector<64x1xf32> -> vector<64x1xf32>
    %174 = vector.broadcast %173 : vector<64x1xf32> to vector<64x64xf32>
    %175 = arith.mulf %170, %174 : vector<64x64xf32>
    %176 = vector.extract_strided_slice %46 {offsets = [24, 0], sizes = [8, 32], strides = [1, 1]} : vector<32x32xf32> to vector<8x32xf32>
    %177 = arith.truncf %161 : vector<64x8xf32> to vector<64x8xbf16>
    %178 = arith.truncf %176 : vector<8x32xf32> to vector<8x32xbf16>
    %cst_49 = arith.constant dense<0.000000e+00> : vector<64x32xf32>
    %179 = tpu.matmul %177, %178, %cst_49 {dimension_numbers = #tpu.dot_dimension_numbers<[1], [0], [0], [1], [0, 0, 1, 1], [], []>} : vector<64x8xbf16>, vector<8x32xbf16>, vector<64x32xf32> -> vector<64x32xf32>
    %180 = arith.truncf %175 : vector<64x64xf32> to vector<64x64xbf16>
    %181 = arith.truncf %179 : vector<64x32xf32> to vector<64x32xbf16>
    %cst_50 = arith.constant dense<0.000000e+00> : vector<64x32xf32>
    %182 = tpu.matmul %180, %181, %cst_50 {dimension_numbers = #tpu.dot_dimension_numbers<[1], [0], [0], [1], [0, 0, 1, 1], [], []>} : vector<64x64xbf16>, vector<64x32xbf16>, vector<64x32xf32> -> vector<64x32xf32>
    %183 = arith.addf %158, %182 : vector<64x32xf32>
    %184 = arith.addf %50, %183 : vector<64x32xf32>
    %185 = vector.broadcast %38 : vector<1x32xf32> to vector<64x32xf32>
    %186 = arith.addf %184, %185 : vector<64x32xf32>
    %cst_51 = arith.constant dense<0.000000e+00> : vector<64xf32>
    %187 = vector.multi_reduction <add>, %186, %cst_51 [1] : vector<64x32xf32> to vector<64xf32>
    %188 = vector.shape_cast %187 : vector<64xf32> to vector<64x1xf32>
    %cst_52 = arith.constant 3.200000e+01 : f32
    %189 = vector.broadcast %cst_52 : f32 to vector<64x1xf32>
    %190 = arith.divf %188, %189 : vector<64x1xf32>
    %191 = vector.broadcast %190 : vector<64x1xf32> to vector<64x32xf32>
    %192 = arith.subf %186, %191 : vector<64x32xf32>
    %193 = arith.mulf %192, %192 : vector<64x32xf32>
    %cst_53 = arith.constant dense<0.000000e+00> : vector<64xf32>
    %194 = vector.multi_reduction <add>, %193, %cst_53 [1] : vector<64x32xf32> to vector<64xf32>
    %195 = vector.shape_cast %194 : vector<64xf32> to vector<64x1xf32>
    %cst_54 = arith.constant 3.200000e+01 : f32
    %196 = vector.broadcast %cst_54 : f32 to vector<64x1xf32>
    %197 = arith.divf %195, %196 : vector<64x1xf32>
    %198 = vector.broadcast %190 : vector<64x1xf32> to vector<64x32xf32>
    %199 = arith.subf %186, %198 : vector<64x32xf32>
    %cst_55 = arith.constant 9.99999974E-6 : f32
    %200 = vector.broadcast %cst_55 : f32 to vector<64x1xf32>
    %201 = arith.addf %197, %200 : vector<64x1xf32>
    %202 = math.rsqrt %201 : vector<64x1xf32>
    %203 = vector.broadcast %202 : vector<64x1xf32> to vector<64x32xf32>
    %204 = arith.mulf %199, %203 : vector<64x32xf32>
    %205 = vector.broadcast %39 : vector<1x32xf32> to vector<64x32xf32>
    %206 = arith.mulf %204, %205 : vector<64x32xf32>
    %207 = vector.broadcast %40 : vector<1x32xf32> to vector<64x32xf32>
    %208 = arith.addf %206, %207 : vector<64x32xf32>
    %209 = arith.truncf %208 : vector<64x32xf32> to vector<64x32xbf16>
    %210 = arith.truncf %47 : vector<32x128xf32> to vector<32x128xbf16>
    %cst_56 = arith.constant dense<0.000000e+00> : vector<64x128xf32>
    %211 = tpu.matmul %209, %210, %cst_56 {dimension_numbers = #tpu.dot_dimension_numbers<[1], [0], [0], [1], [0, 0, 1, 1], [], []>} : vector<64x32xbf16>, vector<32x128xbf16>, vector<64x128xf32> -> vector<64x128xf32>
    %212 = vector.broadcast %41 : vector<1x128xf32> to vector<64x128xf32>
    %213 = arith.addf %211, %212 : vector<64x128xf32>
    %214 = arith.mulf %213, %213 : vector<64x128xf32>
    %215 = arith.mulf %213, %214 : vector<64x128xf32>
    %cst_57 = arith.constant 4.471500e-02 : f32
    %216 = vector.broadcast %cst_57 : f32 to vector<64x128xf32>
    %217 = arith.mulf %216, %215 : vector<64x128xf32>
    %218 = arith.addf %213, %217 : vector<64x128xf32>
    %cst_58 = arith.constant 0.797884583 : f32
    %219 = vector.broadcast %cst_58 : f32 to vector<64x128xf32>
    %220 = arith.mulf %219, %218 : vector<64x128xf32>
    %221 = math.tanh %220 : vector<64x128xf32>
    %cst_59 = arith.constant 1.000000e+00 : f32
    %222 = vector.broadcast %cst_59 : f32 to vector<64x128xf32>
    %223 = arith.addf %222, %221 : vector<64x128xf32>
    %cst_60 = arith.constant 5.000000e-01 : f32
    %224 = vector.broadcast %cst_60 : f32 to vector<64x128xf32>
    %225 = arith.mulf %224, %223 : vector<64x128xf32>
    %226 = arith.mulf %213, %225 : vector<64x128xf32>
    %227 = arith.truncf %226 : vector<64x128xf32> to vector<64x128xbf16>
    %228 = arith.truncf %49 : vector<128x32xf32> to vector<128x32xbf16>
    %cst_61 = arith.constant dense<0.000000e+00> : vector<64x32xf32>
    %229 = tpu.matmul %227, %228, %cst_61 {dimension_numbers = #tpu.dot_dimension_numbers<[1], [0], [0], [1], [0, 0, 1, 1], [], []>} : vector<64x128xbf16>, vector<128x32xbf16>, vector<64x32xf32> -> vector<64x32xf32>
    %230 = vector.broadcast %42 : vector<1x32xf32> to vector<64x32xf32>
    %231 = arith.addf %229, %230 : vector<64x32xf32>
    %232 = arith.addf %186, %231 : vector<64x32xf32>
    %233 = vector.extract_strided_slice %6 {offsets = [10, 0], sizes = [1, 32], strides = [1, 1]} : vector<24x128xf32> to vector<1x32xf32>
    %234 = vector.extract_strided_slice %6 {offsets = [11, 0], sizes = [1, 32], strides = [1, 1]} : vector<24x128xf32> to vector<1x32xf32>
    %235 = vector.extract_strided_slice %6 {offsets = [12, 0], sizes = [1, 96], strides = [1, 1]} : vector<24x128xf32> to vector<1x96xf32>
    %236 = vector.extract_strided_slice %6 {offsets = [13, 0], sizes = [1, 32], strides = [1, 1]} : vector<24x128xf32> to vector<1x32xf32>
    %237 = vector.extract_strided_slice %6 {offsets = [14, 0], sizes = [1, 32], strides = [1, 1]} : vector<24x128xf32> to vector<1x32xf32>
    %238 = vector.extract_strided_slice %6 {offsets = [15, 0], sizes = [1, 32], strides = [1, 1]} : vector<24x128xf32> to vector<1x32xf32>
    %239 = vector.extract_strided_slice %6 {offsets = [16, 0], sizes = [1, 128], strides = [1, 1]} : vector<24x128xf32> to vector<1x128xf32>
    %240 = vector.extract_strided_slice %6 {offsets = [17, 0], sizes = [1, 32], strides = [1, 1]} : vector<24x128xf32> to vector<1x32xf32>
    %c1 = arith.constant 1 : index
    %c0_62 = arith.constant 0 : index
    %c0_63 = arith.constant 0 : index
    %241 = vector.load %arg5[%c1, %c0_62, %c0_63] : memref<2x32x256xf32, #tpu.memory_space<vmem>>, vector<1x32x256xf32>
    %242 = vector.shape_cast %241 : vector<1x32x256xf32> to vector<32x256xf32>
    %243 = vector.extract_strided_slice %242 {offsets = [0, 0], sizes = [32, 96], strides = [1, 1]} : vector<32x256xf32> to vector<32x96xf32>
    %244 = vector.extract_strided_slice %242 {offsets = [0, 96], sizes = [32, 32], strides = [1, 1]} : vector<32x256xf32> to vector<32x32xf32>
    %245 = vector.extract_strided_slice %242 {offsets = [0, 128], sizes = [32, 128], strides = [1, 1]} : vector<32x256xf32> to vector<32x128xf32>
    %c1_64 = arith.constant 1 : index
    %c0_65 = arith.constant 0 : index
    %c0_66 = arith.constant 0 : index
    %246 = vector.load %arg6[%c1_64, %c0_65, %c0_66] : memref<2x128x32xf32, #tpu.memory_space<vmem>>, vector<1x128x32xf32>
    %247 = vector.shape_cast %246 : vector<1x128x32xf32> to vector<128x32xf32>
    %248 = arith.addf %232, %34 : vector<64x32xf32>
    %cst_67 = arith.constant dense<0.000000e+00> : vector<64xf32>
    %249 = vector.multi_reduction <add>, %248, %cst_67 [1] : vector<64x32xf32> to vector<64xf32>
    %250 = vector.shape_cast %249 : vector<64xf32> to vector<64x1xf32>
    %cst_68 = arith.constant 3.200000e+01 : f32
    %251 = vector.broadcast %cst_68 : f32 to vector<64x1xf32>
    %252 = arith.divf %250, %251 : vector<64x1xf32>
    %253 = vector.broadcast %252 : vector<64x1xf32> to vector<64x32xf32>
    %254 = arith.subf %248, %253 : vector<64x32xf32>
    %255 = arith.mulf %254, %254 : vector<64x32xf32>
    %cst_69 = arith.constant dense<0.000000e+00> : vector<64xf32>
    %256 = vector.multi_reduction <add>, %255, %cst_69 [1] : vector<64x32xf32> to vector<64xf32>
    %257 = vector.shape_cast %256 : vector<64xf32> to vector<64x1xf32>
    %cst_70 = arith.constant 3.200000e+01 : f32
    %258 = vector.broadcast %cst_70 : f32 to vector<64x1xf32>
    %259 = arith.divf %257, %258 : vector<64x1xf32>
    %260 = vector.broadcast %252 : vector<64x1xf32> to vector<64x32xf32>
    %261 = arith.subf %248, %260 : vector<64x32xf32>
    %cst_71 = arith.constant 9.99999974E-6 : f32
    %262 = vector.broadcast %cst_71 : f32 to vector<64x1xf32>
    %263 = arith.addf %259, %262 : vector<64x1xf32>
    %264 = math.rsqrt %263 : vector<64x1xf32>
    %265 = vector.broadcast %264 : vector<64x1xf32> to vector<64x32xf32>
    %266 = arith.mulf %261, %265 : vector<64x32xf32>
    %267 = vector.broadcast %233 : vector<1x32xf32> to vector<64x32xf32>
    %268 = arith.mulf %266, %267 : vector<64x32xf32>
    %269 = vector.broadcast %234 : vector<1x32xf32> to vector<64x32xf32>
    %270 = arith.addf %268, %269 : vector<64x32xf32>
    %271 = arith.truncf %270 : vector<64x32xf32> to vector<64x32xbf16>
    %272 = arith.truncf %243 : vector<32x96xf32> to vector<32x96xbf16>
    %cst_72 = arith.constant dense<0.000000e+00> : vector<64x96xf32>
    %273 = tpu.matmul %271, %272, %cst_72 {dimension_numbers = #tpu.dot_dimension_numbers<[1], [0], [0], [1], [0, 0, 1, 1], [], []>} : vector<64x32xbf16>, vector<32x96xbf16>, vector<64x96xf32> -> vector<64x96xf32>
    %274 = vector.broadcast %235 : vector<1x96xf32> to vector<64x96xf32>
    %275 = arith.addf %273, %274 : vector<64x96xf32>
    %276 = vector.extract_strided_slice %275 {offsets = [0, 0], sizes = [64, 32], strides = [1, 1]} : vector<64x96xf32> to vector<64x32xf32>
    %cst_73 = arith.constant 0.353553385 : f32
    %277 = vector.broadcast %cst_73 : f32 to vector<64x32xf32>
    %278 = arith.mulf %276, %277 : vector<64x32xf32>
    %279 = vector.extract_strided_slice %275 {offsets = [0, 32], sizes = [64, 32], strides = [1, 1]} : vector<64x96xf32> to vector<64x32xf32>
    %280 = vector.extract_strided_slice %275 {offsets = [0, 64], sizes = [64, 32], strides = [1, 1]} : vector<64x96xf32> to vector<64x32xf32>
    %cst_74 = arith.constant 0.000000e+00 : f32
    %281 = vector.broadcast %cst_74 : f32 to vector<64x32xf32>
    %282 = vector.extract_strided_slice %278 {offsets = [0, 0], sizes = [64, 8], strides = [1, 1]} : vector<64x32xf32> to vector<64x8xf32>
    %283 = vector.extract_strided_slice %279 {offsets = [0, 0], sizes = [64, 8], strides = [1, 1]} : vector<64x32xf32> to vector<64x8xf32>
    %284 = vector.extract_strided_slice %280 {offsets = [0, 0], sizes = [64, 8], strides = [1, 1]} : vector<64x32xf32> to vector<64x8xf32>
    %285 = arith.truncf %282 : vector<64x8xf32> to vector<64x8xbf16>
    %286 = arith.truncf %283 : vector<64x8xf32> to vector<64x8xbf16>
    %cst_75 = arith.constant dense<0.000000e+00> : vector<64x64xf32>
    %287 = tpu.matmul %285, %286, %cst_75 {dimension_numbers = #tpu.dot_dimension_numbers<[1], [1], [0], [0], [0, 0, 1, 0], [], []>} : vector<64x8xbf16>, vector<64x8xbf16>, vector<64x64xf32> -> vector<64x64xf32>
    %288 = arith.addf %287, %5 : vector<64x64xf32>
    %cst_76 = arith.constant dense<0xFF800000> : vector<64xf32>
    %289 = vector.multi_reduction <maximumf>, %288, %cst_76 [1] : vector<64x64xf32> to vector<64xf32>
    %290 = vector.shape_cast %289 : vector<64xf32> to vector<64x1xf32>
    %291 = vector.broadcast %290 : vector<64x1xf32> to vector<64x64xf32>
    %292 = arith.subf %288, %291 : vector<64x64xf32>
    %293 = math.exp %292 : vector<64x64xf32>
    %cst_77 = arith.constant dense<0.000000e+00> : vector<64xf32>
    %294 = vector.multi_reduction <add>, %293, %cst_77 [1] : vector<64x64xf32> to vector<64xf32>
    %295 = vector.shape_cast %294 : vector<64xf32> to vector<64x1xf32>
    %296 = tpu.reciprocal %295 {approx = true} : vector<64x1xf32> -> vector<64x1xf32>
    %297 = vector.broadcast %296 : vector<64x1xf32> to vector<64x64xf32>
    %298 = arith.mulf %293, %297 : vector<64x64xf32>
    %299 = vector.extract_strided_slice %244 {offsets = [0, 0], sizes = [8, 32], strides = [1, 1]} : vector<32x32xf32> to vector<8x32xf32>
    %300 = arith.truncf %284 : vector<64x8xf32> to vector<64x8xbf16>
    %301 = arith.truncf %299 : vector<8x32xf32> to vector<8x32xbf16>
    %cst_78 = arith.constant dense<0.000000e+00> : vector<64x32xf32>
    %302 = tpu.matmul %300, %301, %cst_78 {dimension_numbers = #tpu.dot_dimension_numbers<[1], [0], [0], [1], [0, 0, 1, 1], [], []>} : vector<64x8xbf16>, vector<8x32xbf16>, vector<64x32xf32> -> vector<64x32xf32>
    %303 = arith.truncf %298 : vector<64x64xf32> to vector<64x64xbf16>
    %304 = arith.truncf %302 : vector<64x32xf32> to vector<64x32xbf16>
    %cst_79 = arith.constant dense<0.000000e+00> : vector<64x32xf32>
    %305 = tpu.matmul %303, %304, %cst_79 {dimension_numbers = #tpu.dot_dimension_numbers<[1], [0], [0], [1], [0, 0, 1, 1], [], []>} : vector<64x64xbf16>, vector<64x32xbf16>, vector<64x32xf32> -> vector<64x32xf32>
    %306 = arith.addf %281, %305 : vector<64x32xf32>
    %307 = vector.extract_strided_slice %278 {offsets = [0, 8], sizes = [64, 8], strides = [1, 1]} : vector<64x32xf32> to vector<64x8xf32>
    %308 = vector.extract_strided_slice %279 {offsets = [0, 8], sizes = [64, 8], strides = [1, 1]} : vector<64x32xf32> to vector<64x8xf32>
    %309 = vector.extract_strided_slice %280 {offsets = [0, 8], sizes = [64, 8], strides = [1, 1]} : vector<64x32xf32> to vector<64x8xf32>
    %310 = arith.truncf %307 : vector<64x8xf32> to vector<64x8xbf16>
    %311 = arith.truncf %308 : vector<64x8xf32> to vector<64x8xbf16>
    %cst_80 = arith.constant dense<0.000000e+00> : vector<64x64xf32>
    %312 = tpu.matmul %310, %311, %cst_80 {dimension_numbers = #tpu.dot_dimension_numbers<[1], [1], [0], [0], [0, 0, 1, 0], [], []>} : vector<64x8xbf16>, vector<64x8xbf16>, vector<64x64xf32> -> vector<64x64xf32>
    %313 = arith.addf %312, %5 : vector<64x64xf32>
    %cst_81 = arith.constant dense<0xFF800000> : vector<64xf32>
    %314 = vector.multi_reduction <maximumf>, %313, %cst_81 [1] : vector<64x64xf32> to vector<64xf32>
    %315 = vector.shape_cast %314 : vector<64xf32> to vector<64x1xf32>
    %316 = vector.broadcast %315 : vector<64x1xf32> to vector<64x64xf32>
    %317 = arith.subf %313, %316 : vector<64x64xf32>
    %318 = math.exp %317 : vector<64x64xf32>
    %cst_82 = arith.constant dense<0.000000e+00> : vector<64xf32>
    %319 = vector.multi_reduction <add>, %318, %cst_82 [1] : vector<64x64xf32> to vector<64xf32>
    %320 = vector.shape_cast %319 : vector<64xf32> to vector<64x1xf32>
    %321 = tpu.reciprocal %320 {approx = true} : vector<64x1xf32> -> vector<64x1xf32>
    %322 = vector.broadcast %321 : vector<64x1xf32> to vector<64x64xf32>
    %323 = arith.mulf %318, %322 : vector<64x64xf32>
    %324 = vector.extract_strided_slice %244 {offsets = [8, 0], sizes = [8, 32], strides = [1, 1]} : vector<32x32xf32> to vector<8x32xf32>
    %325 = arith.truncf %309 : vector<64x8xf32> to vector<64x8xbf16>
    %326 = arith.truncf %324 : vector<8x32xf32> to vector<8x32xbf16>
    %cst_83 = arith.constant dense<0.000000e+00> : vector<64x32xf32>
    %327 = tpu.matmul %325, %326, %cst_83 {dimension_numbers = #tpu.dot_dimension_numbers<[1], [0], [0], [1], [0, 0, 1, 1], [], []>} : vector<64x8xbf16>, vector<8x32xbf16>, vector<64x32xf32> -> vector<64x32xf32>
    %328 = arith.truncf %323 : vector<64x64xf32> to vector<64x64xbf16>
    %329 = arith.truncf %327 : vector<64x32xf32> to vector<64x32xbf16>
    %cst_84 = arith.constant dense<0.000000e+00> : vector<64x32xf32>
    %330 = tpu.matmul %328, %329, %cst_84 {dimension_numbers = #tpu.dot_dimension_numbers<[1], [0], [0], [1], [0, 0, 1, 1], [], []>} : vector<64x64xbf16>, vector<64x32xbf16>, vector<64x32xf32> -> vector<64x32xf32>
    %331 = arith.addf %306, %330 : vector<64x32xf32>
    %332 = vector.extract_strided_slice %278 {offsets = [0, 16], sizes = [64, 8], strides = [1, 1]} : vector<64x32xf32> to vector<64x8xf32>
    %333 = vector.extract_strided_slice %279 {offsets = [0, 16], sizes = [64, 8], strides = [1, 1]} : vector<64x32xf32> to vector<64x8xf32>
    %334 = vector.extract_strided_slice %280 {offsets = [0, 16], sizes = [64, 8], strides = [1, 1]} : vector<64x32xf32> to vector<64x8xf32>
    %335 = arith.truncf %332 : vector<64x8xf32> to vector<64x8xbf16>
    %336 = arith.truncf %333 : vector<64x8xf32> to vector<64x8xbf16>
    %cst_85 = arith.constant dense<0.000000e+00> : vector<64x64xf32>
    %337 = tpu.matmul %335, %336, %cst_85 {dimension_numbers = #tpu.dot_dimension_numbers<[1], [1], [0], [0], [0, 0, 1, 0], [], []>} : vector<64x8xbf16>, vector<64x8xbf16>, vector<64x64xf32> -> vector<64x64xf32>
    %338 = arith.addf %337, %5 : vector<64x64xf32>
    %cst_86 = arith.constant dense<0xFF800000> : vector<64xf32>
    %339 = vector.multi_reduction <maximumf>, %338, %cst_86 [1] : vector<64x64xf32> to vector<64xf32>
    %340 = vector.shape_cast %339 : vector<64xf32> to vector<64x1xf32>
    %341 = vector.broadcast %340 : vector<64x1xf32> to vector<64x64xf32>
    %342 = arith.subf %338, %341 : vector<64x64xf32>
    %343 = math.exp %342 : vector<64x64xf32>
    %cst_87 = arith.constant dense<0.000000e+00> : vector<64xf32>
    %344 = vector.multi_reduction <add>, %343, %cst_87 [1] : vector<64x64xf32> to vector<64xf32>
    %345 = vector.shape_cast %344 : vector<64xf32> to vector<64x1xf32>
    %346 = tpu.reciprocal %345 {approx = true} : vector<64x1xf32> -> vector<64x1xf32>
    %347 = vector.broadcast %346 : vector<64x1xf32> to vector<64x64xf32>
    %348 = arith.mulf %343, %347 : vector<64x64xf32>
    %349 = vector.extract_strided_slice %244 {offsets = [16, 0], sizes = [8, 32], strides = [1, 1]} : vector<32x32xf32> to vector<8x32xf32>
    %350 = arith.truncf %334 : vector<64x8xf32> to vector<64x8xbf16>
    %351 = arith.truncf %349 : vector<8x32xf32> to vector<8x32xbf16>
    %cst_88 = arith.constant dense<0.000000e+00> : vector<64x32xf32>
    %352 = tpu.matmul %350, %351, %cst_88 {dimension_numbers = #tpu.dot_dimension_numbers<[1], [0], [0], [1], [0, 0, 1, 1], [], []>} : vector<64x8xbf16>, vector<8x32xbf16>, vector<64x32xf32> -> vector<64x32xf32>
    %353 = arith.truncf %348 : vector<64x64xf32> to vector<64x64xbf16>
    %354 = arith.truncf %352 : vector<64x32xf32> to vector<64x32xbf16>
    %cst_89 = arith.constant dense<0.000000e+00> : vector<64x32xf32>
    %355 = tpu.matmul %353, %354, %cst_89 {dimension_numbers = #tpu.dot_dimension_numbers<[1], [0], [0], [1], [0, 0, 1, 1], [], []>} : vector<64x64xbf16>, vector<64x32xbf16>, vector<64x32xf32> -> vector<64x32xf32>
    %356 = arith.addf %331, %355 : vector<64x32xf32>
    %357 = vector.extract_strided_slice %278 {offsets = [0, 24], sizes = [64, 8], strides = [1, 1]} : vector<64x32xf32> to vector<64x8xf32>
    %358 = vector.extract_strided_slice %279 {offsets = [0, 24], sizes = [64, 8], strides = [1, 1]} : vector<64x32xf32> to vector<64x8xf32>
    %359 = vector.extract_strided_slice %280 {offsets = [0, 24], sizes = [64, 8], strides = [1, 1]} : vector<64x32xf32> to vector<64x8xf32>
    %360 = arith.truncf %357 : vector<64x8xf32> to vector<64x8xbf16>
    %361 = arith.truncf %358 : vector<64x8xf32> to vector<64x8xbf16>
    %cst_90 = arith.constant dense<0.000000e+00> : vector<64x64xf32>
    %362 = tpu.matmul %360, %361, %cst_90 {dimension_numbers = #tpu.dot_dimension_numbers<[1], [1], [0], [0], [0, 0, 1, 0], [], []>} : vector<64x8xbf16>, vector<64x8xbf16>, vector<64x64xf32> -> vector<64x64xf32>
    %363 = arith.addf %362, %5 : vector<64x64xf32>
    %cst_91 = arith.constant dense<0xFF800000> : vector<64xf32>
    %364 = vector.multi_reduction <maximumf>, %363, %cst_91 [1] : vector<64x64xf32> to vector<64xf32>
    %365 = vector.shape_cast %364 : vector<64xf32> to vector<64x1xf32>
    %366 = vector.broadcast %365 : vector<64x1xf32> to vector<64x64xf32>
    %367 = arith.subf %363, %366 : vector<64x64xf32>
    %368 = math.exp %367 : vector<64x64xf32>
    %cst_92 = arith.constant dense<0.000000e+00> : vector<64xf32>
    %369 = vector.multi_reduction <add>, %368, %cst_92 [1] : vector<64x64xf32> to vector<64xf32>
    %370 = vector.shape_cast %369 : vector<64xf32> to vector<64x1xf32>
    %371 = tpu.reciprocal %370 {approx = true} : vector<64x1xf32> -> vector<64x1xf32>
    %372 = vector.broadcast %371 : vector<64x1xf32> to vector<64x64xf32>
    %373 = arith.mulf %368, %372 : vector<64x64xf32>
    %374 = vector.extract_strided_slice %244 {offsets = [24, 0], sizes = [8, 32], strides = [1, 1]} : vector<32x32xf32> to vector<8x32xf32>
    %375 = arith.truncf %359 : vector<64x8xf32> to vector<64x8xbf16>
    %376 = arith.truncf %374 : vector<8x32xf32> to vector<8x32xbf16>
    %cst_93 = arith.constant dense<0.000000e+00> : vector<64x32xf32>
    %377 = tpu.matmul %375, %376, %cst_93 {dimension_numbers = #tpu.dot_dimension_numbers<[1], [0], [0], [1], [0, 0, 1, 1], [], []>} : vector<64x8xbf16>, vector<8x32xbf16>, vector<64x32xf32> -> vector<64x32xf32>
    %378 = arith.truncf %373 : vector<64x64xf32> to vector<64x64xbf16>
    %379 = arith.truncf %377 : vector<64x32xf32> to vector<64x32xbf16>
    %cst_94 = arith.constant dense<0.000000e+00> : vector<64x32xf32>
    %380 = tpu.matmul %378, %379, %cst_94 {dimension_numbers = #tpu.dot_dimension_numbers<[1], [0], [0], [1], [0, 0, 1, 1], [], []>} : vector<64x64xbf16>, vector<64x32xbf16>, vector<64x32xf32> -> vector<64x32xf32>
    %381 = arith.addf %356, %380 : vector<64x32xf32>
    %382 = arith.addf %248, %381 : vector<64x32xf32>
    %383 = vector.broadcast %236 : vector<1x32xf32> to vector<64x32xf32>
    %384 = arith.addf %382, %383 : vector<64x32xf32>
    %cst_95 = arith.constant dense<0.000000e+00> : vector<64xf32>
    %385 = vector.multi_reduction <add>, %384, %cst_95 [1] : vector<64x32xf32> to vector<64xf32>
    %386 = vector.shape_cast %385 : vector<64xf32> to vector<64x1xf32>
    %cst_96 = arith.constant 3.200000e+01 : f32
    %387 = vector.broadcast %cst_96 : f32 to vector<64x1xf32>
    %388 = arith.divf %386, %387 : vector<64x1xf32>
    %389 = vector.broadcast %388 : vector<64x1xf32> to vector<64x32xf32>
    %390 = arith.subf %384, %389 : vector<64x32xf32>
    %391 = arith.mulf %390, %390 : vector<64x32xf32>
    %cst_97 = arith.constant dense<0.000000e+00> : vector<64xf32>
    %392 = vector.multi_reduction <add>, %391, %cst_97 [1] : vector<64x32xf32> to vector<64xf32>
    %393 = vector.shape_cast %392 : vector<64xf32> to vector<64x1xf32>
    %cst_98 = arith.constant 3.200000e+01 : f32
    %394 = vector.broadcast %cst_98 : f32 to vector<64x1xf32>
    %395 = arith.divf %393, %394 : vector<64x1xf32>
    %396 = vector.broadcast %388 : vector<64x1xf32> to vector<64x32xf32>
    %397 = arith.subf %384, %396 : vector<64x32xf32>
    %cst_99 = arith.constant 9.99999974E-6 : f32
    %398 = vector.broadcast %cst_99 : f32 to vector<64x1xf32>
    %399 = arith.addf %395, %398 : vector<64x1xf32>
    %400 = math.rsqrt %399 : vector<64x1xf32>
    %401 = vector.broadcast %400 : vector<64x1xf32> to vector<64x32xf32>
    %402 = arith.mulf %397, %401 : vector<64x32xf32>
    %403 = vector.broadcast %237 : vector<1x32xf32> to vector<64x32xf32>
    %404 = arith.mulf %402, %403 : vector<64x32xf32>
    %405 = vector.broadcast %238 : vector<1x32xf32> to vector<64x32xf32>
    %406 = arith.addf %404, %405 : vector<64x32xf32>
    %407 = arith.truncf %406 : vector<64x32xf32> to vector<64x32xbf16>
    %408 = arith.truncf %245 : vector<32x128xf32> to vector<32x128xbf16>
    %cst_100 = arith.constant dense<0.000000e+00> : vector<64x128xf32>
    %409 = tpu.matmul %407, %408, %cst_100 {dimension_numbers = #tpu.dot_dimension_numbers<[1], [0], [0], [1], [0, 0, 1, 1], [], []>} : vector<64x32xbf16>, vector<32x128xbf16>, vector<64x128xf32> -> vector<64x128xf32>
    %410 = vector.broadcast %239 : vector<1x128xf32> to vector<64x128xf32>
    %411 = arith.addf %409, %410 : vector<64x128xf32>
    %412 = arith.mulf %411, %411 : vector<64x128xf32>
    %413 = arith.mulf %411, %412 : vector<64x128xf32>
    %cst_101 = arith.constant 4.471500e-02 : f32
    %414 = vector.broadcast %cst_101 : f32 to vector<64x128xf32>
    %415 = arith.mulf %414, %413 : vector<64x128xf32>
    %416 = arith.addf %411, %415 : vector<64x128xf32>
    %cst_102 = arith.constant 0.797884583 : f32
    %417 = vector.broadcast %cst_102 : f32 to vector<64x128xf32>
    %418 = arith.mulf %417, %416 : vector<64x128xf32>
    %419 = math.tanh %418 : vector<64x128xf32>
    %cst_103 = arith.constant 1.000000e+00 : f32
    %420 = vector.broadcast %cst_103 : f32 to vector<64x128xf32>
    %421 = arith.addf %420, %419 : vector<64x128xf32>
    %cst_104 = arith.constant 5.000000e-01 : f32
    %422 = vector.broadcast %cst_104 : f32 to vector<64x128xf32>
    %423 = arith.mulf %422, %421 : vector<64x128xf32>
    %424 = arith.mulf %411, %423 : vector<64x128xf32>
    %425 = arith.truncf %424 : vector<64x128xf32> to vector<64x128xbf16>
    %426 = arith.truncf %247 : vector<128x32xf32> to vector<128x32xbf16>
    %cst_105 = arith.constant dense<0.000000e+00> : vector<64x32xf32>
    %427 = tpu.matmul %425, %426, %cst_105 {dimension_numbers = #tpu.dot_dimension_numbers<[1], [0], [0], [1], [0, 0, 1, 1], [], []>} : vector<64x128xbf16>, vector<128x32xbf16>, vector<64x32xf32> -> vector<64x32xf32>
    %428 = vector.broadcast %240 : vector<1x32xf32> to vector<64x32xf32>
    %429 = arith.addf %427, %428 : vector<64x32xf32>
    %430 = arith.addf %384, %429 : vector<64x32xf32>
    %431 = vector.extract_strided_slice %6 {offsets = [18, 0], sizes = [1, 32], strides = [1, 1]} : vector<24x128xf32> to vector<1x32xf32>
    %432 = vector.extract_strided_slice %6 {offsets = [19, 0], sizes = [1, 32], strides = [1, 1]} : vector<24x128xf32> to vector<1x32xf32>
    %cst_106 = arith.constant dense<0.000000e+00> : vector<64xf32>
    %433 = vector.multi_reduction <add>, %430, %cst_106 [1] : vector<64x32xf32> to vector<64xf32>
    %434 = vector.shape_cast %433 : vector<64xf32> to vector<64x1xf32>
    %cst_107 = arith.constant 3.200000e+01 : f32
    %435 = vector.broadcast %cst_107 : f32 to vector<64x1xf32>
    %436 = arith.divf %434, %435 : vector<64x1xf32>
    %437 = vector.broadcast %436 : vector<64x1xf32> to vector<64x32xf32>
    %438 = arith.subf %430, %437 : vector<64x32xf32>
    %439 = arith.mulf %438, %438 : vector<64x32xf32>
    %cst_108 = arith.constant dense<0.000000e+00> : vector<64xf32>
    %440 = vector.multi_reduction <add>, %439, %cst_108 [1] : vector<64x32xf32> to vector<64xf32>
    %441 = vector.shape_cast %440 : vector<64xf32> to vector<64x1xf32>
    %cst_109 = arith.constant 3.200000e+01 : f32
    %442 = vector.broadcast %cst_109 : f32 to vector<64x1xf32>
    %443 = arith.divf %441, %442 : vector<64x1xf32>
    %444 = vector.broadcast %436 : vector<64x1xf32> to vector<64x32xf32>
    %445 = arith.subf %430, %444 : vector<64x32xf32>
    %cst_110 = arith.constant 9.99999974E-6 : f32
    %446 = vector.broadcast %cst_110 : f32 to vector<64x1xf32>
    %447 = arith.addf %443, %446 : vector<64x1xf32>
    %448 = math.rsqrt %447 : vector<64x1xf32>
    %449 = vector.broadcast %448 : vector<64x1xf32> to vector<64x32xf32>
    %450 = arith.mulf %445, %449 : vector<64x32xf32>
    %451 = vector.broadcast %431 : vector<1x32xf32> to vector<64x32xf32>
    %452 = arith.mulf %450, %451 : vector<64x32xf32>
    %453 = vector.broadcast %432 : vector<1x32xf32> to vector<64x32xf32>
    %454 = arith.addf %452, %453 : vector<64x32xf32>
    %455 = vector.extract_strided_slice %454 {offsets = [8, 0], sizes = [8, 32], strides = [1, 1]} : vector<64x32xf32> to vector<8x32xf32>
    %456 = vector.extract_strided_slice %454 {offsets = [24, 0], sizes = [8, 32], strides = [1, 1]} : vector<64x32xf32> to vector<8x32xf32>
    %457 = vector.extract_strided_slice %454 {offsets = [40, 0], sizes = [8, 32], strides = [1, 1]} : vector<64x32xf32> to vector<8x32xf32>
    %458 = vector.extract_strided_slice %454 {offsets = [56, 0], sizes = [8, 32], strides = [1, 1]} : vector<64x32xf32> to vector<8x32xf32>
    %459 = tpu.concatenate %455, %456, %457, %458 in 1 : vector<8x32xf32>, vector<8x32xf32>, vector<8x32xf32>, vector<8x32xf32> -> vector<8x128xf32>
    %c0_111 = arith.constant 0 : index
    %c0_112 = arith.constant 0 : index
    %c0_113 = arith.constant 0 : index
    %460 = vector.load %arg8[%c0_111, %c0_112, %c0_113] : memref<1x8x128xf32, #tpu.memory_space<vmem>>, vector<1x8x128xf32>
    %461 = vector.shape_cast %460 : vector<1x8x128xf32> to vector<8x128xf32>
    %462 = vector.shape_cast %459 : vector<8x128xf32> to vector<1x8x128xf32>
    tpu.vector_store %arg8[%c0_111, %c0_112, %c0_113], %462 {strides = array<i32>} : memref<1x8x128xf32, #tpu.memory_space<vmem>>, vector<1x8x128xf32>,
    return
  }
  func.func @transform_0(%arg0: i32) -> (i32, i32, i32) {
    %c0_i32 = arith.constant 0 : i32
    %c0_i32_0 = arith.constant 0 : i32
    %c0_i32_1 = arith.constant 0 : i32
    return %arg0, %c0_i32, %c0_i32_0 : i32, i32, i32
  }
  func.func @transform_1(%arg0: i32) -> (i32, i32, i32) {
    %c0_i32 = arith.constant 0 : i32
    %c0_i32_0 = arith.constant 0 : i32
    %c0_i32_1 = arith.constant 0 : i32
    return %arg0, %c0_i32, %c0_i32_0 : i32, i32, i32
  }
  func.func @transform_2(%arg0: i32) -> (i32, i32, i32) {
    %c0_i32 = arith.constant 0 : i32
    %c0_i32_0 = arith.constant 0 : i32
    %c0_i32_1 = arith.constant 0 : i32
    return %arg0, %c0_i32, %c0_i32_0 : i32, i32, i32
  }
  func.func @transform_3(%arg0: i32) -> (i32, i32) {
    %c0_i32 = arith.constant 0 : i32
    %c0_i32_0 = arith.constant 0 : i32
    %c0_i32_1 = arith.constant 0 : i32
    return %c0_i32, %c0_i32_0 : i32, i32
  }
  func.func @transform_4(%arg0: i32) -> (i32, i32, i32) {
    %c0_i32 = arith.constant 0 : i32
    %c0_i32_0 = arith.constant 0 : i32
    %c0_i32_1 = arith.constant 0 : i32
    %c0_i32_2 = arith.constant 0 : i32
    return %c0_i32, %c0_i32_0, %c0_i32_1 : i32, i32, i32
  }
  func.func @transform_5(%arg0: i32) -> (i32, i32, i32) {
    %c0_i32 = arith.constant 0 : i32
    %c0_i32_0 = arith.constant 0 : i32
    %c0_i32_1 = arith.constant 0 : i32
    %c0_i32_2 = arith.constant 0 : i32
    return %c0_i32, %c0_i32_0, %c0_i32_1 : i32, i32, i32
  }
  func.func @transform_6(%arg0: i32) -> (i32, i32) {
    %c0_i32 = arith.constant 0 : i32
    %c0_i32_0 = arith.constant 0 : i32
    %c0_i32_1 = arith.constant 0 : i32
    return %c0_i32, %c0_i32_0 : i32, i32
  }
  func.func @transform_7(%arg0: i32) -> (i32, i32, i32) {
    %c0_i32 = arith.constant 0 : i32
    %c0_i32_0 = arith.constant 0 : i32
    %c0_i32_1 = arith.constant 0 : i32
    return %arg0, %c0_i32, %c0_i32_0 : i32, i32, i32
  }
}

</mosaic_0001>

<bundles_post_ra>
// kernel: tpu_custom_call.1
= control target key start
LH: loop header
LB: loop body
LE: loop exit
PB: predicated region body
PF: predicated region fallthrough
CT: control target
= control target key end

     0   :  { %vm79_vm0 = vcmask 1043456   ;;  %s6653_s0 = inlined_call_operand.vmem [shape: f32[1,64,8], index: 0, kind: input, shape index: {}]   ;;  %s6654_s1 = inlined_call_operand.vmem [shape: f32[1,64,32], index: 1, kind: input, shape index: {}]   ;;  %s6655_s2 = inlined_call_operand.vmem [shape: f32[1,64,64], index: 2, kind: input, shape index: {}]   ;;  %s6656_s3 = inlined_call_operand.vmem [shape: f32[40,32], index: 3, kind: input, shape index: {}]   ;;  %s6657_s4 = inlined_call_operand.vmem [shape: f32[2,32,256], index: 4, kind: input, shape index: {}]   ;;  %s6658_s5 = inlined_call_operand.vmem [shape: f32[2,128,32], index: 5, kind: input, shape index: {}]   ;;  %s6659_s6 = inlined_call_operand.vmem [shape: f32[24,128], index: 6, kind: input, shape index: {}]   ;;  %s6660_s7 = inlined_call_operand.hbm [shape: f32[1,8,128], index: 7, kind: output, shape index: {}]  }
   0x1   :  { %v55_v0 = vld [vmem:[%s6656_s3] sm:$0xff]  ;;  %v29_v2 = vld [vmem:[%s6653_s0 + $0x8] sm:$0xff] }
   0x2   :  { %v28_v1 = vld [vmem:[%s6653_s0] sm:$0xff]  ;;  %v64_v3 = vpack.c.bf16 %v55_v0, %v55_v0 }
   0x3   :  { %12 = vsyncpa [#allocation3], 0  ;;  %v60_v5 = vpack.c.bf16 %v29_v2, %v28_v1  ;;  %vm66_vm1 = vcmask 64512   ;;  %v30_v6 = vld [vmem:[%s6653_s0 + $0x10] sm:$0xff]  ;;  %v31_v7 = vld [vmem:[%s6653_s0 + $0x18] sm:$0xff]  ;;  %vm191_vm2 = vcmask 261120  }
   0x4   :  { %v81_v4 = vsel %vm79_vm0, %v64_v3, 0  ;;  %v61_v8 = vpack.c.bf16 %v31_v7, %v30_v6  ;;  %v32_v9 = vld [vmem:[%s6653_s0 + $0x20] sm:$0xff]  ;;  %v33_v10 = vld [vmem:[%s6653_s0 + $0x28] sm:$0xff]  ;;  %v34_v12 = vld [vmem:[%s6653_s0 + $0x30] sm:$0xff]  ;;  %s4413_s26 = smov 96   ;;  %s4414_s27 = smov 64  }
   0x5   :  { %90 = vmatpush.bf16.msra.mxu0 %v81_v4  ;;  %v62_v11 = vpack.c.bf16 %v33_v10, %v32_v9  ;;  %v35_v13 = vld [vmem:[%s6653_s0 + $0x38] sm:$0xff]  ;;  %v4501_v15 = vld [vmem:[%s6659_s6] sm:$0xff]  ;;  %v56_v20 = vld [vmem:[%s6656_s3 + $0x8] sm:$0xff]  ;;  %s4416_s28 = smov 80   ;;  %s4417_s29 = smov 32  }
   0x6   :  { %v63_v14 = vpack.c.bf16 %v35_v13, %v34_v12  ;;  %v58_v16 = vld [vmem:[%s6656_s3 + $0x18] sm:$0xff]  ;;  %v59_v17 = vld [vmem:[%s6656_s3 + $0x20] sm:$0xff]  ;;  %v4510_v19 = vperm.slane %v4501_v15, 0  ;;  %v57_v21 = vld [vmem:[%s6656_s3 + $0x10] sm:$0xff]  ;;  %s4415_s3 = smov 88   ;;  %s4418_s30 = smov 72  }
   0x7   :  { %v189_v18 = vpack.c.bf16 %v59_v17, %v58_v16  ;;  %v188_v22 = vpack.c.bf16 %v57_v21, %v56_v20  ;;  %s4419_s8 = smov 120   ;;  %s4420_s9 = smov 56  }
   0x8   :  { %3836 = vmatmul.msk.bf16.vlgmr.msra.gmra.mxu0 %vm66_vm1, %v60_v5  ;;  %s4421_s0 = smov 112   ;;  %s4422_s25 = smov 104  }
   0x9   :  { %210 = vmatpush.bf16.msra.mxu1 %v189_v18  ;;  %s4423_s10 = smov 48   ;;  %s4424_s11 = smov 40  }
   0xa   :  { %s3827_s15 = sshll.u32 %s6660_s7, 4  ;;  %s3828_s15 = int_to_ptr.hbm [resolvable:$true] %s3827_s15 }
   0xd   :  { %211 = vmatpush.bf16.msra.mxu1 %v188_v22 }
  0x18   :  { %3837 = vmatmul.msk.bf16.gmra.mxu0 %vm66_vm1, %v61_v8 }
  0x28   :  { %3838 = vmatmul.msk.bf16.gmra.mxu0 %vm66_vm1, %v62_v11 }
  0x38   :  { %3839 = vmatmul.msk.bf16.gmra.mxu0 %vm66_vm1, %v63_v14 }
  0x85   :  { %v92_v23 = vpop.f32.mrf.mxu0 }
  0x86   :  { %v93_v24 = vadd.f32 %v92_v23, %v4510_v19 }
  0x88   :  { %v112_v25 = vmul.f32 %v93_v24, %v93_v24 }
  0x8a   :  { %v120_v26 = vmul.f32 %v112_v25, %v93_v24 }
  0x8c   :  { %v128_v27 = vmul.f32 0.044715, %v120_v26 }
  0x8d   :  { %v94_v28 = vpop.f32.mrf.mxu0 }
  0x8e   :  { %v136_v29 = vadd.f32 %v128_v27, %v93_v24  ;;  %v95_v30 = vadd.f32 %v94_v28, %v4510_v19 }
  0x90   :  { %v144_v31 = vmul.f32 0.7978846, %v136_v29  ;;  %v113_v32 = vmul.f32 %v95_v30, %v95_v30 }
  0x92   :  { %v121_v33 = vmul.f32 %v113_v32, %v95_v30  ;;  %3998 = vtanh.f32 %v144_v31 }
  0x94   :  { %v129_v34 = vmul.f32 0.044715, %v121_v33 }
  0x95   :  { %v97_v35 = vpop.f32.mrf.mxu0 }
  0x96   :  { %v137_v36 = vadd.f32 %v129_v34, %v95_v30  ;;  %v98_v37 = vadd.f32 %v97_v35, %v4510_v19 }
  0x98   :  { %v145_v38 = vmul.f32 0.7978846, %v137_v36  ;;  %v114_v39 = vmul.f32 %v98_v37, %v98_v37  ;;  %v3999_v40 = vpop.eup %3998 }
  0x99   :  { %v160_v44 = vadd.f32 1.0, %v3999_v40 }
  0x9a   :  { %v122_v41 = vmul.f32 %v114_v39, %v98_v37  ;;  %4000 = vtanh.f32 %v145_v38 }
  0x9b   :  { %v168_v51 = vmul.f32 0.5, %v160_v44 }
  0x9c   :  { %v130_v42 = vmul.f32 0.044715, %v122_v41 }
  0x9d   :  { %v99_v43 = vpop.f32.mrf.mxu0  ;;  %v176_v56 = vmul.f32 %v168_v51, %v93_v24 }
  0x9e   :  { %v138_v45 = vadd.f32 %v130_v42, %v98_v37  ;;  %v100_v46 = vadd.f32 %v99_v43, %v4510_v19 }
  0xa0   :  { %v4001_v47 = vpop.eup %4000  ;;  %v146_v48 = vmul.f32 0.7978846, %v138_v45  ;;  %v115_v49 = vmul.f32 %v100_v46, %v100_v46 }
  0xa1   :  { %v161_v50 = vadd.f32 1.0, %v4001_v47 }
  0xa2   :  { %4002 = vtanh.f32 %v146_v48  ;;  %v123_v52 = vmul.f32 %v115_v49, %v100_v46 }
  0xa3   :  { %v169_v53 = vmul.f32 0.5, %v161_v50 }
  0xa4   :  { %v131_v54 = vmul.f32 0.044715, %v123_v52  ;;  %v190_v52 = vperm.slane %v4501_v15, 1 }
  0xa5   :  { %v102_v55 = vpop.f32.mrf.mxu0  ;;  %v177_v57 = vmul.f32 %v169_v53, %v95_v30  ;;  %v36_v53 = vld [vmem:[%s6654_s1] sm:$0xff] }
  0xa6   :  { %v139_v58 = vadd.f32 %v131_v54, %v100_v46  ;;  %v103_v59 = vadd.f32 %v102_v55, %v4510_v19 }
  0xa7   :  { %v184_v60 = vpack.c.bf16 %v177_v57, %v176_v56 }
  0xa8   :  { %v4003_v61 = vpop.eup %4002  ;;  %v147_v62 = vmul.f32 0.7978846, %v139_v58  ;;  %v116_v63 = vmul.f32 %v103_v59, %v103_v59  ;;  %v37_v58 = vld [vmem:[%s6654_s1 + $0x8] sm:$0xff] }
  0xa9   :  { %3840 = vmatmul.msk.bf16.vlgmr.msra.gmra.mxu1 %vm191_vm2, %v184_v60  ;;  %v162_v1 = vadd.f32 1.0, %v4003_v61 }
  0xaa   :  { %v124_v0 = vmul.f32 %v116_v63, %v103_v59  ;;  %4004 = vtanh.f32 %v147_v62  ;;  %v38_v63 = vld [vmem:[%s6654_s1 + $0x10] sm:$0xff] }
  0xab   :  { %v170_v6 = vmul.f32 0.5, %v162_v1 }
  0xac   :  { %v132_v2 = vmul.f32 0.044715, %v124_v0 }
  0xad   :  { %v104_v3 = vpop.f32.mrf.mxu0  ;;  %v178_v13 = vmul.f32 %v170_v6, %v98_v37 }
  0xae   :  { %v140_v4 = vadd.f32 %v132_v2, %v103_v59  ;;  %v105_v5 = vadd.f32 %v104_v3, %v4510_v19 }
  0xb0   :  { %v4005_v7 = vpop.eup %4004  ;;  %v148_v8 = vmul.f32 0.7978846, %v140_v4  ;;  %v117_v9 = vmul.f32 %v105_v5, %v105_v5  ;;  %v39_v4 = vld [vmem:[%s6654_s1 + $0x18] sm:$0xff] }
  0xb1   :  { %v163_v10 = vadd.f32 1.0, %v4005_v7 }
  0xb2   :  { %4006 = vtanh.f32 %v148_v8  ;;  %v125_v11 = vmul.f32 %v117_v9, %v105_v5  ;;  %v40_v9 = vld [vmem:[%s6654_s1 + $0x20] sm:$0xff] }
  0xb3   :  { %v171_v12 = vmul.f32 0.5, %v163_v10 }
  0xb4   :  { %v133_v14 = vmul.f32 0.044715, %v125_v11 }
  0xb5   :  { %v107_v16 = vpop.f32.mrf.mxu0  ;;  %v179_v17 = vmul.f32 %v171_v12, %v100_v46 }
  0xb6   :  { %v141_v18 = vadd.f32 %v133_v14, %v105_v5  ;;  %v108_v20 = vadd.f32 %v107_v16, %v4510_v19  ;;  %v41_v14 = vld [vmem:[%s6654_s1 + $0x28] sm:$0xff] }
  0xb7   :  { %v185_v21 = vpack.c.bf16 %v179_v17, %v178_v13 }
  0xb8   :  { %v4007_v22 = vpop.eup %4006  ;;  %v149_v23 = vmul.f32 0.7978846, %v141_v18  ;;  %v118_v24 = vmul.f32 %v108_v20, %v108_v20 }
  0xb9   :  { %3841 = vmatmul.msk.bf16.gmra.mxu1 %vm191_vm2, %v185_v21  ;;  %v164_v26 = vadd.f32 1.0, %v4007_v22  ;;  %v42_v21 = vld [vmem:[%s6654_s1 + $0x30] sm:$0xff] }
  0xba   :  { %v126_v25 = vmul.f32 %v118_v24, %v108_v20  ;;  %4008 = vtanh.f32 %v149_v23 }
  0xbb   :  { %v172_v31 = vmul.f32 0.5, %v164_v26  ;;  %v4412_v26 = vmov 32.0  }
  0xbc   :  { %v134_v27 = vmul.f32 0.044715, %v126_v25 }
  0xbd   :  { %v109_v28 = vpop.f32.mrf.mxu0  ;;  %v180_v38 = vmul.f32 %v172_v31, %v103_v59 }
  0xbe   :  { %v142_v29 = vadd.f32 %v134_v27, %v108_v20  ;;  %v110_v30 = vadd.f32 %v109_v28, %v4510_v19 }
  0xc0   :  { %v4009_v32 = vpop.eup %4008  ;;  %v150_v33 = vmul.f32 0.7978846, %v142_v29  ;;  %v119_v34 = vmul.f32 %v110_v30, %v110_v30 }
  0xc1   :  { %v165_v35 = vadd.f32 1.0, %v4009_v32 }
  0xc2   :  { %4010 = vtanh.f32 %v150_v33  ;;  %v127_v36 = vmul.f32 %v119_v34, %v110_v30 }
  0xc3   :  { %v173_v37 = vmul.f32 0.5, %v165_v35 }
  0xc4   :  { %v135_v39 = vmul.f32 0.044715, %v127_v36 }
  0xc5   :  { %v181_v40 = vmul.f32 %v173_v37, %v105_v5 }
  0xc6   :  { %v143_v41 = vadd.f32 %v135_v39, %v110_v30 }
  0xc7   :  { %v186_v42 = vpack.c.bf16 %v181_v40, %v180_v38  ;;  %v43_v40 = vld [vmem:[%s6654_s1 + $0x38] sm:$0xff] }
  0xc8   :  { %v4011_v43 = vpop.eup %4010  ;;  %v151_v44 = vmul.f32 0.7978846, %v143_v41 }
  0xc9   :  { %3842 = vmatmul.msk.bf16.gmra.mxu1 %vm191_vm2, %v186_v42  ;;  %v166_v45 = vadd.f32 1.0, %v4011_v43 }
  0xca   :  { %4012 = vtanh.f32 %v151_v44 }
  0xcb   :  { %v174_v19 = vmul.f32 0.5, %v166_v45  ;;  %4014 = vrcp.f32 %v4412_v26 }
  0xcd   :  { %v182_v49 = vmul.f32 %v174_v19, %v108_v20 }
  0xd0   :  { %v4013_v46 = vpop.eup %4012 }
  0xd1   :  { %v167_v47 = vadd.f32 1.0, %v4013_v46  ;;  %v4015_v27 = vpop.eup %4014 }
  0xd2   :  { %v290_v28 = vmul.f32 32.0, %v4015_v27  ;;  %vm294_vm3 = vweird.f32 %v4015_v27 }
  0xd3   :  { %v175_v48 = vmul.f32 0.5, %v167_v47 }
  0xd4   :  { %v291_v29 = vsub.f32 1.0, %v290_v28 }
  0xd5   :  { %v183_v50 = vmul.f32 %v175_v48, %v110_v30 }
  0xd6   :  { %v292_v30 = vmul.f32 %v4015_v27, %v291_v29  ;;  %v4678_v29 = vld [vmem:[%s6657_s4] sm:$0xff] }
  0xd7   :  { %v187_v51 = vpack.c.bf16 %v183_v50, %v182_v49 }
  0xd8   :  { %v293_v31 = vadd.f32 %v4015_v27, %v292_v30  ;;  %v4683_v30 = vld [vmem:[%s6657_s4 + $0x10] sm:$0xff] }
  0xd9   :  { %3843 = vmatmul.msk.bf16.gmra.mxu1 %vm191_vm2, %v187_v51 }
  0xda   :  { %v4601_v32 = vsel %vm294_vm3, %v4015_v27, %v293_v31  ;;  %v470_v31 = vpack.c.bf16 %v4683_v30, %v4678_v29 }
  0xdb   :  { %6681 = vst [vmem:[#allocation12_spill] sm:$0xff] %v4601_v32 }
 0x126   :  { %v213_v54 = vpop.f32.mrf.mxu1 }
 0x127   :  { %v4534_v55 = vadd.f32 %v213_v54, %v190_v52 }
 0x129   :  { %6674 = vst [vmem:[#allocation5_spill] sm:$0xff] %v4534_v55  ;;  %v4537_v56 = vadd.f32 %v4534_v55, %v36_v53 }
 0x12b   :  { %v265_v57 = vsel %vm191_vm2, %v4537_v56, 0.0 }
 0x12c   :  { %266 = vadd.xlane.f32.xlu0 %v265_v57 }
 0x12e   :  { %v215_v59 = vpop.f32.mrf.mxu1 }
 0x12f   :  { %v4544_v60 = vadd.f32 %v215_v59, %v190_v52 }
 0x131   :  { %6675 = vst [vmem:[#allocation6_spill] sm:$0xff] %v4544_v60  ;;  %v4547_v61 = vadd.f32 %v4544_v60, %v37_v58 }
 0x133   :  { %v268_v62 = vsel %vm191_vm2, %v4547_v61, 0.0 }
 0x134   :  { %269 = vadd.xlane.f32.xlu0 %v268_v62 }
 0x136   :  { %v218_v0 = vpop.f32.mrf.mxu1 }
 0x137   :  { %v4554_v1 = vadd.f32 %v218_v0, %v190_v52 }
 0x139   :  { %6676 = vst [vmem:[#allocation7_spill] sm:$0xff] %v4554_v1  ;;  %v4557_v2 = vadd.f32 %v4554_v1, %v38_v63 }
 0x13b   :  { %v271_v3 = vsel %vm191_vm2, %v4557_v2, 0.0 }
 0x13c   :  { %272 = vadd.xlane.f32.xlu1 %v271_v3 }
 0x13e   :  { %v220_v5 = vpop.f32.mrf.mxu1 }
 0x13f   :  { %v4564_v6 = vadd.f32 %v220_v5, %v190_v52 }
 0x141   :  { %6677 = vst [vmem:[#allocation8_spill] sm:$0xff] %v4564_v6  ;;  %v4567_v7 = vadd.f32 %v4564_v6, %v39_v4 }
 0x143   :  { %v274_v8 = vsel %vm191_vm2, %v4567_v7, 0.0 }
 0x144   :  { %275 = vadd.xlane.f32.xlu1 %v274_v8 }
 0x146   :  { %v223_v10 = vpop.f32.mrf.mxu1 }
 0x147   :  { %v4574_v11 = vadd.f32 %v223_v10, %v190_v52 }
 0x149   :  { %6678 = vst [vmem:[#allocation9_spill] sm:$0xff] %v4574_v11  ;;  %v4577_v12 = vadd.f32 %v4574_v11, %v40_v9 }
 0x14b   :  { %v277_v13 = vsel %vm191_vm2, %v4577_v12, 0.0 }
 0x14c   :  { %278 = vadd.xlane.f32.xlu2 %v277_v13 }
 0x14e   :  { %v225_v16 = vpop.f32.mrf.mxu1 }
 0x14f   :  { %v4584_v17 = vadd.f32 %v225_v16, %v190_v52 }
 0x151   :  { %6679 = vst [vmem:[#allocation10_spill] sm:$0xff] %v4584_v17  ;;  %v4587_v18 = vadd.f32 %v4584_v17, %v41_v14 }
 0x153   :  { %v280_v20 = vsel %vm191_vm2, %v4587_v18, 0.0 }
 0x154   :  { %281 = vadd.xlane.f32.xlu2 %v280_v20 }
 0x156   :  { %v228_v22 = vpop.f32.mrf.mxu1 }
 0x157   :  { %v4594_v23 = vadd.f32 %v228_v22, %v190_v52  ;;  %v4665_v22 = vld [vmem:[%s6657_s4 + $0x20] sm:$0xff] }
 0x159   :  { %6680 = vst [vmem:[#allocation11_spill] sm:$0xff] %v4594_v23  ;;  %v4597_v24 = vadd.f32 %v4594_v23, %v42_v21 }
 0x15b   :  { %v283_v25 = vsel %vm191_vm2, %v4597_v24, 0.0 }
 0x15c   :  { %284 = vadd.xlane.f32.xlu2 %v283_v25  ;;  %v4670_v25 = vld [vmem:[%s6657_s4 + $0x30] sm:$0xff] }
 0x15d   :  { %v471_v26 = vpack.c.bf16 %v4670_v25, %v4665_v22 }
 0x15e   :  { %v230_v36 = vpop.f32.mrf.mxu1 }
 0x15f   :  { %v4609_v38 = vadd.f32 %v230_v36, %v190_v52  ;;  %491 = vmatpush.bf16.msra.mxu2 %v471_v26 }
 0x161   :  { %6682 = vst [vmem:[#allocation13_spill] sm:$0xff] %v4609_v38  ;;  %v4617_v43 = vadd.f32 %v4609_v38, %v43_v40 }
 0x163   :  { %6683 = vst [vmem:[#allocation14_spill] sm:$0xff] %v4617_v43  ;;  %v286_v19 = vsel %vm191_vm2, %v4617_v43, 0.0  ;;  %492 = vmatpush.bf16.msra.mxu2 %v470_v31 }
 0x19f   :  { %v267_v33 = vpop.xlane.xlu0 %266 }
 0x1a0   :  { %v296_v34 = vmul.f32 %v4601_v32, %v267_v33 }
 0x1a2   :  { %v4605_v35 = vsub.f32 %v4537_v56, %v296_v34 }
 0x1a4   :  { %v312_v37 = vmul.f32 %v4605_v35, %v4605_v35 }
 0x1a6   :  { %v320_v39 = vsel %vm191_vm2, %v312_v37, 0.0 }
 0x1a7   :  { %321 = vadd.xlane.f32.xlu0 %v320_v39  ;;  %v270_v41 = vpop.xlane.xlu0 %269 }
 0x1a8   :  { %v297_v42 = vmul.f32 %v4601_v32, %v270_v41 }
 0x1aa   :  { %v4620_v44 = vsub.f32 %v4547_v61, %v297_v42 }
 0x1ac   :  { %v313_v45 = vmul.f32 %v4620_v44, %v4620_v44 }
 0x1ae   :  { %v323_v46 = vsel %vm191_vm2, %v313_v45, 0.0 }
 0x1af   :  { %v273_v47 = vpop.xlane.xlu1 %272  ;;  %287 = vadd.xlane.f32.xlu0 %v286_v19  ;;  %324 = vadd.xlane.f32.xlu1 %v323_v46 }
 0x1b0   :  { %v298_v48 = vmul.f32 %v4601_v32, %v273_v47 }
 0x1b2   :  { %v4629_v49 = vsub.f32 %v4557_v2, %v298_v48 }
 0x1b4   :  { %v314_v50 = vmul.f32 %v4629_v49, %v4629_v49 }
 0x1b6   :  { %v326_v51 = vsel %vm191_vm2, %v314_v50, 0.0 }
 0x1b7   :  { %v276_v52 = vpop.xlane.xlu1 %275  ;;  %327 = vadd.xlane.f32.xlu1 %v326_v51 }
 0x1b8   :  { %v299_v53 = vmul.f32 %v4601_v32, %v276_v52 }
 0x1ba   :  { %v4636_v54 = vsub.f32 %v4567_v7, %v299_v53 }
 0x1bc   :  { %v315_v57 = vmul.f32 %v4636_v54, %v4636_v54 }
 0x1be   :  { %v329_v58 = vsel %vm191_vm2, %v315_v57, 0.0 }
 0x1bf   :  { %v279_v59 = vpop.xlane.xlu2 %278  ;;  %330 = vadd.xlane.f32.xlu2 %v329_v58 }
 0x1c0   :  { %v300_v62 = vmul.f32 %v4601_v32, %v279_v59 }
 0x1c2   :  { %v4643_v63 = vsub.f32 %v4577_v12, %v300_v62 }
 0x1c4   :  { %v316_v0 = vmul.f32 %v4643_v63, %v4643_v63 }
 0x1c6   :  { %v332_v3 = vsel %vm191_vm2, %v316_v0, 0.0 }
 0x1c7   :  { %v282_v4 = vpop.xlane.xlu2 %281  ;;  %333 = vadd.xlane.f32.xlu0 %v332_v3 }
 0x1c8   :  { %v301_v5 = vmul.f32 %v4601_v32, %v282_v4 }
 0x1ca   :  { %v4650_v8 = vsub.f32 %v4587_v18, %v301_v5 }
 0x1cc   :  { %v317_v9 = vmul.f32 %v4650_v8, %v4650_v8 }
 0x1ce   :  { %v335_v10 = vsel %vm191_vm2, %v317_v9, 0.0 }
 0x1cf   :  { %v285_v13 = vpop.xlane.xlu2 %284  ;;  %336 = vadd.xlane.f32.xlu1 %v335_v10 }
 0x1d0   :  { %v302_v14 = vmul.f32 %v4601_v32, %v285_v13 }
 0x1d2   :  { %v4657_v16 = vsub.f32 %v4597_v24, %v302_v14 }
 0x1d4   :  { %v318_v20 = vmul.f32 %v4657_v16, %v4657_v16 }
 0x1d6   :  { %v338_v21 = vsel %vm191_vm2, %v318_v20, 0.0  ;;  %v4699_v20 = vperm.slane %v4501_v15, 2 }
 0x1d7   :  { %339 = vadd.xlane.f32.xlu2 %v338_v21 }
 0x21a   :  { %v322_v27 = vpop.xlane.xlu0 %321 }
 0x21b   :  { %v344_v28 = vmul.f32 %v322_v27, %v4601_v32 }
 0x21d   :  { %v352_v33 = vadd.f32 1e-05, %v344_v28 }
 0x21f   :  { %4016 = vrsqrt.f32 %v352_v33  ;;  %vm366_vm5 = vweird.f32 %v352_v33 }
 0x222   :  { %v325_v34 = vpop.xlane.xlu1 %324  ;;  %v288_v36 = vpop.xlane.xlu0 %287 }
 0x223   :  { %v345_v37 = vmul.f32 %v325_v34, %v4601_v32  ;;  %v303_v39 = vmul.f32 %v4601_v32, %v288_v36  ;;  %v4704_v34 = vperm.slane %v4501_v15, 3 }
 0x225   :  { %v4017_v40 = vpop.eup %4016  ;;  %v353_v41 = vadd.f32 1e-05, %v345_v37  ;;  %v4690_v42 = vsub.f32 %v4617_v43, %v303_v39 }
 0x226   :  { %v361_v45 = vmul.f32 %v4017_v40, %v352_v33  ;;  %vm367_vm4 = vweird.f32 %v4017_v40 }
 0x227   :  { %4018 = vrsqrt.f32 %v353_v41  ;;  %v319_v19 = vmul.f32 %v4690_v42, %v4690_v42  ;;  %vm368_vm6 = vmor %vm366_vm5, %vm367_vm4  ;;  %vm376_vm8 = vweird.f32 %v353_v41 }
 0x228   :  { %v362_v46 = vmul.f32 %v4017_v40, %v361_v45 }
 0x229   :  { %v341_v47 = vsel %vm191_vm2, %v319_v19, 0.0 }
 0x22a   :  { %v363_v48 = vmul.f32 0.5, %v362_v46  ;;  %v328_v50 = vpop.xlane.xlu1 %327  ;;  %342 = vadd.xlane.f32.xlu0 %v341_v47 }
 0x22b   :  { %v346_v51 = vmul.f32 %v328_v50, %v4601_v32 }
 0x22c   :  { %v364_v52 = vsub.f32 1.5, %v363_v48 }
 0x22d   :  { %v4019_v53 = vpop.eup %4018  ;;  %v354_v57 = vadd.f32 1e-05, %v346_v51 }
 0x22e   :  { %v365_v58 = vmul.f32 %v4017_v40, %v364_v52  ;;  %v371_v59 = vmul.f32 %v4019_v53, %v353_v41  ;;  %vm377_vm7 = vweird.f32 %v4019_v53 }
 0x22f   :  { %4020 = vrsqrt.f32 %v354_v57  ;;  %vm378_vm9 = vmor %vm376_vm8, %vm377_vm7  ;;  %vm386_vm11 = vweird.f32 %v354_v57 }
 0x230   :  { %v372_v62 = vmul.f32 %v4019_v53, %v371_v59  ;;  %v369_v0 = vsel %vm368_vm6, %v4017_v40, %v365_v58 }
 0x231   :  { %v440_v14 = vmul.f32 %v369_v0, %v4605_v35 }
 0x232   :  { %v373_v3 = vmul.f32 0.5, %v372_v62  ;;  %v331_v4 = vpop.xlane.xlu2 %330 }
 0x233   :  { %v347_v5 = vmul.f32 %v331_v4, %v4601_v32  ;;  %v449_v33 = vmul.f32 %v4699_v20, %v440_v14 }
 0x234   :  { %v374_v9 = vsub.f32 1.5, %v373_v3 }
 0x235   :  { %v4021_v10 = vpop.eup %4020  ;;  %v355_v13 = vadd.f32 1e-05, %v347_v5  ;;  %v458_v19 = vadd.f32 %v4704_v34, %v449_v33 }
 0x236   :  { %v375_v21 = vmul.f32 %v4019_v53, %v374_v9  ;;  %v381_v26 = vmul.f32 %v4021_v10, %v354_v57  ;;  %vm387_vm10 = vweird.f32 %v4021_v10 }
 0x237   :  { %4022 = vrsqrt.f32 %v355_v13  ;;  %vm388_vm12 = vmor %vm386_vm11, %vm387_vm10  ;;  %vm396_vm14 = vweird.f32 %v355_v13 }
 0x238   :  { %v379_v27 = vsel %vm378_vm9, %v4019_v53, %v375_v21  ;;  %v382_v28 = vmul.f32 %v4021_v10, %v381_v26 }
 0x239   :  { %v441_v31 = vmul.f32 %v379_v27, %v4620_v44 }
 0x23a   :  { %v383_v36 = vmul.f32 0.5, %v382_v28  ;;  %v334_v37 = vpop.xlane.xlu0 %333 }
 0x23b   :  { %v348_v35 = vmul.f32 %v334_v37, %v4601_v32  ;;  %v450_v39 = vmul.f32 %v4699_v20, %v441_v31 }
 0x23c   :  { %v384_v40 = vsub.f32 1.5, %v383_v36 }
 0x23d   :  { %v4023_v41 = vpop.eup %4022  ;;  %v356_v45 = vadd.f32 1e-05, %v348_v35  ;;  %v459_v46 = vadd.f32 %v4704_v34, %v450_v39 }
 0x23e   :  { %v385_v47 = vmul.f32 %v4021_v10, %v384_v40  ;;  %v391_v44 = vmul.f32 %v4023_v41, %v355_v13  ;;  %vm397_vm13 = vweird.f32 %v4023_v41 }
 0x23f   :  { %4024 = vrsqrt.f32 %v356_v45  ;;  %v466_v48 = vpack.c.bf16 %v459_v46, %v458_v19  ;;  %vm398_vm15 = vmor %vm396_vm14, %vm397_vm13  ;;  %vm406_vm4 = vweird.f32 %v356_v45 }
 0x240   :  { %v392_v50 = vmul.f32 %v4023_v41, %v391_v44  ;;  %v389_v51 = vsel %vm388_vm12, %v4021_v10, %v385_v47 }
 0x241   :  { %3844 = vmatmul.msk.bf16.vlgmr.msra.gmra.mxu2 %vm191_vm2, %v466_v48  ;;  %v442_v3 = vmul.f32 %v389_v51, %v4629_v49 }
 0x242   :  { %v393_v52 = vmul.f32 0.5, %v392_v50  ;;  %v337_v53 = vpop.xlane.xlu1 %336 }
 0x243   :  { %v349_v58 = vmul.f32 %v337_v53, %v4601_v32  ;;  %v451_v10 = vmul.f32 %v4699_v20, %v442_v3 }
 0x244   :  { %v394_v59 = vsub.f32 1.5, %v393_v52 }
 0x245   :  { %v4025_v62 = vpop.eup %4024  ;;  %v357_v0 = vadd.f32 1e-05, %v349_v58  ;;  %v460_v31 = vadd.f32 %v4704_v34, %v451_v10 }
 0x246   :  { %v395_v4 = vmul.f32 %v4023_v41, %v394_v59  ;;  %v401_v5 = vmul.f32 %v4025_v62, %v356_v45  ;;  %vm407_vm3 = vweird.f32 %v4025_v62 }
 0x247   :  { %4026 = vrsqrt.f32 %v357_v0  ;;  %vm408_vm5 = vmor %vm406_vm4, %vm407_vm3  ;;  %vm416_vm7 = vweird.f32 %v357_v0 }
 0x248   :  { %v399_v57 = vsel %vm398_vm15, %v4023_v41, %v395_v4  ;;  %v402_v9 = vmul.f32 %v4025_v62, %v401_v5  ;;  %vm595_vm15 = vcmask 523264  }
 0x249   :  { %v443_v14 = vmul.f32 %v399_v57, %v4636_v54 }
 0x24a   :  { %v403_v21 = vmul.f32 0.5, %v402_v9  ;;  %v340_v51 = vpop.xlane.xlu2 %339 }
 0x24b   :  { %v452_v26 = vmul.f32 %v4699_v20, %v443_v14 }
 0x24c   :  { %v404_v27 = vsub.f32 1.5, %v403_v21 }
 0x24d   :  { %v4027_v28 = vpop.eup %4026  ;;  %v461_v49 = vadd.f32 %v4704_v34, %v452_v26 }
 0x24e   :  { %v405_v33 = vmul.f32 %v4025_v62, %v404_v27  ;;  %v411_v13 = vmul.f32 %v4027_v28, %v357_v0  ;;  %vm417_vm6 = vweird.f32 %v4027_v28 }
 0x24f   :  { %v467_v36 = vpack.c.bf16 %v461_v49, %v460_v31  ;;  %vm418_vm8 = vmor %vm416_vm7, %vm417_vm6 }
 0x250   :  { %v412_v37 = vmul.f32 %v4027_v28, %v411_v13  ;;  %v409_v54 = vsel %vm408_vm5, %v4025_v62, %v405_v33 }
 0x251   :  { %3845 = vmatmul.msk.bf16.gmra.mxu2 %vm191_vm2, %v467_v36  ;;  %v444_v40 = vmul.f32 %v409_v54, %v4643_v63  ;;  %v350_v63 = vmul.f32 %v340_v51, %v4601_v32 }
 0x252   :  { %v413_v35 = vmul.f32 0.5, %v412_v37 }
 0x253   :  { %v453_v47 = vmul.f32 %v4699_v20, %v444_v40  ;;  %v358_v52 = vadd.f32 1e-05, %v350_v63 }
 0x254   :  { %v414_v39 = vsub.f32 1.5, %v413_v35 }
 0x255   :  { %v462_v44 = vadd.f32 %v4704_v34, %v453_v47  ;;  %4028 = vrsqrt.f32 %v358_v52  ;;  %vm426_vm10 = vweird.f32 %v358_v52 }
 0x256   :  { %v415_v41 = vmul.f32 %v4027_v28, %v414_v39 }
 0x258   :  { %v419_v19 = vsel %vm418_vm8, %v4027_v28, %v415_v41 }
 0x259   :  { %v445_v46 = vmul.f32 %v419_v19, %v4650_v8 }
 0x25b   :  { %v454_v45 = vmul.f32 %v4699_v20, %v445_v46  ;;  %v4029_v53 = vpop.eup %4028 }
 0x25c   :  { %v421_v58 = vmul.f32 %v4029_v53, %v358_v52  ;;  %vm427_vm9 = vweird.f32 %v4029_v53 }
 0x25d   :  { %v463_v48 = vadd.f32 %v4704_v34, %v454_v45  ;;  %vm428_vm11 = vmor %vm426_vm10, %vm427_vm9 }
 0x25e   :  { %v422_v59 = vmul.f32 %v4029_v53, %v421_v58 }
 0x25f   :  { %v468_v50 = vpack.c.bf16 %v463_v48, %v462_v44 }
 0x260   :  { %v423_v3 = vmul.f32 0.5, %v422_v59 }
 0x261   :  { %3846 = vmatmul.msk.bf16.gmra.mxu2 %vm191_vm2, %v468_v50 }
 0x262   :  { %v424_v4 = vsub.f32 1.5, %v423_v3  ;;  %v909_v3 = vpack.c.bf16 %v4683_v30, %v4683_v30  ;;  %v684_v30 = vpack.c.bf16 %v4678_v29, %v4678_v29 }
 0x264   :  { %v425_v57 = vmul.f32 %v4029_v53, %v424_v4 }
 0x266   :  { %v429_v10 = vsel %vm428_vm11, %v4029_v53, %v425_v57 }
 0x267   :  { %v446_v27 = vmul.f32 %v429_v10, %v4657_v16  ;;  %v472_v16 = vperm.slane %v4501_v15, 4 }
 0x269   :  { %v455_v33 = vmul.f32 %v4699_v20, %v446_v27 }
 0x26b   :  { %v464_v36 = vadd.f32 %v4704_v34, %v455_v33 }
 0x29d   :  { %v343_v8 = vpop.xlane.xlu0 %342 }
 0x29e   :  { %v351_v62 = vmul.f32 %v343_v8, %v4601_v32 }
 0x2a0   :  { %v359_v0 = vadd.f32 1e-05, %v351_v62 }
 0x2a2   :  { %4030 = vrsqrt.f32 %v359_v0  ;;  %vm436_vm13 = vweird.f32 %v359_v0 }
 0x2a8   :  { %v4031_v5 = vpop.eup %4030 }
 0x2a9   :  { %v431_v9 = vmul.f32 %v4031_v5, %v359_v0  ;;  %vm437_vm12 = vweird.f32 %v4031_v5 }
 0x2aa   :  { %vm438_vm14 = vmor %vm436_vm13, %vm437_vm12 }
 0x2ab   :  { %v432_v14 = vmul.f32 %v4031_v5, %v431_v9 }
 0x2ad   :  { %v433_v21 = vmul.f32 0.5, %v432_v14 }
 0x2af   :  { %v434_v26 = vsub.f32 1.5, %v433_v21 }
 0x2b1   :  { %v435_v28 = vmul.f32 %v4031_v5, %v434_v26 }
 0x2b3   :  { %v439_v31 = vsel %vm438_vm14, %v4031_v5, %v435_v28 }
 0x2b4   :  { %v447_v49 = vmul.f32 %v439_v31, %v4690_v42 }
 0x2b6   :  { %v456_v13 = vmul.f32 %v4699_v20, %v447_v49 }
 0x2b8   :  { %v465_v37 = vadd.f32 %v4704_v34, %v456_v13 }
 0x2ba   :  { %v469_v54 = vpack.c.bf16 %v465_v37, %v464_v36 }
 0x2bc   :  { %3847 = vmatmul.msk.bf16.gmra.mxu2 %vm191_vm2, %v469_v54 }
 0x2c4   :  { %v494_v35 = vpop.f32.mrf.mxu2 }
 0x2c5   :  { %v495_v39 = vadd.f32 %v494_v35, %v472_v16 }
 0x2c7   :  { %v514_v19 = vmul.f32 0.35355338, %v495_v39 }
 0x2cc   :  { %v496_v40 = vpop.f32.mrf.mxu2 }
 0x2cd   :  { %v497_v41 = vadd.f32 %v496_v40, %v472_v16 }
 0x2cf   :  { %v515_v46 = vmul.f32 0.35355338, %v497_v41  ;;  %v4744_v63 = vpack.c.bf16 %v497_v41, %v495_v39 }
 0x2d1   :  { %v4736_v42 = vpack.c.bf16 %v515_v46, %v514_v19 }
 0x2d4   :  { %v499_v47 = vpop.f32.mrf.mxu2 }
 0x2d5   :  { %v500_v45 = vadd.f32 %v499_v47, %v472_v16 }
 0x2d7   :  { %v516_v48 = vmul.f32 0.35355338, %v500_v45 }
 0x2dc   :  { %v501_v20 = vpop.f32.mrf.mxu2 }
 0x2dd   :  { %v502_v44 = vadd.f32 %v501_v20, %v472_v16 }
 0x2df   :  { %v517_v50 = vmul.f32 0.35355338, %v502_v44  ;;  %v4738_v34 = vpack.c.bf16 %v502_v44, %v500_v45 }
 0x2e1   :  { %v4740_v51 = vpack.c.bf16 %v517_v50, %v516_v48  ;;  %536 = vrot.lane.b32.xlu0 %v4738_v34, %s4413_s26 }
 0x2e4   :  { %v504_v15 = vpop.f32.mrf.mxu2 }
 0x2e5   :  { %v505_v52 = vadd.f32 %v504_v15, %v472_v16 }
 0x2e7   :  { %v518_v59 = vmul.f32 0.35355338, %v505_v52 }
 0x2e9   :  { %685 = vrot.lane.b32.xlu0 %v4744_v63, %s4414_s27 }
 0x2ec   :  { %v506_v53 = vpop.f32.mrf.mxu2 }
 0x2ed   :  { %v507_v58 = vadd.f32 %v506_v53, %v472_v16 }
 0x2ef   :  { %v519_v8 = vmul.f32 0.35355338, %v507_v58  ;;  %v4748_v62 = vpack.c.bf16 %v507_v58, %v505_v52 }
 0x2f1   :  { %v4750_v0 = vpack.c.bf16 %v519_v8, %v518_v59  ;;  %538 = vrot.lane.b32.xlu2 %v4748_v62, %s4413_s26 }
 0x2f9   :  { %534 = vrot.lane.b32.xlu2 %v4744_v63, %s4413_s26 }
 0x301   :  { %687 = vrot.lane.b32.xlu2 %v4738_v34, %s4414_s27 }
 0x309   :  { %762 = vrot.lane.b32.xlu2 %v4738_v34, %s4415_s3 }
 0x311   :  { %1065 = vrot.lane.b32.xlu2 %v4738_v34, %s4416_s28 }
 0x319   :  { %919 = vrot.lane.b32.xlu2 %v909_v3, %s4417_s29 }
 0x33f   :  { %v509_v4 = vpop.f32.mrf.mxu2 }
 0x340   :  { %v510_v57 = vadd.f32 %v509_v4, %v472_v16 }
 0x342   :  { %v520_v21 = vmul.f32 0.35355338, %v510_v57 }
 0x347   :  { %v511_v5 = vpop.f32.mrf.mxu2 }
 0x348   :  { %v512_v9 = vadd.f32 %v511_v5, %v472_v16 }
 0x34a   :  { %v4765_v14 = vpack.c.bf16 %v512_v9, %v510_v57  ;;  %v521_v10 = vmul.f32 0.35355338, %v512_v9 }
 0x34b   :  { %v539_v29 = vpop.permute.xlu2 %538 }
 0x34c   :  { %1069 = vrot.lane.b32.xlu2 %v4765_v14, %s4416_s28  ;;  %691 = vrot.lane.b32.xlu0 %v4765_v14, %s4414_s27  ;;  %v4780_v26 = vpack.c.bf16 %v521_v10, %v520_v21  ;;  %v561_v16 = vsel %vm66_vm1, %v539_v29, 0  ;;  %v4835_v21 = vld [vmem:[%s6655_s2] sm:$0xff] }
 0x34d   :  { %540 = vrot.lane.b32.xlu1 %v4765_v14, %s4413_s26 }
 0x353   :  { %v535_v27 = vpop.permute.xlu2 %534  ;;  %v537_v28 = vpop.permute.xlu0 %536 }
 0x354   :  { %1339 = vrot.lane.b32.xlu2 %v4765_v14, %s4418_s30  ;;  %752 = vrot.lane.b32.xlu0 %v4736_v42, %s4419_s8  ;;  %v558_v19 = vsel %vm66_vm1, %v537_v28, 0  ;;  %v555_v50 = vsel %vm66_vm1, %v535_v27, 0 }
 0x355   :  { %694 = vrot.lane.b32.xlu1 %v684_v30, %s4417_s29 }
 0x35b   :  { %v688_v31 = vpop.permute.xlu2 %687  ;;  %v686_v49 = vpop.permute.xlu0 %685 }
 0x35c   :  { %756 = vrot.lane.b32.xlu0 %v4750_v0, %s4419_s8  ;;  %758 = vrot.lane.b32.xlu2 %v4780_v26, %s4419_s8 }
 0x35d   :  { %689 = vrot.lane.b32.xlu1 %v4748_v62, %s4414_s27 }
 0x363   :  { %v763_v13 = vpop.permute.xlu2 %762 }
 0x364   :  { %766 = vrot.lane.b32.xlu0 %v4765_v14, %s4415_s3  ;;  %v784_v58 = vsel %vm66_vm1, %v763_v13, 0 }
 0x365   :  { %764 = vrot.lane.b32.xlu1 %v4748_v62, %s4415_s3 }
 0x36b   :  { %v1066_v39 = vpop.permute.xlu2 %1065 }
 0x36c   :  { %v1087_v9 = vsel %vm66_vm1, %v1066_v39, 0 }
 0x36d   :  { %760 = vrot.lane.b32.xlu1 %v4744_v63, %s4415_s3 }
 0x373   :  { %v920_v46 = vpop.permute.xlu2 %919 }
 0x374   :  { %v934_v47 = vsel %vm79_vm0, %v920_v46, 0  ;;  %v4872_v46 = vld [vmem:[%s6655_s2 + $0x20] sm:$0xff] }
 0x375   :  { %754 = vrot.lane.b32.xlu1 %v4740_v51, %s4419_s8  ;;  %943 = vmatpush.bf16.msrb.mxu2 %v934_v47 }
 0x37d   :  { %1067 = vrot.lane.b32.xlu1 %v4748_v62, %s4416_s28 }
 0x385   :  { %910 = vrot.lane.b32.xlu1 %v4744_v63, %s4420_s9 }
 0x3a6   :  { %v1070_v59 = vpop.permute.xlu2 %1069 }
 0x3a7   :  { %v1093_v4 = vsel %vm66_vm1, %v1070_v59, 0 }
 0x3ae   :  { %v4828_v30 = vpop.permute.xlu2 %1339 }
 0x3b6   :  { %v759_v10 = vpop.permute.xlu2 %758 }
 0x3be   :  { %v692_v33 = vpop.permute.xlu0 %691 }
 0x3bf   :  { %v541_v36 = vpop.permute.xlu1 %540 }
 0x3c0   :  { %v564_v37 = vsel %vm66_vm1, %v541_v36, 0 }
 0x3c1   :  { %570 = vmatpush.bf16.xpose.msrb.mxu0 %v564_v37  ;;  %3980 = vmatpush.bf16.xpose.msra.mxu3 %v564_v37 }
 0x3c6   :  { %v753_v54 = vpop.permute.xlu0 %752 }
 0x3c7   :  { %v695_v35 = vpop.permute.xlu1 %694 }
 0x3c8   :  { %v709_v20 = vsel %vm79_vm0, %v695_v35, 0 }
 0x3c9   :  { %571 = vmatpush.bf16.xpose.msrb.mxu0 %v561_v16  ;;  %3981 = vmatpush.bf16.xpose.msra.mxu3 %v561_v16  ;;  %v4862_v16 = vld [vmem:[%s6655_s2 + $0x18] sm:$0xff] }
 0x3ce   :  { %v757_v40 = vpop.permute.xlu0 %756 }
 0x3cf   :  { %v690_v41 = vpop.permute.xlu1 %689 }
 0x3d1   :  { %572 = vmatpush.bf16.xpose.msrb.mxu0 %v558_v19  ;;  %3982 = vmatpush.bf16.xpose.msra.mxu3 %v558_v19 }
 0x3d6   :  { %v767_v45 = vpop.permute.xlu0 %766 }
 0x3d7   :  { %v765_v44 = vpop.permute.xlu1 %764  ;;  %v790_v48 = vsel %vm66_vm1, %v767_v45, 0 }
 0x3d8   :  { %796 = vmatpush.bf16.xpose.msrb.mxu1 %v790_v48  ;;  %v787_v52 = vsel %vm66_vm1, %v765_v44, 0  ;;  %v4882_v48 = vld [vmem:[%s6655_s2 + $0x28] sm:$0xff] }
 0x3d9   :  { %573 = vmatpush.bf16.xpose.msrb.mxu0 %v555_v50  ;;  %3983 = vmatpush.bf16.xpose.msra.mxu3 %v555_v50 }
 0x3df   :  { %v761_v15 = vpop.permute.xlu1 %760 }
 0x3e0   :  { %3848 = vmatmul.msk.bf16.vlgmr.msrb.gmra.mxu0 %vm66_vm1, %v4736_v42  ;;  %3849 = vmatmul.msk.bf16.vlgmr.msra.gmra.mxu3 %vm66_vm1, %v4740_v51  ;;  %v781_v3 = vsel %vm66_vm1, %v761_v15, 0 }
 0x3e1   :  { %718 = vmatpush.bf16.msra.mxu0 %v709_v20  ;;  %797 = vmatpush.bf16.xpose.msrb.mxu1 %v787_v52 }
 0x3e7   :  { %v755_v53 = vpop.permute.xlu1 %754 }
 0x3e9   :  { %798 = vmatpush.bf16.xpose.msrb.mxu1 %v784_v58  ;;  %v4892_v58 = vld [vmem:[%s6655_s2 + $0x30] sm:$0xff] }
 0x3ef   :  { %v1068_v8 = vpop.permute.xlu1 %1067 }
 0x3f0   :  { %3850 = vmatmul.msk.bf16.gmra.mxu3 %vm66_vm1, %v4750_v0  ;;  %3852 = vmatmul.msk.bf16.vlgmr.msra.gmra.mxu0 %vm66_vm1, %v686_v49  ;;  %v1090_v57 = vsel %vm66_vm1, %v1068_v8, 0 }
 0x3f1   :  { %799 = vmatpush.bf16.xpose.msrb.mxu1 %v781_v3 }
 0x3f7   :  { %v911_v5 = vpop.permute.xlu1 %910 }
 0x3f8   :  { %3856 = vmatmul.msk.bf16.vlgmr.msrb.gmra.mxu1 %vm66_vm1, %v753_v54  ;;  %3860 = vmatmul.msk.bf16.vlgmr.msrb.gmra.mxu2 %vm66_vm1, %v911_v5  ;;  %v4902_v5 = vld [vmem:[%s6655_s2 + $0x38] sm:$0xff] }
 0x3f9   :  { %1099 = vmatpush.bf16.xpose.msra.mxu1 %v1093_v4 }
 0x400   :  { %3851 = vmatmul.msk.bf16.gmra.mxu3 %vm66_vm1, %v4780_v26  ;;  %3853 = vmatmul.msk.bf16.gmra.mxu0 %vm66_vm1, %v688_v31  ;;  %v4845_v31 = vld [vmem:[%s6655_s2 + $0x10] sm:$0xff] }
 0x401   :  { %1100 = vmatpush.bf16.xpose.msra.mxu1 %v1090_v57 }
 0x408   :  { %3857 = vmatmul.msk.bf16.gmra.mxu1 %vm66_vm1, %v755_v53 }
 0x409   :  { %1101 = vmatpush.bf16.xpose.msra.mxu1 %v1087_v9 }
 0x410   :  { %3854 = vmatmul.msk.bf16.gmra.mxu0 %vm66_vm1, %v690_v41 }
 0x418   :  { %3858 = vmatmul.msk.bf16.gmra.mxu1 %vm66_vm1, %v757_v40 }
 0x420   :  { %3855 = vmatmul.msk.bf16.gmra.mxu0 %vm66_vm1, %v692_v33  ;;  %v4850_v33 = vld [vmem:[%s6655_s2 + $0x8] sm:$0xff] }
 0x428   :  { %3859 = vmatmul.msk.bf16.gmra.mxu1 %vm66_vm1, %v759_v10 }
 0x45d   :  { %v575_v29 = vpop.f32.mrf.mxu0 }
 0x45e   :  { %v4838_v27 = vadd.f32 %v575_v29, %v4835_v21 }
 0x460   :  { %v596_v28 = vsel %vm595_vm15, %v4838_v27, -inf }
 0x461   :  { %597 = vmax.xlane.f32.xlu2 %v596_v28 }
 0x463   :  { %v580_v49 = vpop.f32.mrf.mxu3 }
 0x464   :  { %v581_v13 = vadd.f32 %v580_v49, %v4845_v31 }
 0x465   :  { %v577_v36 = vpop.f32.mrf.mxu0 }
 0x466   :  { %v4854_v37 = vadd.f32 %v577_v36, %v4850_v33  ;;  %v602_v54 = vsel %vm595_vm15, %v581_v13, -inf }
 0x467   :  { %603 = vmax.xlane.f32.xlu0 %v602_v54 }
 0x468   :  { %v599_v35 = vsel %vm595_vm15, %v4854_v37, -inf }
 0x469   :  { %600 = vmax.xlane.f32.xlu1 %v599_v35 }
 0x46b   :  { %v582_v39 = vpop.f32.mrf.mxu3 }
 0x46c   :  { %v4865_v40 = vadd.f32 %v582_v39, %v4862_v16 }
 0x46d   :  { %v720_v41 = vpop.f32.mrf.mxu0 }
 0x46e   :  { %v605_v19 = vsel %vm595_vm15, %v4865_v40, -inf }
 0x46f   :  { %606 = vmax.xlane.f32.xlu2 %v605_v19 }
 0x473   :  { %v585_v47 = vpop.f32.mrf.mxu3 }
 0x474   :  { %v4875_v45 = vadd.f32 %v585_v47, %v4872_v46  ;;  %v1363_v47 = vsel %vm66_vm1, %v4828_v30, 0 }
 0x475   :  { %v722_v20 = vpop.f32.mrf.mxu0 }
 0x476   :  { %v608_v44 = vsel %vm595_vm15, %v4875_v45, -inf  ;;  %v744_v19 = vpack.c.bf16 %v722_v20, %v720_v41 }
 0x477   :  { %609 = vmax.xlane.f32.xlu0 %v608_v44 }
 0x47b   :  { %v587_v50 = vpop.f32.mrf.mxu3 }
 0x47c   :  { %v4885_v15 = vadd.f32 %v587_v50, %v4882_v48 }
 0x47d   :  { %v725_v52 = vpop.f32.mrf.mxu0 }
 0x47e   :  { %v611_v53 = vsel %vm595_vm15, %v4885_v15, -inf }
 0x47f   :  { %612 = vmax.xlane.f32.xlu0 %v611_v53 }
 0x483   :  { %v590_v59 = vpop.f32.mrf.mxu3 }
 0x484   :  { %v4895_v8 = vadd.f32 %v590_v59, %v4892_v58 }
 0x485   :  { %v727_v3 = vpop.f32.mrf.mxu0 }
 0x486   :  { %v614_v4 = vsel %vm595_vm15, %v4895_v8, -inf  ;;  %v745_v39 = vpack.c.bf16 %v727_v3, %v725_v52 }
 0x487   :  { %615 = vmax.xlane.f32.xlu2 %v614_v4 }
 0x48b   :  { %v592_v57 = vpop.f32.mrf.mxu3 }
 0x48c   :  { %v4905_v9 = vadd.f32 %v592_v57, %v4902_v5 }
 0x48d   :  { %v730_v10 = vpop.f32.mrf.mxu0 }
 0x48e   :  { %v617_v29 = vsel %vm595_vm15, %v4905_v9, -inf }
 0x48f   :  { %618 = vmax.xlane.f32.xlu1 %v617_v29 }
 0x495   :  { %v732_v28 = vpop.f32.mrf.mxu0 }
 0x496   :  { %v746_v35 = vpack.c.bf16 %v732_v28, %v730_v10 }
 0x49d   :  { %v735_v49 = vpop.f32.mrf.mxu0 }
 0x4a5   :  { %v737_v36 = vpop.f32.mrf.mxu0 }
 0x4a6   :  { %v747_v54 = vpack.c.bf16 %v737_v36, %v735_v49 }
 0x4a8   :  { %1337 = vrot.lane.b32.xlu1 %v4748_v62, %s4418_s30  ;;  %1030 = vmatpush.bf16.msrb.mxu0 %v747_v54 }
 0x4ac   :  { %1031 = vmatpush.bf16.msrb.mxu0 %v746_v35 }
 0x4b0   :  { %1055 = vrot.lane.b32.xlu1 %v4736_v42, %s4421_s0  ;;  %1032 = vmatpush.bf16.msrb.mxu0 %v745_v39 }
 0x4b4   :  { %1033 = vmatpush.bf16.msrb.mxu0 %v744_v19 }
 0x4b8   :  { %1369 = vmatpush.bf16.xpose.msra.mxu0 %v1363_v47  ;;  %1335 = vrot.lane.b32.xlu1 %v4738_v34, %s4418_s30 }
 0x4c0   :  { %1333 = vrot.lane.b32.xlu1 %v4744_v63, %s4418_s30 }
 0x4d4   :  { %v598_v44 = vpop.xlane.xlu2 %597 }
 0x4d5   :  { %v620_v50 = vsub.f32 %v4838_v27, %v598_v44 }
 0x4d7   :  { %v628_v52 = vmul.f32 1.442695, %v620_v50 }
 0x4d9   :  { %4032 = vpow2.f32 %v628_v52 }
 0x4da   :  { %v604_v53 = vpop.xlane.xlu0 %603 }
 0x4db   :  { %v622_v59 = vsub.f32 %v581_v13, %v604_v53 }
 0x4dc   :  { %v601_v3 = vpop.xlane.xlu1 %600 }
 0x4dd   :  { %v632_v41 = vmul.f32 1.442695, %v622_v59  ;;  %v621_v20 = vsub.f32 %v4854_v37, %v601_v3 }
 0x4df   :  { %v4921_v30 = vpop.eup %4032  ;;  %4034 = vpow2.f32 %v632_v41  ;;  %v630_v57 = vmul.f32 1.442695, %v621_v20 }
 0x4e0   :  { %v644_v4 = vsel %vm595_vm15, %v4921_v30, 0.0 }
 0x4e1   :  { %645 = vadd.xlane.f32.xlu0 %v644_v4  ;;  %4036 = vpow2.f32 %v630_v57 }
 0x4e2   :  { %v607_v10 = vpop.xlane.xlu2 %606 }
 0x4e3   :  { %v623_v27 = vsub.f32 %v4865_v40, %v607_v10 }
 0x4e5   :  { %v4925_v29 = vpop.eup %4034  ;;  %v634_v28 = vmul.f32 1.442695, %v623_v27 }
 0x4e6   :  { %v650_v13 = vsel %vm595_vm15, %v4925_v29, 0.0 }
 0x4e7   :  { %651 = vadd.xlane.f32.xlu2 %v650_v13  ;;  %v4930_v49 = vpop.eup %4036  ;;  %4038 = vpow2.f32 %v634_v28 }
 0x4e8   :  { %v647_v35 = vsel %vm595_vm15, %v4930_v49, 0.0 }
 0x4ea   :  { %v610_v37 = vpop.xlane.xlu0 %609 }
 0x4eb   :  { %v624_v36 = vsub.f32 %v4875_v45, %v610_v37 }
 0x4ed   :  { %v636_v54 = vmul.f32 1.442695, %v624_v36  ;;  %v4935_v39 = vpop.eup %4038 }
 0x4ee   :  { %v653_v19 = vsel %vm595_vm15, %v4935_v39, 0.0 }
 0x4ef   :  { %4040 = vpow2.f32 %v636_v54  ;;  %648 = vadd.xlane.f32.xlu2 %v647_v35  ;;  %v4979_v35 = vpop.f32.mrf.mxu1 }
 0x4f2   :  { %v613_v47 = vpop.xlane.xlu0 %612 }
 0x4f3   :  { %v625_v44 = vsub.f32 %v4885_v15, %v613_v47 }
 0x4f5   :  { %v4937_v40 = vpop.eup %4040  ;;  %1063 = vrot.lane.b32.xlu0 %v4744_v63, %s4416_s28  ;;  %v638_v50 = vmul.f32 1.442695, %v625_v44  ;;  %v1482_v44 = vpack.c.bf16 %v4670_v25, %v4670_v25 }
 0x4f6   :  { %v656_v45 = vsel %vm595_vm15, %v4937_v40, 0.0 }
 0x4f7   :  { %654 = vadd.xlane.f32.xlu2 %v653_v19  ;;  %657 = vadd.xlane.f32.xlu1 %v656_v45  ;;  %4042 = vpow2.f32 %v638_v50  ;;  %v803_v19 = vpop.f32.mrf.mxu1  ;;  %v1212_v45 = vpack.c.bf16 %v4665_v22, %v4665_v22 }
 0x4fa   :  { %v616_v57 = vpop.xlane.xlu2 %615 }
 0x4fb   :  { %v626_v10 = vsub.f32 %v4895_v8, %v616_v57 }
 0x4fd   :  { %v4953_v41 = vpop.eup %4042  ;;  %v640_v13 = vmul.f32 1.442695, %v626_v10 }
 0x4fe   :  { %v659_v20 = vsel %vm595_vm15, %v4953_v41, 0.0 }
 0x502   :  { %v619_v52 = vpop.xlane.xlu1 %618 }
 0x503   :  { %v627_v53 = vsub.f32 %v4905_v9, %v619_v52 }
 0x505   :  { %v642_v59 = vmul.f32 1.442695, %v627_v53 }
 0x507   :  { %4044 = vpow2.f32 %v642_v59 }
 0x508   :  { %4046 = vpow2.f32 %v640_v13 }
 0x50d   :  { %v4960_v4 = vpop.eup %4044 }
 0x50e   :  { %v665_v27 = vsel %vm595_vm15, %v4960_v4, 0.0  ;;  %v4971_v36 = vpop.eup %4046 }
 0x50f   :  { %912 = vrot.lane.b32.xlu2 %v4738_v34, %s4420_s9  ;;  %v662_v54 = vsel %vm595_vm15, %v4971_v36, 0.0 }
 0x510   :  { %1057 = vrot.lane.b32.xlu1 %v4740_v51, %s4421_s0 }
 0x518   :  { %914 = vrot.lane.b32.xlu1 %v4748_v62, %s4420_s9 }
 0x51a   :  { %v1338_v3 = vpop.permute.xlu1 %1337 }
 0x51b   :  { %v1360_v15 = vsel %vm66_vm1, %v1338_v3, 0 }
 0x51c   :  { %1370 = vmatpush.bf16.xpose.msra.mxu0 %v1360_v15 }
 0x51f   :  { %660 = vadd.xlane.f32.xlu0 %v659_v20 }
 0x520   :  { %1327 = vrot.lane.b32.xlu1 %v4740_v51, %s4422_s25 }
 0x522   :  { %v1056_v9 = vpop.permute.xlu1 %1055 }
 0x527   :  { %666 = vadd.xlane.f32.xlu0 %v665_v27 }
 0x528   :  { %1061 = vrot.lane.b32.xlu1 %v4780_v26, %s4421_s0 }
 0x52a   :  { %v1336_v28 = vpop.permute.xlu1 %1335 }
 0x52b   :  { %v1357_v37 = vsel %vm66_vm1, %v1336_v28, 0 }
 0x52c   :  { %1371 = vmatpush.bf16.xpose.msra.mxu0 %v1357_v37 }
 0x530   :  { %1213 = vrot.lane.b32.xlu1 %v4744_v63, %s4423_s10 }
 0x532   :  { %v1334_v51 = vpop.permute.xlu1 %1333 }
 0x533   :  { %v1354_v8 = vsel %vm66_vm1, %v1334_v51, 0 }
 0x534   :  { %1372 = vmatpush.bf16.xpose.msra.mxu0 %v1354_v8  ;;  %v5029_v8 = vadd.f32 %v803_v19, %v4850_v33 }
 0x538   :  { %663 = vadd.xlane.f32.xlu2 %v662_v54  ;;  %1331 = vrot.lane.b32.xlu1 %v4780_v26, %s4422_s25 }
 0x53b   :  { %1325 = vrot.lane.b32.xlu0 %v4736_v42, %s4422_s25  ;;  %v806_v42 = vpop.f32.mrf.mxu1 }
 0x53c   :  { %v5009_v57 = vadd.f32 %v806_v42, %v4845_v31 }
 0x53e   :  { %v827_v25 = vsel %vm595_vm15, %v5009_v57, -inf }
 0x540   :  { %1217 = vrot.lane.b32.xlu1 %v4748_v62, %s4423_s10 }
 0x543   :  { %1329 = vrot.lane.b32.xlu0 %v4750_v0, %s4422_s25  ;;  %v4999_v47 = vpop.f32.mrf.mxu1 }
 0x548   :  { %1489 = vrot.lane.b32.xlu1 %v4765_v14, %s4424_s11 }
 0x54b   :  { %1483 = vrot.lane.b32.xlu0 %v4744_v63, %s4424_s11  ;;  %v811_v53 = vpop.f32.mrf.mxu1 }
 0x550   :  { %1059 = vrot.lane.b32.xlu2 %v4750_v0, %s4421_s0 }
 0x553   :  { %1485 = vrot.lane.b32.xlu0 %v4738_v34, %s4424_s11 }
 0x554   :  { %v646_v63 = vpop.xlane.xlu0 %645 }
 0x555   :  { %4048 = vrcp.f32 %v646_v63 }
 0x558   :  { %916 = vrot.lane.b32.xlu2 %v4765_v14, %s4420_s9 }
 0x55a   :  { %v652_v26 = vpop.xlane.xlu2 %651 }
 0x55b   :  { %1219 = vrot.lane.b32.xlu0 %v4765_v14, %s4423_s10  ;;  %v4049_v50 = vpop.eup %4048 }
 0x55c   :  { %v676_v22 = vmul.f32 %v4049_v50, %v4921_v30  ;;  %v813_v30 = vpop.f32.mrf.mxu1 }
 0x55d   :  { %v5019_v27 = vadd.f32 %v813_v30, %v4882_v48 }
 0x560   :  { %1222 = vrot.lane.b32.xlu2 %v1212_v45, %s4417_s29 }
 0x562   :  { %v649_v0 = vpop.xlane.xlu2 %648 }
 0x563   :  { %4050 = vrcp.f32 %v649_v0 }
 0x564   :  { %v816_v42 = vpop.f32.mrf.mxu1 }
 0x567   :  { %v1064_v52 = vpop.permute.xlu0 %1063 }
 0x568   :  { %1492 = vrot.lane.b32.xlu2 %v1482_v44, %s4417_s29  ;;  %v1084_v14 = vsel %vm66_vm1, %v1064_v52, 0 }
 0x569   :  { %v4051_v59 = vpop.eup %4050  ;;  %1102 = vmatpush.bf16.xpose.msra.mxu1 %v1084_v14  ;;  %v5049_v14 = vadd.f32 %v4979_v35, %v4835_v21  ;;  %v5061_v35 = vadd.f32 %v816_v42, %v4892_v58 }
 0x56a   :  { %v677_v3 = vmul.f32 %v4051_v59, %v4930_v49  ;;  %v655_v15 = vpop.xlane.xlu2 %654  ;;  %v658_v28 = vpop.xlane.xlu1 %657 }
 0x56b   :  { %4052 = vrcp.f32 %v655_v15 }
 0x56c   :  { %v740_v20 = vpack.c.bf16 %v677_v3, %v676_v22  ;;  %4054 = vrcp.f32 %v652_v26  ;;  %v818_v45 = vpop.f32.mrf.mxu1  ;;  %v821_v22 = vsel %vm595_vm15, %v5049_v14, -inf  ;;  %v5056_v3 = vadd.f32 %v4999_v47, %v4862_v16 }
 0x56d   :  { %v5041_v19 = vadd.f32 %v818_v45, %v4902_v5  ;;  %4056 = vrcp.f32 %v658_v28 }
 0x56e   :  { %3868 = vmatmul.msk.bf16.vlgmr.msrb.gmra.mxu0 %vm595_vm15, %v740_v20 }
 0x56f   :  { %v842_v0 = vsel %vm595_vm15, %v5041_v19, -inf }
 0x570   :  { %1215 = vrot.lane.b32.xlu2 %v4738_v34, %s4423_s10  ;;  %3872 = vmatmul.msk.bf16.vlgmr.msra.gmra.mxu1 %vm66_vm1, %v1056_v9  ;;  %v836_v9 = vsel %vm595_vm15, %v5019_v27, -inf }
 0x571   :  { %v4053_v49 = vpop.eup %4052 }
 0x572   :  { %v913_v10 = vpop.permute.xlu2 %912  ;;  %828 = vmax.xlane.f32.xlu1 %v827_v25  ;;  %v4055_v13 = vpop.eup %4054  ;;  %v679_v34 = vmul.f32 %v4053_v49, %v4935_v39  ;;  %v5035_v39 = vadd.f32 %v811_v53, %v4872_v46  ;;  %v839_v25 = vsel %vm595_vm15, %v5061_v35, -inf }
 0x573   :  { %3861 = vmatmul.msk.bf16.gmra.mxu2 %vm66_vm1, %v913_v10  ;;  %v678_v37 = vmul.f32 %v4055_v13, %v4925_v29  ;;  %v4057_v44 = vpop.eup %4056 }
 0x574   :  { %v833_v29 = vsel %vm595_vm15, %v5035_v39, -inf  ;;  %v680_v52 = vmul.f32 %v4057_v44, %v4937_v40  ;;  %v830_v40 = vsel %vm595_vm15, %v5056_v3, -inf }
 0x575   :  { %v741_v51 = vpack.c.bf16 %v679_v34, %v678_v37 }
 0x578   :  { %1487 = vrot.lane.b32.xlu2 %v4748_v62, %s4424_s11  ;;  %v824_v62 = vsel %vm595_vm15, %v5029_v8, -inf }
 0x57a   :  { %837 = vmax.xlane.f32.xlu1 %v836_v9 }
 0x57e   :  { %3869 = vmatmul.msk.bf16.gmra.mxu0 %vm595_vm15, %v741_v51 }
 0x582   :  { %v1058_v54 = vpop.permute.xlu1 %1057 }
 0x583   :  { %3873 = vmatmul.msk.bf16.gmra.mxu1 %vm66_vm1, %v1058_v54 }
 0x585   :  { %825 = vmax.xlane.f32.xlu0 %v824_v62 }
 0x58a   :  { %v915_v26 = vpop.permute.xlu1 %914 }
 0x58b   :  { %3862 = vmatmul.msk.bf16.gmra.mxu2 %vm66_vm1, %v915_v26 }
 0x58d   :  { %834 = vmax.xlane.f32.xlu0 %v833_v29 }
 0x592   :  { %v661_v63 = vpop.xlane.xlu0 %660  ;;  %v1328_v34 = vpop.permute.xlu1 %1327 }
 0x593   :  { %4058 = vrcp.f32 %v661_v63 }
 0x595   :  { %843 = vmax.xlane.f32.xlu0 %v842_v0 }
 0x599   :  { %v4059_v50 = vpop.eup %4058 }
 0x59a   :  { %v681_v53 = vmul.f32 %v4059_v50, %v4953_v41  ;;  %v667_v15 = vpop.xlane.xlu0 %666  ;;  %v1062_v37 = vpop.permute.xlu1 %1061 }
 0x59b   :  { %4060 = vrcp.f32 %v667_v15 }
 0x59c   :  { %v742_v59 = vpack.c.bf16 %v681_v53, %v680_v52 }
 0x59e   :  { %3870 = vmatmul.msk.bf16.gmra.mxu0 %vm595_vm15, %v742_v59 }
 0x5a1   :  { %822 = vmax.xlane.f32.xlu2 %v821_v22  ;;  %v4061_v20 = vpop.eup %4060 }
 0x5a2   :  { %v683_v47 = vmul.f32 %v4061_v20, %v4960_v4 }
 0x5a9   :  { %831 = vmax.xlane.f32.xlu2 %v830_v40 }
 0x5ab   :  { %v664_v41 = vpop.xlane.xlu2 %663 }
 0x5ac   :  { %4062 = vrcp.f32 %v664_v41 }
 0x5ad   :  { %v1326_v28 = vpop.permute.xlu0 %1325 }
 0x5b1   :  { %840 = vmax.xlane.f32.xlu2 %v839_v25 }
 0x5b2   :  { %v4063_v30 = vpop.eup %4062 }
 0x5b3   :  { %v682_v10 = vmul.f32 %v4063_v30, %v4971_v36  ;;  %v1060_v49 = vpop.permute.xlu2 %1059  ;;  %v1214_v36 = vpop.permute.xlu1 %1213 }
 0x5b4   :  { %3874 = vmatmul.msk.bf16.gmra.mxu1 %vm66_vm1, %v1060_v49 }
 0x5b5   :  { %v743_v13 = vpack.c.bf16 %v683_v47, %v682_v10  ;;  %v1330_v4 = vpop.permute.xlu0 %1329  ;;  %v5099_v10 = vpop.f32.mrf.mxu2 }
 0x5b7   :  { %3871 = vmatmul.msk.bf16.gmra.mxu0 %vm595_vm15, %v743_v13 }
 0x5bb   :  { %v917_v9 = vpop.permute.xlu2 %916  ;;  %v1332_v45 = vpop.permute.xlu1 %1331 }
 0x5bc   :  { %3863 = vmatmul.msk.bf16.gmra.mxu2 %vm66_vm1, %v917_v9 }
 0x5bd   :  { %v1484_v26 = vpop.permute.xlu0 %1483  ;;  %v5103_v49 = vpop.f32.mrf.mxu2 }
 0x5c3   :  { %v1223_v51 = vpop.permute.xlu2 %1222  ;;  %v1218_v0 = vpop.permute.xlu1 %1217 }
 0x5c4   :  { %v1237_v54 = vsel %vm79_vm0, %v1223_v51, 0  ;;  %3875 = vmatmul.msk.bf16.gmra.mxu1 %vm66_vm1, %v1062_v37 }
 0x5c5   :  { %1246 = vmatpush.bf16.msra.mxu2 %v1237_v54  ;;  %v1486_v63 = vpop.permute.xlu0 %1485 }
 0x5c7   :  { %3884 = vmatmul.msk.bf16.vlgmr.msra.gmra.mxu0 %vm66_vm1, %v1326_v28 }
 0x5cb   :  { %v1493_v42 = vpop.permute.xlu2 %1492  ;;  %v1490_v25 = vpop.permute.xlu1 %1489 }
 0x5cc   :  { %v1507_v62 = vsel %vm79_vm0, %v1493_v42, 0  ;;  %3876 = vmatmul.msk.bf16.vlgmr.msra.gmra.mxu2 %vm66_vm1, %v1214_v36 }
 0x5cd   :  { %1516 = vmatpush.bf16.msrb.mxu1 %v1507_v62  ;;  %v1220_v52 = vpop.permute.xlu0 %1219 }
 0x5d3   :  { %v1216_v29 = vpop.permute.xlu2 %1215 }
 0x5d4   :  { %3888 = vmatmul.msk.bf16.vlgmr.msrb.gmra.mxu1 %vm66_vm1, %v1484_v26 }
 0x5d7   :  { %3885 = vmatmul.msk.bf16.gmra.mxu0 %vm66_vm1, %v1328_v34 }
 0x5db   :  { %v1488_v59 = vpop.permute.xlu2 %1487 }
 0x5dc   :  { %3877 = vmatmul.msk.bf16.gmra.mxu2 %vm66_vm1, %v1216_v29 }
 0x5e4   :  { %3889 = vmatmul.msk.bf16.gmra.mxu1 %vm66_vm1, %v1486_v63 }
 0x5e5   :  { %v829_v54 = vpop.xlane.xlu1 %828 }
 0x5e6   :  { %v847_v36 = vsub.f32 %v5009_v57, %v829_v54 }
 0x5e7   :  { %3886 = vmatmul.msk.bf16.gmra.mxu0 %vm66_vm1, %v1330_v4 }
 0x5eb   :  { %v5089_v41 = vpop.f32.mrf.mxu0 }
 0x5ec   :  { %3878 = vmatmul.msk.bf16.gmra.mxu2 %vm66_vm1, %v1218_v0 }
 0x5ed   :  { %v1104_v44 = vpop.f32.mrf.mxu1 }
 0x5ee   :  { %v5082_v50 = vadd.f32 %v1104_v44, %v4835_v21 }
 0x5f0   :  { %v1124_v53 = vsel %vm595_vm15, %v5082_v50, -inf }
 0x5f1   :  { %1125 = vmax.xlane.f32.xlu0 %v1124_v53 }
 0x5f3   :  { %v5097_v47 = vpop.f32.mrf.mxu0 }
 0x5f4   :  { %3890 = vmatmul.msk.bf16.gmra.mxu1 %vm66_vm1, %v1488_v59 }
 0x5f5   :  { %v1106_v9 = vpop.f32.mrf.mxu1 }
 0x5f6   :  { %v5108_v51 = vpop.f32.mrf.mxu2  ;;  %v5120_v29 = vadd.f32 %v1106_v9, %v4850_v33 }
 0x5f7   :  { %3887 = vmatmul.msk.bf16.gmra.mxu0 %vm66_vm1, %v1332_v45 }
 0x5f8   :  { %v826_v22 = vpop.xlane.xlu0 %825  ;;  %v1127_v63 = vsel %vm595_vm15, %v5120_v29, -inf }
 0x5f9   :  { %v846_v15 = vsub.f32 %v5029_v8, %v826_v22 }
 0x5fb   :  { %v855_v40 = vmul.f32 1.442695, %v846_v15  ;;  %v5101_v8 = vpop.f32.mrf.mxu0 }
 0x5fc   :  { %3879 = vmatmul.msk.bf16.gmra.mxu2 %vm66_vm1, %v1220_v52 }
 0x5fd   :  { %4064 = vpow2.f32 %v855_v40 }
 0x5fe   :  { %v5122_v45 = vpop.f32.mrf.mxu2 }
 0x600   :  { %v5113_v42 = vpop.f32.mrf.mxu1  ;;  %v835_v57 = vpop.xlane.xlu0 %834 }
 0x601   :  { %v849_v59 = vsub.f32 %v5035_v39, %v835_v57 }
 0x603   :  { %v5092_v20 = vpop.eup %4064  ;;  %v5106_v37 = vpop.f32.mrf.mxu0 }
 0x604   :  { %3891 = vmatmul.msk.bf16.gmra.mxu1 %vm66_vm1, %v1490_v25  ;;  %v872_v30 = vsel %vm595_vm15, %v5092_v20, 0.0  ;;  %v861_v25 = vmul.f32 1.442695, %v849_v59 }
 0x605   :  { %873 = vadd.xlane.f32.xlu2 %v872_v30 }
 0x608   :  { %v1111_v0 = vpop.f32.mrf.mxu1 }
 0x609   :  { %v5136_v30 = vadd.f32 %v1111_v0, %v4862_v16 }
 0x60b   :  { %v1133_v9 = vsel %vm595_vm15, %v5136_v30, -inf }
 0x60e   :  { %v955_v53 = vpop.f32.mrf.mxu2 }
 0x614   :  { %v823_v13 = vpop.xlane.xlu2 %822 }
 0x615   :  { %v845_v34 = vsub.f32 %v5049_v14, %v823_v13  ;;  %v857_v14 = vmul.f32 1.442695, %v847_v36 }
 0x617   :  { %v853_v28 = vmul.f32 1.442695, %v845_v34  ;;  %v957_v34 = vpop.f32.mrf.mxu2 }
 0x619   :  { %4066 = vpow2.f32 %v853_v28 }
 0x61a   :  { %4068 = vpow2.f32 %v857_v14 }
 0x61b   :  { %v5117_v26 = vpop.f32.mrf.mxu0  ;;  %4070 = vpow2.f32 %v861_v25 }
 0x61c   :  { %v832_v40 = vpop.xlane.xlu2 %831 }
 0x61f   :  { %v5110_v4 = vpop.eup %4066 }
 0x620   :  { %v869_v62 = vsel %vm595_vm15, %v5110_v4, 0.0  ;;  %v5128_v52 = vpop.eup %4068 }
 0x621   :  { %870 = vadd.xlane.f32.xlu1 %v869_v62  ;;  %v875_v22 = vsel %vm595_vm15, %v5128_v52, 0.0  ;;  %v5144_v36 = vpop.eup %4070  ;;  %v848_v62 = vsub.f32 %v5056_v3, %v832_v40 }
 0x622   :  { %v881_v0 = vsel %vm595_vm15, %v5144_v36, 0.0 }
 0x623   :  { %v5126_v44 = vpop.f32.mrf.mxu0  ;;  %v859_v59 = vmul.f32 1.442695, %v848_v62 }
 0x624   :  { %v841_v39 = vpop.xlane.xlu2 %840 }
 0x625   :  { %v851_v14 = vsub.f32 %v5061_v35, %v841_v39  ;;  %4072 = vpow2.f32 %v859_v59 }
 0x629   :  { %1128 = vmax.xlane.f32.xlu1 %v1127_v63 }
 0x631   :  { %v5133_v15 = vpop.f32.mrf.mxu1  ;;  %876 = vadd.xlane.f32.xlu1 %v875_v22  ;;  %v865_v22 = vmul.f32 1.442695, %v851_v14  ;;  %v5162_v14 = vpop.eup %4072 }
 0x633   :  { %4074 = vpow2.f32 %v865_v22 }
 0x634   :  { %v5138_v13 = vpop.f32.mrf.mxu0 }
 0x639   :  { %v1116_v28 = vpop.f32.mrf.mxu1  ;;  %1134 = vmax.xlane.f32.xlu1 %v1133_v9 }
 0x63a   :  { %v5153_v25 = vadd.f32 %v1116_v28, %v4882_v48  ;;  %v838_v28 = vpop.xlane.xlu1 %837 }
 0x63b   :  { %v850_v22 = vsub.f32 %v5019_v27, %v838_v28 }
 0x63c   :  { %v5142_v54 = vpop.f32.mrf.mxu0  ;;  %v1139_v40 = vsel %vm595_vm15, %v5153_v25, -inf }
 0x63d   :  { %v863_v27 = vmul.f32 1.442695, %v850_v22 }
 0x63f   :  { %v960_v63 = vpop.f32.mrf.mxu2  ;;  %4076 = vpow2.f32 %v863_v27 }
 0x641   :  { %v5150_v57 = vpop.f32.mrf.mxu1  ;;  %882 = vadd.xlane.f32.xlu1 %v881_v0 }
 0x644   :  { %v1374_v9 = vpop.f32.mrf.mxu0 }
 0x645   :  { %v5156_v38 = vadd.f32 %v1374_v9, %v4835_v21  ;;  %v971_v21 = vpack.c.bf16 %v957_v34, %v955_v53  ;;  %v5164_v9 = vpop.eup %4074 }
 0x646   :  { %v887_v53 = vsel %vm595_vm15, %v5164_v9, 0.0 }
 0x647   :  { %v962_v3 = vpop.f32.mrf.mxu2  ;;  %v1394_v35 = vsel %vm595_vm15, %v5156_v38, -inf }
 0x648   :  { %1395 = vmax.xlane.f32.xlu2 %v1394_v35  ;;  %v972_v39 = vpack.c.bf16 %v962_v3, %v960_v63  ;;  %v878_v3 = vsel %vm595_vm15, %v5162_v14, 0.0 }
 0x649   :  { %v1121_v62 = vpop.f32.mrf.mxu1  ;;  %1140 = vmax.xlane.f32.xlu1 %v1139_v40  ;;  %v5184_v40 = vadd.f32 %v5113_v42, %v4845_v31 }
 0x64a   :  { %989 = vmatpush.bf16.msrb.mxu3 %v972_v39  ;;  %v5187_v39 = vadd.f32 %v1121_v62, %v4902_v5 }
 0x64c   :  { %v1376_v0 = vpop.f32.mrf.mxu0  ;;  %v1145_v62 = vsel %vm595_vm15, %v5187_v39, -inf }
 0x64d   :  { %v5167_v59 = vadd.f32 %v1376_v0, %v4850_v33  ;;  %v970_v33 = vpack.c.bf16 %v5122_v45, %v5108_v51  ;;  %v969_v0 = vpack.c.bf16 %v5103_v49, %v5099_v10  ;;  %v1130_v45 = vsel %vm595_vm15, %v5184_v40, -inf  ;;  %v5204_v10 = vpop.eup %4076 }
 0x64e   :  { %990 = vmatpush.bf16.msrb.mxu3 %v971_v21  ;;  %v884_v27 = vsel %vm595_vm15, %v5204_v10, 0.0 }
 0x64f   :  { %v5170_v35 = vpop.f32.mrf.mxu2  ;;  %v1397_v63 = vsel %vm595_vm15, %v5167_v59, -inf }
 0x650   :  { %1398 = vmax.xlane.f32.xlu0 %v1397_v63  ;;  %879 = vadd.xlane.f32.xlu2 %v878_v3 }
 0x651   :  { %v5180_v34 = vpop.f32.mrf.mxu1  ;;  %888 = vadd.xlane.f32.xlu1 %v887_v53 }
 0x652   :  { %991 = vmatpush.bf16.msrb.mxu3 %v970_v33 }
 0x654   :  { %v1379_v28 = vpop.f32.mrf.mxu0 }
 0x655   :  { %v5192_v21 = vadd.f32 %v1379_v28, %v4845_v31  ;;  %v844_v31 = vpop.xlane.xlu0 %843 }
 0x656   :  { %992 = vmatpush.bf16.msrb.mxu3 %v969_v0  ;;  %v852_v3 = vsub.f32 %v5041_v19, %v844_v31 }
 0x657   :  { %v5194_v51 = vpop.f32.mrf.mxu2  ;;  %v1400_v42 = vsel %vm595_vm15, %v5192_v21, -inf }
 0x658   :  { %1131 = vmax.xlane.f32.xlu0 %v1130_v45  ;;  %1401 = vmax.xlane.f32.xlu2 %v1400_v42  ;;  %v867_v0 = vmul.f32 1.442695, %v852_v3  ;;  %v5216_v45 = vadd.f32 %v5133_v15, %v4872_v46 }
 0x659   :  { %v5202_v22 = vpop.f32.mrf.mxu1  ;;  %1146 = vmax.xlane.f32.xlu1 %v1145_v62 }
 0x65a   :  { %4078 = vpow2.f32 %v867_v0 }
 0x65c   :  { %v1381_v49 = vpop.f32.mrf.mxu0 }
 0x65d   :  { %v5207_v63 = vadd.f32 %v1381_v49, %v4862_v16 }
 0x65f   :  { %v1253_v53 = vpop.f32.mrf.mxu2  ;;  %v1403_v33 = vsel %vm595_vm15, %v5207_v63, -inf }
 0x660   :  { %1404 = vmax.xlane.f32.xlu0 %v1403_v33  ;;  %885 = vadd.xlane.f32.xlu2 %v884_v27  ;;  %v1136_v33 = vsel %vm595_vm15, %v5216_v45, -inf  ;;  %v5226_v27 = vpop.eup %4078 }
 0x661   :  { %v1523_v28 = vpop.f32.mrf.mxu1 }
 0x664   :  { %v1384_v42 = vpop.f32.mrf.mxu0  ;;  %v1126_v16 = vpop.xlane.xlu0 %1125 }
 0x665   :  { %v5219_v62 = vadd.f32 %v1384_v42, %v4872_v46  ;;  %v1148_v19 = vsub.f32 %v5082_v50, %v1126_v16  ;;  %v890_v16 = vsel %vm595_vm15, %v5226_v27, 0.0 }
 0x667   :  { %v1156_v31 = vmul.f32 1.442695, %v1148_v19  ;;  %v1255_v49 = vpop.f32.mrf.mxu2  ;;  %v1406_v3 = vsel %vm595_vm15, %v5219_v62, -inf }
 0x668   :  { %1137 = vmax.xlane.f32.xlu0 %v1136_v33  ;;  %1407 = vmax.xlane.f32.xlu2 %v1406_v3 }
 0x669   :  { %4080 = vpow2.f32 %v1156_v31  ;;  %v1525_v15 = vpop.f32.mrf.mxu1 }
 0x66c   :  { %v1386_v23 = vpop.f32.mrf.mxu0 }
 0x66d   :  { %v5229_v46 = vadd.f32 %v1386_v23, %v4882_v48  ;;  %v5241_v23 = vadd.f32 %v5150_v57, %v4892_v58 }
 0x66f   :  { %v5231_v50 = vpop.eup %4080  ;;  %v1258_v0 = vpop.f32.mrf.mxu2  ;;  %v1409_v42 = vsel %vm595_vm15, %v5229_v46, -inf  ;;  %v1142_v17 = vsel %vm595_vm15, %v5241_v23, -inf }
 0x670   :  { %1410 = vmax.xlane.f32.xlu0 %v1409_v42  ;;  %891 = vadd.xlane.f32.xlu2 %v890_v16  ;;  %v1172_v19 = vsel %vm595_vm15, %v5231_v50, 0.0 }
 0x671   :  { %v1528_v31 = vpop.f32.mrf.mxu1  ;;  %1173 = vadd.xlane.f32.xlu1 %v1172_v19 }
 0x674   :  { %v1389_v48 = vpop.f32.mrf.mxu0 }
 0x675   :  { %v5244_v33 = vadd.f32 %v1389_v48, %v4892_v58 }
 0x677   :  { %v1260_v3 = vpop.f32.mrf.mxu2  ;;  %v1412_v42 = vsel %vm595_vm15, %v5244_v33, -inf }
 0x678   :  { %1143 = vmax.xlane.f32.xlu0 %v1142_v17  ;;  %1413 = vmax.xlane.f32.xlu2 %v1412_v42  ;;  %v1274_v43 = vpack.c.bf16 %v1260_v3, %v1258_v0  ;;  %v1273_v42 = vpack.c.bf16 %v1255_v49, %v1253_v53  ;;  %v874_v32 = vpop.xlane.xlu2 %873 }
 0x679   :  { %v1530_v16 = vpop.f32.mrf.mxu1  ;;  %4082 = vrcp.f32 %v874_v32 }
 0x67a   :  { %v1544_v17 = vpack.c.bf16 %v1530_v16, %v1528_v31 }
 0x67c   :  { %v1391_v11 = vpop.f32.mrf.mxu0 }
 0x67d   :  { %v5251_v19 = vadd.f32 %v1391_v11, %v4902_v5  ;;  %v1543_v11 = vpack.c.bf16 %v1525_v15, %v1523_v28  ;;  %v1272_v5 = vpack.c.bf16 %v5194_v51, %v5170_v35 }
 0x67f   :  { %v1263_v57 = vpop.f32.mrf.mxu2  ;;  %v1415_v6 = vsel %vm595_vm15, %v5251_v19, -inf }
 0x680   :  { %1416 = vmax.xlane.f32.xlu0 %v1415_v6 }
 0x681   :  { %v1533_v58 = vpop.f32.mrf.mxu1 }
 0x687   :  { %v1265_v48 = vpop.f32.mrf.mxu2 }
 0x688   :  { %v1275_v1 = vpack.c.bf16 %v1265_v48, %v1263_v57 }
 0x689   :  { %v1535_v60 = vpop.f32.mrf.mxu1 }
 0x68a   :  { %v1545_v55 = vpack.c.bf16 %v1535_v60, %v1533_v58  ;;  %1292 = vmatpush.bf16.msra.mxu3 %v1275_v1  ;;  %v1542_v60 = vpack.c.bf16 %v5202_v22, %v5180_v34 }
 0x68c   :  { %1562 = vmatpush.bf16.msrb.mxu2 %v1545_v55  ;;  %v4083_v55 = vpop.eup %4082 }
 0x68e   :  { %1293 = vmatpush.bf16.msra.mxu3 %v1274_v43  ;;  %v902_v43 = vmul.f32 %v4083_v55, %v5092_v20 }
 0x690   :  { %1563 = vmatpush.bf16.msrb.mxu2 %v1544_v17 }
 0x692   :  { %1294 = vmatpush.bf16.msra.mxu3 %v1273_v42 }
 0x694   :  { %v871_v6 = vpop.xlane.xlu1 %870  ;;  %1564 = vmatpush.bf16.msrb.mxu2 %v1543_v11 }
 0x695   :  { %4084 = vrcp.f32 %v871_v6 }
 0x696   :  { %1295 = vmatpush.bf16.msra.mxu3 %v1272_v5 }
 0x698   :  { %1565 = vmatpush.bf16.msrb.mxu2 %v1542_v60 }
 0x69b   :  { %v4085_v1 = vpop.eup %4084 }
 0x69c   :  { %v901_v53 = vmul.f32 %v4085_v1, %v5110_v4  ;;  %v1129_v28 = vpop.xlane.xlu1 %1128 }
 0x69d   :  { %v1149_v32 = vsub.f32 %v5120_v29, %v1129_v28 }
 0x69e   :  { %v965_v49 = vpack.c.bf16 %v902_v43, %v901_v53 }
 0x69f   :  { %v1158_v15 = vmul.f32 1.442695, %v1149_v32 }
 0x6a0   :  { %3864 = vmatmul.msk.bf16.vlgmr.msrb.gmra.mxu3 %vm595_vm15, %v965_v49 }
 0x6a1   :  { %4086 = vpow2.f32 %v1158_v15 }
 0x6a4   :  { %v877_v51 = vpop.xlane.xlu1 %876 }
 0x6a7   :  { %v5263_v35 = vpop.eup %4086 }
 0x6a8   :  { %v1175_v34 = vsel %vm595_vm15, %v5263_v35, 0.0 }
 0x6a9   :  { %1176 = vadd.xlane.f32.xlu2 %v1175_v34 }
 0x6ac   :  { %v1135_v22 = vpop.xlane.xlu1 %1134 }
 0x6ad   :  { %v1151_v4 = vsub.f32 %v5136_v30, %v1135_v22 }
 0x6af   :  { %v1162_v3 = vmul.f32 1.442695, %v1151_v4 }
 0x6b4   :  { %v883_v31 = vpop.xlane.xlu1 %882 }
 0x6bb   :  { %v1396_v0 = vpop.xlane.xlu2 %1395 }
 0x6bc   :  { %v1418_v20 = vsub.f32 %v5156_v38, %v1396_v0  ;;  %v1141_v11 = vpop.xlane.xlu1 %1140 }
 0x6bd   :  { %v1153_v32 = vsub.f32 %v5153_v25, %v1141_v11 }
 0x6be   :  { %v1426_v29 = vmul.f32 1.442695, %v1418_v20 }
 0x6c0   :  { %4088 = vpow2.f32 %v1426_v29 }
 0x6c1   :  { %4090 = vrcp.f32 %v877_v51 }
 0x6c3   :  { %v880_v16 = vpop.xlane.xlu2 %879  ;;  %v1399_v57 = vpop.xlane.xlu0 %1398 }
 0x6c4   :  { %4092 = vrcp.f32 %v880_v16  ;;  %v1419_v58 = vsub.f32 %v5167_v59, %v1399_v57 }
 0x6c5   :  { %4094 = vpow2.f32 %v1162_v3 }
 0x6c6   :  { %v5270_v48 = vpop.eup %4088  ;;  %v1428_v17 = vmul.f32 1.442695, %v1419_v58 }
 0x6c7   :  { %v1442_v42 = vsel %vm595_vm15, %v5270_v48, 0.0  ;;  %v4091_v38 = vpop.eup %4090 }
 0x6c8   :  { %4096 = vpow2.f32 %v1428_v17  ;;  %1443 = vadd.xlane.f32.xlu0 %v1442_v42  ;;  %v903_v60 = vmul.f32 %v4091_v38, %v5128_v52 }
 0x6ca   :  { %v4093_v30 = vpop.eup %4092 }
 0x6cb   :  { %v1402_v5 = vpop.xlane.xlu2 %1401  ;;  %v1132_v6 = vpop.xlane.xlu0 %1131  ;;  %v904_v55 = vmul.f32 %v4093_v30, %v5162_v14 }
 0x6cc   :  { %v5276_v1 = vpop.eup %4094  ;;  %v1420_v59 = vsub.f32 %v5192_v21, %v1402_v5  ;;  %v1150_v43 = vsub.f32 %v5184_v40, %v1132_v6  ;;  %v1166_v40 = vmul.f32 1.442695, %v1153_v32  ;;  %v889_v21 = vpop.xlane.xlu1 %888 }
 0x6cd   :  { %v966_v53 = vpack.c.bf16 %v904_v55, %v903_v60  ;;  %v1181_v52 = vsel %vm595_vm15, %v5276_v1, 0.0 }
 0x6ce   :  { %v5280_v28 = vpop.eup %4096  ;;  %v1430_v49 = vmul.f32 1.442695, %v1420_v59  ;;  %v1160_v15 = vmul.f32 1.442695, %v1150_v43 }
 0x6cf   :  { %3865 = vmatmul.msk.bf16.gmra.mxu3 %vm595_vm15, %v966_v53  ;;  %v1445_v14 = vsel %vm595_vm15, %v5280_v28, 0.0 }
 0x6d0   :  { %4098 = vpow2.f32 %v1430_v49  ;;  %1182 = vadd.xlane.f32.xlu0 %v1181_v52  ;;  %1446 = vadd.xlane.f32.xlu1 %v1445_v14 }
 0x6d1   :  { %4100 = vpow2.f32 %v1160_v15 }
 0x6d2   :  { %4102 = vrcp.f32 %v883_v31 }
 0x6d3   :  { %v886_v34 = vpop.xlane.xlu2 %885  ;;  %v1405_v51 = vpop.xlane.xlu0 %1404 }
 0x6d4   :  { %4104 = vrcp.f32 %v886_v34  ;;  %v1421_v25 = vsub.f32 %v5207_v63, %v1405_v51  ;;  %v1147_v42 = vpop.xlane.xlu1 %1146 }
 0x6d5   :  { %4106 = vpow2.f32 %v1166_v40  ;;  %v1155_v55 = vsub.f32 %v5187_v39, %v1147_v42 }
 0x6d6   :  { %v5289_v22 = vpop.eup %4098  ;;  %v1432_v0 = vmul.f32 1.442695, %v1421_v25 }
 0x6d7   :  { %v5291_v20 = vpop.eup %4100  ;;  %v1448_v4 = vsel %vm595_vm15, %v5289_v22, 0.0 }
 0x6d8   :  { %v4103_v29 = vpop.eup %4102  ;;  %4108 = vpow2.f32 %v1432_v0  ;;  %1449 = vadd.xlane.f32.xlu1 %v1448_v4  ;;  %v1178_v31 = vsel %vm595_vm15, %v5291_v20, 0.0 }
 0x6d9   :  { %1179 = vadd.xlane.f32.xlu2 %v1178_v31  ;;  %v905_v63 = vmul.f32 %v4103_v29, %v5144_v36 }
 0x6da   :  { %v4105_v3 = vpop.eup %4104 }
 0x6db   :  { %v1408_v16 = vpop.xlane.xlu2 %1407  ;;  %v1138_v57 = vpop.xlane.xlu0 %1137  ;;  %v906_v58 = vmul.f32 %v4105_v3, %v5204_v10 }
 0x6dc   :  { %v5299_v17 = vpop.eup %4106  ;;  %v1422_v38 = vsub.f32 %v5219_v62, %v1408_v16  ;;  %v1152_v11 = vsub.f32 %v5216_v45, %v1138_v57  ;;  %v1170_v45 = vmul.f32 1.442695, %v1155_v55 }
 0x6dd   :  { %v967_v30 = vpack.c.bf16 %v906_v58, %v905_v63  ;;  %v1187_v36 = vsel %vm595_vm15, %v5299_v17, 0.0 }
 0x6de   :  { %v5303_v5 = vpop.eup %4108  ;;  %v1434_v6 = vmul.f32 1.442695, %v1422_v38  ;;  %v1164_v60 = vmul.f32 1.442695, %v1152_v11 }
 0x6df   :  { %3866 = vmatmul.msk.bf16.gmra.mxu3 %vm595_vm15, %v967_v30  ;;  %v1451_v10 = vsel %vm595_vm15, %v5303_v5, 0.0 }
 0x6e0   :  { %4110 = vpow2.f32 %v1434_v6  ;;  %1188 = vadd.xlane.f32.xlu1 %v1187_v36 }
 0x6e1   :  { %4112 = vpow2.f32 %v1164_v60  ;;  %1452 = vadd.xlane.f32.xlu2 %v1451_v10 }
 0x6e2   :  { %4114 = vrcp.f32 %v889_v21 }
 0x6e3   :  { %v892_v62 = vpop.xlane.xlu2 %891  ;;  %v1411_v59 = vpop.xlane.xlu0 %1410 }
 0x6e4   :  { %4116 = vrcp.f32 %v892_v62  ;;  %v1423_v43 = vsub.f32 %v5229_v46, %v1411_v59 }
 0x6e5   :  { %4118 = vpow2.f32 %v1170_v45 }
 0x6e6   :  { %v5312_v39 = vpop.eup %4110  ;;  %v1436_v53 = vmul.f32 1.442695, %v1423_v43 }
 0x6e7   :  { %v5314_v32 = vpop.eup %4112  ;;  %v1454_v49 = vsel %vm595_vm15, %v5312_v39, 0.0 }
 0x6e8   :  { %v4115_v15 = vpop.eup %4114  ;;  %4120 = vpow2.f32 %v1436_v53  ;;  %v1184_v52 = vsel %vm595_vm15, %v5314_v32, 0.0 }
 0x6e9   :  { %1455 = vadd.xlane.f32.xlu2 %v1454_v49  ;;  %1185 = vadd.xlane.f32.xlu0 %v1184_v52  ;;  %v907_v46 = vmul.f32 %v4115_v15, %v5164_v9 }
 0x6ea   :  { %v4117_v14 = vpop.eup %4116 }
 0x6eb   :  { %v1414_v40 = vpop.xlane.xlu2 %1413  ;;  %v1144_v21 = vpop.xlane.xlu0 %1143  ;;  %v908_v34 = vmul.f32 %v4117_v14, %v5226_v27 }
 0x6ec   :  { %v1424_v51 = vsub.f32 %v5244_v33, %v1414_v40  ;;  %v1154_v25 = vsub.f32 %v5241_v23, %v1144_v21  ;;  %v5324_v0 = vpop.eup %4118 }
 0x6ed   :  { %v968_v4 = vpack.c.bf16 %v908_v34, %v907_v46  ;;  %v1193_v9 = vsel %vm595_vm15, %v5324_v0, 0.0 }
 0x6ee   :  { %v5326_v29 = vpop.eup %4120  ;;  %v1438_v31 = vmul.f32 1.442695, %v1424_v51  ;;  %v1168_v3 = vmul.f32 1.442695, %v1154_v25 }
 0x6ef   :  { %3867 = vmatmul.msk.bf16.gmra.mxu3 %vm595_vm15, %v968_v4  ;;  %v1457_v16 = vsel %vm595_vm15, %v5326_v29, 0.0 }
 0x6f0   :  { %4122 = vpow2.f32 %v1438_v31 }
 0x6f1   :  { %4124 = vpow2.f32 %v1168_v3  ;;  %1194 = vadd.xlane.f32.xlu2 %v1193_v9  ;;  %1458 = vadd.xlane.f32.xlu0 %v1457_v16 }
 0x6f3   :  { %v1417_v27 = vpop.xlane.xlu0 %1416 }
 0x6f4   :  { %v1425_v23 = vsub.f32 %v5251_v19, %v1417_v27  ;;  %v1174_v19 = vpop.xlane.xlu1 %1173 }
 0x6f6   :  { %v5334_v33 = vpop.eup %4122  ;;  %v1440_v57 = vmul.f32 1.442695, %v1425_v23 }
 0x6f7   :  { %v5336_v63 = vpop.eup %4124  ;;  %v1460_v58 = vsel %vm595_vm15, %v5334_v33, 0.0 }
 0x6f8   :  { %4126 = vpow2.f32 %v1440_v57  ;;  %v1190_v42 = vsel %vm595_vm15, %v5336_v63, 0.0 }
 0x6f9   :  { %1461 = vadd.xlane.f32.xlu0 %v1460_v58  ;;  %1191 = vadd.xlane.f32.xlu1 %v1190_v42  ;;  %4128 = vrcp.f32 %v1174_v19 }
 0x6fe   :  { %v5342_v38 = vpop.eup %4126 }
 0x6ff   :  { %v1463_v11 = vsel %vm595_vm15, %v5342_v38, 0.0  ;;  %v4129_v6 = vpop.eup %4128 }
 0x700   :  { %v1204_v55 = vmul.f32 %v4129_v6, %v5231_v50 }
 0x701   :  { %1464 = vadd.xlane.f32.xlu1 %v1463_v11 }
 0x71c   :  { %v1177_v30 = vpop.xlane.xlu2 %1176 }
 0x71d   :  { %4130 = vrcp.f32 %v1177_v30 }
 0x723   :  { %v4131_v60 = vpop.eup %4130 }
 0x724   :  { %v1205_v36 = vmul.f32 %v4131_v60, %v5263_v35 }
 0x726   :  { %v1268_v10 = vpack.c.bf16 %v1205_v36, %v1204_v55 }
 0x728   :  { %3880 = vmatmul.msk.bf16.vlgmr.msra.gmra.mxu3 %vm595_vm15, %v1268_v10 }
 0x73b   :  { %v1444_v45 = vpop.xlane.xlu0 %1443 }
 0x73c   :  { %4132 = vrcp.f32 %v1444_v45 }
 0x742   :  { %v4133_v59 = vpop.eup %4132 }
 0x743   :  { %v1447_v62 = vpop.xlane.xlu1 %1446  ;;  %v1183_v43 = vpop.xlane.xlu0 %1182  ;;  %v1474_v49 = vmul.f32 %v4133_v59, %v5270_v48 }
 0x744   :  { %4134 = vrcp.f32 %v1447_v62 }
 0x745   :  { %4136 = vrcp.f32 %v1183_v43  ;;  %v994_v43 = vpop.f32.mrf.mxu3 }
 0x74a   :  { %v4135_v53 = vpop.eup %4134 }
 0x74b   :  { %v1475_v15 = vmul.f32 %v4135_v53, %v5280_v28  ;;  %v1450_v50 = vpop.xlane.xlu1 %1449  ;;  %v4137_v35 = vpop.eup %4136 }
 0x74c   :  { %v1180_v52 = vpop.xlane.xlu2 %1179  ;;  %v1207_v34 = vmul.f32 %v4137_v35, %v5276_v1 }
 0x74d   :  { %v1538_v14 = vpack.c.bf16 %v1475_v15, %v1474_v49  ;;  %4138 = vrcp.f32 %v1180_v52  ;;  %v996_v49 = vpop.f32.mrf.mxu3 }
 0x74e   :  { %4140 = vrcp.f32 %v1450_v50 }
 0x74f   :  { %3892 = vmatmul.msk.bf16.vlgmr.msrb.gmra.mxu2 %vm595_vm15, %v1538_v14 }
 0x753   :  { %v4139_v40 = vpop.eup %4138  ;;  %v1189_v28 = vpop.xlane.xlu1 %1188 }
 0x754   :  { %v1453_v21 = vpop.xlane.xlu2 %1452  ;;  %v1206_v46 = vmul.f32 %v4139_v40, %v5291_v20  ;;  %v4141_v48 = vpop.eup %4140  ;;  %v1036_v40 = vadd.f32 %v5089_v41, %v994_v43 }
 0x755   :  { %4142 = vrcp.f32 %v1453_v21  ;;  %v1476_v4 = vmul.f32 %v4141_v48, %v5289_v22  ;;  %v999_v15 = vpop.f32.mrf.mxu3 }
 0x756   :  { %v1269_v51 = vpack.c.bf16 %v1207_v34, %v1206_v46  ;;  %4144 = vrcp.f32 %v1189_v28  ;;  %v1038_v28 = vadd.f32 %v5097_v47, %v996_v49 }
 0x758   :  { %3881 = vmatmul.msk.bf16.gmra.mxu3 %vm595_vm15, %v1269_v51 }
 0x75b   :  { %v4143_v25 = vpop.eup %4142 }
 0x75c   :  { %v1477_v31 = vmul.f32 %v4143_v25, %v5303_v5  ;;  %v1186_v3 = vpop.xlane.xlu0 %1185  ;;  %v1456_v16 = vpop.xlane.xlu2 %1455 }
 0x75d   :  { %4146 = vrcp.f32 %v1186_v3  ;;  %v4145_v20 = vpop.eup %4144  ;;  %v1001_v52 = vpop.f32.mrf.mxu3 }
 0x75e   :  { %v1539_v9 = vpack.c.bf16 %v1477_v31, %v1476_v4  ;;  %4148 = vrcp.f32 %v1456_v16  ;;  %v1209_v57 = vmul.f32 %v4145_v20, %v5299_v17 }
 0x760   :  { %3893 = vmatmul.msk.bf16.gmra.mxu2 %vm595_vm15, %v1539_v9 }
 0x763   :  { %v4147_v1 = vpop.eup %4146 }
 0x764   :  { %v1459_v27 = vpop.xlane.xlu0 %1458  ;;  %v1208_v23 = vmul.f32 %v4147_v1, %v5314_v32  ;;  %v1195_v22 = vpop.xlane.xlu2 %1194 }
 0x765   :  { %4150 = vrcp.f32 %v1459_v27  ;;  %v4149_v5 = vpop.eup %4148 }
 0x766   :  { %v1270_v58 = vpack.c.bf16 %v1209_v57, %v1208_v23  ;;  %4152 = vrcp.f32 %v1195_v22  ;;  %v1478_v19 = vmul.f32 %v4149_v5, %v5312_v39  ;;  %v1043_v22 = vadd.f32 %v5106_v37, %v1001_v52 }
 0x768   :  { %3882 = vmatmul.msk.bf16.gmra.mxu3 %vm595_vm15, %v1270_v58 }
 0x76b   :  { %v4151_v42 = vpop.eup %4150 }
 0x76c   :  { %v1192_v11 = vpop.xlane.xlu1 %1191  ;;  %v1479_v30 = vmul.f32 %v4151_v42, %v5326_v29  ;;  %v1462_v60 = vpop.xlane.xlu0 %1461 }
 0x76d   :  { %4154 = vrcp.f32 %v1192_v11  ;;  %v4153_v55 = vpop.eup %4152 }
 0x76e   :  { %v1540_v6 = vpack.c.bf16 %v1479_v30, %v1478_v19  ;;  %4156 = vrcp.f32 %v1462_v60  ;;  %v1211_v10 = vmul.f32 %v4153_v55, %v5324_v0 }
 0x770   :  { %3894 = vmatmul.msk.bf16.gmra.mxu2 %vm595_vm15, %v1540_v6 }
 0x773   :  { %v4155_v17 = vpop.eup %4154 }
 0x774   :  { %v1465_v32 = vpop.xlane.xlu1 %1464  ;;  %v1210_v36 = vmul.f32 %v4155_v17, %v5336_v63  ;;  %v4157_v62 = vpop.eup %4156 }
 0x775   :  { %4158 = vrcp.f32 %v1465_v32  ;;  %v1480_v29 = vmul.f32 %v4157_v62, %v5334_v33  ;;  %v1004_v63 = vpop.f32.mrf.mxu3 }
 0x776   :  { %v1271_v45 = vpack.c.bf16 %v1211_v10, %v1210_v36 }
 0x778   :  { %3883 = vmatmul.msk.bf16.gmra.mxu3 %vm595_vm15, %v1271_v45 }
 0x77b   :  { %v4159_v39 = vpop.eup %4158 }
 0x77c   :  { %v1481_v59 = vmul.f32 %v4159_v39, %v5342_v38  ;;  %v5376_v38 = vld [vmem:[%s6659_s6] sm:$0xff] }
 0x77d   :  { %v1006_v14 = vpop.f32.mrf.mxu3  ;;  %v5379_v51 = vperm.slane %v5376_v38, 5 }
 0x77e   :  { %v1541_v53 = vpack.c.bf16 %v1481_v59, %v1480_v29  ;;  %v1048_v10 = vadd.f32 %v5126_v44, %v1006_v14 }
 0x780   :  { %3895 = vmatmul.msk.bf16.gmra.mxu2 %vm595_vm15, %v1541_v53 }
 0x785   :  { %v1009_v0 = vpop.f32.mrf.mxu3 }
 0x786   :  { %v1051_v43 = vadd.f32 %v5138_v13, %v1009_v0 }
 0x78d   :  { %v5370_v50 = vpop.f32.mrf.mxu3 }
 0x78e   :  { %v1053_v14 = vadd.f32 %v5142_v54, %v5370_v50 }
 0x7ab   :  { %v1297_v35 = vpop.f32.mrf.mxu3 }
 0x7ac   :  { %v1317_v21 = vadd.f32 %v1297_v35, %v1036_v40 }
 0x7b3   :  { %v1299_v33 = vpop.f32.mrf.mxu3 }
 0x7b4   :  { %v1318_v41 = vadd.f32 %v1299_v33, %v1038_v28 }
 0x7d2   :  { %v1567_v46 = vpop.f32.mrf.mxu2 }
 0x7d3   :  { %v1587_v34 = vadd.f32 %v1567_v46, %v1317_v21  ;;  %v6684_v21 = vld [vmem:[#allocation12_spill] sm:$0xff] }
 0x7d5   :  { %v1595_v48 = vadd.f32 %v1587_v34, %v4537_v56  ;;  %v1041_v56 = vadd.f32 %v5101_v8, %v999_v15 }
 0x7d7   :  { %v5384_v25 = vadd.f32 %v5379_v51, %v1595_v48  ;;  %v6685_v48 = vld [vmem:[#allocation14_spill] sm:$0xff] }
 0x7d9   :  { %v1612_v4 = vsel %vm191_vm2, %v5384_v25, 0.0 }
 0x7da   :  { %1613 = vadd.xlane.f32.xlu2 %v1612_v4  ;;  %v1569_v31 = vpop.f32.mrf.mxu2 }
 0x7db   :  { %v1302_v3 = vpop.f32.mrf.mxu3  ;;  %v1588_v16 = vadd.f32 %v1569_v31, %v1318_v41 }
 0x7dc   :  { %v1319_v1 = vadd.f32 %v1302_v3, %v1041_v56 }
 0x7dd   :  { %v1596_v9 = vadd.f32 %v1588_v16, %v4547_v61 }
 0x7df   :  { %v5390_v20 = vadd.f32 %v5379_v51, %v1596_v9 }
 0x7e1   :  { %v1615_v47 = vsel %vm191_vm2, %v5390_v20, 0.0 }
 0x7e2   :  { %1616 = vadd.xlane.f32.xlu0 %v1615_v47 }
 0x7e3   :  { %v1304_v27 = vpop.f32.mrf.mxu3  ;;  %v1572_v23 = vpop.f32.mrf.mxu2 }
 0x7e4   :  { %v1589_v57 = vadd.f32 %v1572_v23, %v1319_v1  ;;  %v1320_v61 = vadd.f32 %v1304_v27, %v1043_v22 }
 0x7e6   :  { %v1597_v58 = vadd.f32 %v1589_v57, %v4557_v2  ;;  %v1046_v2 = vadd.f32 %v5117_v26, %v1004_v63 }
 0x7e8   :  { %v5398_v5 = vadd.f32 %v5379_v51, %v1597_v58 }
 0x7ea   :  { %v1618_v42 = vsel %vm191_vm2, %v5398_v5, 0.0 }
 0x7eb   :  { %v1574_v8 = vpop.f32.mrf.mxu2  ;;  %1619 = vadd.xlane.f32.xlu1 %v1618_v42  ;;  %v1307_v19 = vpop.f32.mrf.mxu3 }
 0x7ec   :  { %v1590_v11 = vadd.f32 %v1574_v8, %v1320_v61  ;;  %v1321_v60 = vadd.f32 %v1307_v19, %v1046_v2 }
 0x7ee   :  { %v1598_v30 = vadd.f32 %v1590_v11, %v4567_v7 }
 0x7f0   :  { %v5404_v6 = vadd.f32 %v5379_v51, %v1598_v30 }
 0x7f2   :  { %v1621_v37 = vsel %vm191_vm2, %v5404_v6, 0.0 }
 0x7f3   :  { %1622 = vadd.xlane.f32.xlu2 %v1621_v37  ;;  %v1577_v55 = vpop.f32.mrf.mxu2  ;;  %v1309_v32 = vpop.f32.mrf.mxu3 }
 0x7f4   :  { %v1591_v17 = vadd.f32 %v1577_v55, %v1321_v60  ;;  %v1322_v7 = vadd.f32 %v1309_v32, %v1048_v10 }
 0x7f6   :  { %v1599_v36 = vadd.f32 %v1591_v17, %v4577_v12 }
 0x7f8   :  { %v5412_v45 = vadd.f32 %v5379_v51, %v1599_v36 }
 0x7fa   :  { %v1624_v62 = vsel %vm191_vm2, %v5412_v45, 0.0 }
 0x7fb   :  { %1625 = vadd.xlane.f32.xlu0 %v1624_v62  ;;  %v1579_v26 = vpop.f32.mrf.mxu2  ;;  %v1312_v59 = vpop.f32.mrf.mxu3 }
 0x7fc   :  { %v1592_v39 = vadd.f32 %v1579_v26, %v1322_v7  ;;  %v1323_v12 = vadd.f32 %v1312_v59, %v1051_v43  ;;  %v238_v26 = vld [vmem:[%s6657_s4 + $0x28] sm:$0xff] }
 0x7fe   :  { %v1600_v29 = vadd.f32 %v1592_v39, %v4587_v18  ;;  %v240_v39 = vld [vmem:[%s6657_s4 + $0x38] sm:$0xff] }
 0x800   :  { %v5419_v53 = vadd.f32 %v5379_v51, %v1600_v29  ;;  %v1811_v29 = vpack.c.bf16 %v240_v39, %v238_v26 }
 0x802   :  { %v1627_v44 = vsel %vm191_vm2, %v5419_v53, 0.0  ;;  %1831 = vmatpush.bf16.msrb.mxu3 %v1811_v29 }
 0x803   :  { %1628 = vadd.xlane.f32.xlu1 %v1627_v44  ;;  %v1582_v49 = vpop.f32.mrf.mxu2  ;;  %v1314_v13 = vpop.f32.mrf.mxu3  ;;  %v234_v44 = vld [vmem:[%s6657_s4 + $0x8] sm:$0xff] }
 0x804   :  { %v1593_v15 = vadd.f32 %v1582_v49, %v1323_v12  ;;  %v1324_v40 = vadd.f32 %v1314_v13, %v1053_v14  ;;  %v236_v49 = vld [vmem:[%s6657_s4 + $0x18] sm:$0xff] }
 0x806   :  { %v1601_v52 = vadd.f32 %v1593_v15, %v4597_v24  ;;  %v1810_v15 = vpack.c.bf16 %v236_v49, %v234_v44 }
 0x808   :  { %v5425_v63 = vadd.f32 %v5379_v51, %v1601_v52  ;;  %1832 = vmatpush.bf16.msrb.mxu3 %v1810_v15 }
 0x80a   :  { %v1630_v18 = vsel %vm191_vm2, %v5425_v63, 0.0 }
 0x80b   :  { %1631 = vadd.xlane.f32.xlu1 %v1630_v18  ;;  %v1584_v0 = vpop.f32.mrf.mxu2 }
 0x80c   :  { %v1594_v33 = vadd.f32 %v1584_v0, %v1324_v40 }
 0x80e   :  { %v1602_v28 = vadd.f32 %v1594_v33, %v6685_v48 }
 0x810   :  { %v5444_v31 = vadd.f32 %v5379_v51, %v1602_v28 }
 0x812   :  { %v1633_v16 = vsel %vm191_vm2, %v5444_v31, 0.0 }
 0x84d   :  { %v1614_v35 = vpop.xlane.xlu2 %1613 }
 0x84e   :  { %v1636_v46 = vmul.f32 %v1614_v35, %v6684_v21 }
 0x850   :  { %v5433_v34 = vsub.f32 %v5384_v25, %v1636_v46 }
 0x852   :  { %v1652_v24 = vmul.f32 %v5433_v34, %v5433_v34 }
 0x854   :  { %v1660_v41 = vsel %vm191_vm2, %v1652_v24, 0.0 }
 0x855   :  { %1661 = vadd.xlane.f32.xlu2 %v1660_v41  ;;  %v1617_v4 = vpop.xlane.xlu0 %1616 }
 0x856   :  { %v1637_v54 = vmul.f32 %v1617_v4, %v6684_v21 }
 0x858   :  { %v5441_v50 = vsub.f32 %v5390_v20, %v1637_v54 }
 0x85a   :  { %v1653_v3 = vmul.f32 %v5441_v50, %v5441_v50 }
 0x85c   :  { %v1663_v9 = vsel %vm191_vm2, %v1653_v3, 0.0 }
 0x85d   :  { %1634 = vadd.xlane.f32.xlu2 %v1633_v16  ;;  %1664 = vadd.xlane.f32.xlu0 %v1663_v9 }
 0x85e   :  { %v1620_v56 = vpop.xlane.xlu1 %1619 }
 0x85f   :  { %v1638_v47 = vmul.f32 %v1620_v56, %v6684_v21 }
 0x861   :  { %v5453_v1 = vsub.f32 %v5398_v5, %v1638_v47 }
 0x863   :  { %v1654_v51 = vmul.f32 %v5453_v1, %v5453_v1 }
 0x865   :  { %v1666_v27 = vsel %vm191_vm2, %v1654_v51, 0.0 }
 0x866   :  { %v1623_v23 = vpop.xlane.xlu2 %1622  ;;  %1667 = vadd.xlane.f32.xlu0 %v1666_v27 }
 0x867   :  { %v1639_v57 = vmul.f32 %v1623_v23, %v6684_v21 }
 0x869   :  { %v5460_v58 = vsub.f32 %v5404_v6, %v1639_v57 }
 0x86b   :  { %v1655_v22 = vmul.f32 %v5460_v58, %v5460_v58 }
 0x86d   :  { %v1669_v61 = vsel %vm191_vm2, %v1655_v22, 0.0 }
 0x86e   :  { %1670 = vadd.xlane.f32.xlu1 %v1669_v61  ;;  %v1626_v42 = vpop.xlane.xlu0 %1625  ;;  %v5510_v61 = vperm.slane %v5376_v38, 6 }
 0x86f   :  { %v1640_v8 = vmul.f32 %v1626_v42, %v6684_v21 }
 0x871   :  { %v5467_v11 = vsub.f32 %v5412_v45, %v1640_v8 }
 0x873   :  { %v1656_v19 = vmul.f32 %v5467_v11, %v5467_v11 }
 0x875   :  { %v1672_v30 = vsel %vm191_vm2, %v1656_v19, 0.0 }
 0x876   :  { %v1629_v2 = vpop.xlane.xlu1 %1628  ;;  %1673 = vadd.xlane.f32.xlu2 %v1672_v30 }
 0x877   :  { %v1641_v37 = vmul.f32 %v1629_v2, %v6684_v21 }
 0x879   :  { %v5474_v60 = vsub.f32 %v5419_v53, %v1641_v37 }
 0x87b   :  { %v1657_v55 = vmul.f32 %v5474_v60, %v5474_v60 }
 0x87d   :  { %v1675_v17 = vsel %vm191_vm2, %v1657_v55, 0.0 }
 0x87e   :  { %v1632_v32 = vpop.xlane.xlu1 %1631  ;;  %1676 = vadd.xlane.f32.xlu0 %v1675_v17 }
 0x87f   :  { %v1642_v36 = vmul.f32 %v1632_v32, %v6684_v21 }
 0x881   :  { %v5481_v10 = vsub.f32 %v5425_v63, %v1642_v36  ;;  %v5516_v36 = vperm.slane %v5376_v38, 7 }
 0x883   :  { %v1658_v7 = vmul.f32 %v5481_v10, %v5481_v10 }
 0x885   :  { %v1678_v62 = vsel %vm191_vm2, %v1658_v7, 0.0 }
 0x886   :  { %1679 = vadd.xlane.f32.xlu1 %v1678_v62 }
 0x8c8   :  { %v1662_v59 = vpop.xlane.xlu2 %1661 }
 0x8c9   :  { %v1684_v43 = vmul.f32 %v1662_v59, %v6684_v21 }
 0x8cb   :  { %v1692_v12 = vadd.f32 1e-05, %v1684_v43 }
 0x8cd   :  { %4160 = vrsqrt.f32 %v1692_v12  ;;  %vm1706_vm4 = vweird.f32 %v1692_v12 }
 0x8d0   :  { %v1635_v52 = vpop.xlane.xlu2 %1634  ;;  %v1665_v18 = vpop.xlane.xlu0 %1664 }
 0x8d1   :  { %v1643_v13 = vmul.f32 %v1635_v52, %v6684_v21  ;;  %v1685_v14 = vmul.f32 %v1665_v18, %v6684_v21 }
 0x8d3   :  { %v4161_v0 = vpop.eup %4160  ;;  %v5502_v35 = vsub.f32 %v5444_v31, %v1643_v13  ;;  %v1693_v40 = vadd.f32 1e-05, %v1685_v14 }
 0x8d4   :  { %v1701_v46 = vmul.f32 %v4161_v0, %v1692_v12  ;;  %vm1707_vm3 = vweird.f32 %v4161_v0 }
 0x8d5   :  { %4162 = vrsqrt.f32 %v1693_v40  ;;  %v1659_v33 = vmul.f32 %v5502_v35, %v5502_v35  ;;  %vm1708_vm5 = vmor %vm1706_vm4, %vm1707_vm3  ;;  %vm1716_vm7 = vweird.f32 %v1693_v40 }
 0x8d6   :  { %v1702_v24 = vmul.f32 %v4161_v0, %v1701_v46 }
 0x8d7   :  { %v1681_v48 = vsel %vm191_vm2, %v1659_v33, 0.0 }
 0x8d8   :  { %v1703_v28 = vmul.f32 0.5, %v1702_v24  ;;  %1682 = vadd.xlane.f32.xlu2 %v1681_v48 }
 0x8d9   :  { %v1668_v41 = vpop.xlane.xlu0 %1667 }
 0x8da   :  { %v1704_v4 = vsub.f32 1.5, %v1703_v28  ;;  %v1686_v54 = vmul.f32 %v1668_v41, %v6684_v21 }
 0x8db   :  { %v4163_v3 = vpop.eup %4162 }
 0x8dc   :  { %v1711_v16 = vmul.f32 %v4163_v3, %v1693_v40  ;;  %v1694_v9 = vadd.f32 1e-05, %v1686_v54  ;;  %v1705_v56 = vmul.f32 %v4161_v0, %v1704_v4  ;;  %vm1717_vm6 = vweird.f32 %v4163_v3 }
 0x8dd   :  { %vm1718_vm8 = vmor %vm1716_vm7, %vm1717_vm6 }
 0x8de   :  { %v1712_v47 = vmul.f32 %v4163_v3, %v1711_v16  ;;  %4164 = vrsqrt.f32 %v1694_v9  ;;  %v1709_v27 = vsel %vm1708_vm5, %v4161_v0, %v1705_v56  ;;  %vm1726_vm10 = vweird.f32 %v1694_v9 }
 0x8df   :  { %v1780_v8 = vmul.f32 %v1709_v27, %v5433_v34 }
 0x8e0   :  { %v1713_v51 = vmul.f32 0.5, %v1712_v47 }
 0x8e1   :  { %v1671_v23 = vpop.xlane.xlu1 %1670  ;;  %v1789_v32 = vmul.f32 %v5510_v61, %v1780_v8 }
 0x8e2   :  { %v1714_v57 = vsub.f32 1.5, %v1713_v51  ;;  %v1687_v22 = vmul.f32 %v1671_v23, %v6684_v21 }
 0x8e3   :  { %v1798_v43 = vadd.f32 %v5516_v36, %v1789_v32 }
 0x8e4   :  { %v4165_v42 = vpop.eup %4164  ;;  %v1715_v19 = vmul.f32 %v4163_v3, %v1714_v57  ;;  %v1695_v30 = vadd.f32 1e-05, %v1687_v22 }
 0x8e5   :  { %v1721_v2 = vmul.f32 %v4165_v42, %v1694_v9  ;;  %vm1727_vm9 = vweird.f32 %v4165_v42 }
 0x8e6   :  { %v1719_v37 = vsel %vm1718_vm8, %v4163_v3, %v1715_v19  ;;  %4166 = vrsqrt.f32 %v1695_v30  ;;  %vm1728_vm11 = vmor %vm1726_vm10, %vm1727_vm9  ;;  %vm1736_vm13 = vweird.f32 %v1695_v30 }
 0x8e7   :  { %v1781_v55 = vmul.f32 %v1719_v37, %v5441_v50  ;;  %v1722_v17 = vmul.f32 %v4165_v42, %v1721_v2 }
 0x8e9   :  { %v1790_v7 = vmul.f32 %v5510_v61, %v1781_v55  ;;  %v1723_v62 = vmul.f32 0.5, %v1722_v17  ;;  %v1674_v26 = vpop.xlane.xlu2 %1673 }
 0x8ea   :  { %v1688_v39 = vmul.f32 %v1674_v26, %v6684_v21 }
 0x8eb   :  { %v1724_v34 = vsub.f32 1.5, %v1723_v62  ;;  %v1799_v29 = vadd.f32 %v5516_v36, %v1790_v7 }
 0x8ec   :  { %v4167_v59 = vpop.eup %4166  ;;  %v1696_v44 = vadd.f32 1e-05, %v1688_v39 }
 0x8ed   :  { %v1725_v12 = vmul.f32 %v4165_v42, %v1724_v34  ;;  %v1731_v50 = vmul.f32 %v4167_v59, %v1695_v30  ;;  %v1806_v49 = vpack.c.bf16 %v1799_v29, %v1798_v43  ;;  %vm1737_vm12 = vweird.f32 %v4167_v59 }
 0x8ee   :  { %4168 = vrsqrt.f32 %v1696_v44  ;;  %vm1738_vm14 = vmor %vm1736_vm13, %vm1737_vm12  ;;  %vm1746_vm4 = vweird.f32 %v1696_v44 }
 0x8ef   :  { %v1732_v38 = vmul.f32 %v4167_v59, %v1731_v50  ;;  %3896 = vmatmul.msk.bf16.vlgmr.msrb.gmra.mxu3 %vm191_vm2, %v1806_v49  ;;  %v1729_v15 = vsel %vm1728_vm11, %v4165_v42, %v1725_v12  ;;  %v256_v49 = vld [vmem:[%s6658_s5 + $0x78] sm:$0xff] }
 0x8f0   :  { %v1782_v0 = vmul.f32 %v1729_v15, %v5453_v1 }
 0x8f1   :  { %v1733_v52 = vmul.f32 0.5, %v1732_v38  ;;  %v1677_v18 = vpop.xlane.xlu0 %1676 }
 0x8f2   :  { %v1689_v14 = vmul.f32 %v1677_v18, %v6684_v21  ;;  %v1791_v4 = vmul.f32 %v5510_v61, %v1782_v0 }
 0x8f3   :  { %v1734_v13 = vsub.f32 1.5, %v1733_v52 }
 0x8f4   :  { %v4169_v40 = vpop.eup %4168  ;;  %v1697_v33 = vadd.f32 1e-05, %v1689_v14  ;;  %v1800_v9 = vadd.f32 %v5516_v36, %v1791_v4  ;;  %v254_v14 = vld [vmem:[%s6658_s5 + $0x68] sm:$0xff] }
 0x8f5   :  { %v1735_v46 = vmul.f32 %v4167_v59, %v1734_v13  ;;  %v1741_v24 = vmul.f32 %v4169_v40, %v1696_v44  ;;  %vm1747_vm3 = vweird.f32 %v4169_v40  ;;  %v255_v44 = vld [vmem:[%s6658_s5 + $0x70] sm:$0xff]  ;;  %v253_v13 = vld [vmem:[%s6658_s5 + $0x60] sm:$0xff] }
 0x8f6   :  { %4170 = vrsqrt.f32 %v1697_v33  ;;  %vm1748_vm5 = vmor %vm1746_vm4, %vm1747_vm3  ;;  %vm1756_vm7 = vweird.f32 %v1697_v33  ;;  %v1937_v52 = vpack.c.bf16 %v256_v49, %v255_v44 }
 0x8f7   :  { %v1739_v48 = vsel %vm1738_vm14, %v4167_v59, %v1735_v46  ;;  %v1742_v41 = vmul.f32 %v4169_v40, %v1741_v24  ;;  %v1936_v46 = vpack.c.bf16 %v254_v14, %v253_v13 }
 0x8f8   :  { %v1783_v28 = vmul.f32 %v1739_v48, %v5460_v58  ;;  %1939 = vmatpush.bf16.msrb.mxu0 %v1937_v52  ;;  %v251_v48 = vld [vmem:[%s6658_s5 + $0x50] sm:$0xff] }
 0x8f9   :  { %v1743_v54 = vmul.f32 0.5, %v1742_v41  ;;  %v1680_v7 = vpop.xlane.xlu1 %1679 }
 0x8fa   :  { %v1792_v3 = vmul.f32 %v5510_v61, %v1783_v28  ;;  %v252_v28 = vld [vmem:[%s6658_s5 + $0x58] sm:$0xff] }
 0x8fb   :  { %v1744_v16 = vsub.f32 1.5, %v1743_v54  ;;  %v1935_v4 = vpack.c.bf16 %v252_v28, %v251_v48 }
 0x8fc   :  { %v1801_v1 = vadd.f32 %v5516_v36, %v1792_v3  ;;  %v4171_v56 = vpop.eup %4170  ;;  %1940 = vmatpush.bf16.msrb.mxu0 %v1936_v46 }
 0x8fd   :  { %v1745_v47 = vmul.f32 %v4169_v40, %v1744_v16  ;;  %v1751_v51 = vmul.f32 %v4171_v56, %v1697_v33  ;;  %vm1757_vm6 = vweird.f32 %v4171_v56 }
 0x8fe   :  { %v1807_v27 = vpack.c.bf16 %v1801_v1, %v1800_v9  ;;  %vm1758_vm8 = vmor %vm1756_vm7, %vm1757_vm6  ;;  %v250_v9 = vld [vmem:[%s6658_s5 + $0x48] sm:$0xff] }
 0x8ff   :  { %v1752_v23 = vmul.f32 %v4171_v56, %v1751_v51  ;;  %v1749_v58 = vsel %vm1748_vm5, %v4169_v40, %v1745_v47 }
 0x900   :  { %3897 = vmatmul.msk.bf16.gmra.mxu3 %vm191_vm2, %v1807_v27  ;;  %v1784_v42 = vmul.f32 %v1749_v58, %v5467_v11  ;;  %v1690_v11 = vmul.f32 %v1680_v7, %v6684_v21  ;;  %1941 = vmatpush.bf16.msrb.mxu0 %v1935_v4  ;;  %v248_v27 = vld [vmem:[%s6658_s5 + $0x38] sm:$0xff] }
 0x901   :  { %v1753_v57 = vmul.f32 0.5, %v1752_v23 }
 0x902   :  { %v1793_v2 = vmul.f32 %v5510_v61, %v1784_v42  ;;  %v1698_v62 = vadd.f32 1e-05, %v1690_v11  ;;  %v243_v42 = vld [vmem:[%s6658_s5 + $0x10] sm:$0xff] }
 0x903   :  { %v1754_v22 = vsub.f32 1.5, %v1753_v57 }
 0x904   :  { %v1802_v55 = vadd.f32 %v5516_v36, %v1793_v2  ;;  %4172 = vrsqrt.f32 %v1698_v62  ;;  %vm1766_vm10 = vweird.f32 %v1698_v62  ;;  %v241_v2 = vld [vmem:[%s6658_s5] sm:$0xff] }
 0x905   :  { %v1755_v8 = vmul.f32 %v4171_v56, %v1754_v22  ;;  %v5586_v22 = vld [vmem:[%s6659_s6 + $0x8] sm:$0xff] }
 0x907   :  { %v1759_v19 = vsel %vm1758_vm8, %v4171_v56, %v1755_v8  ;;  %v244_v8 = vld [vmem:[%s6658_s5 + $0x18] sm:$0xff] }
 0x908   :  { %v1785_v30 = vmul.f32 %v1759_v19, %v5474_v60  ;;  %v1931_v19 = vpack.c.bf16 %v244_v8, %v243_v42 }
 0x90a   :  { %v1794_v37 = vmul.f32 %v5510_v61, %v1785_v30  ;;  %v4173_v26 = vpop.eup %4172  ;;  %v5595_v30 = vperm.slane %v5586_v22, 0 }
 0x90b   :  { %v1761_v34 = vmul.f32 %v4173_v26, %v1698_v62  ;;  %vm1767_vm9 = vweird.f32 %v4173_v26 }
 0x90c   :  { %v1803_v17 = vadd.f32 %v5516_v36, %v1794_v37  ;;  %vm1768_vm11 = vmor %vm1766_vm10, %vm1767_vm9  ;;  %v242_v37 = vld [vmem:[%s6658_s5 + $0x8] sm:$0xff] }
 0x90d   :  { %v1762_v39 = vmul.f32 %v4173_v26, %v1761_v34 }
 0x90e   :  { %v1808_v32 = vpack.c.bf16 %v1803_v17, %v1802_v55  ;;  %v1930_v17 = vpack.c.bf16 %v242_v37, %v241_v2 }
 0x90f   :  { %v1763_v43 = vmul.f32 0.5, %v1762_v39 }
 0x910   :  { %3898 = vmatmul.msk.bf16.gmra.mxu3 %vm191_vm2, %v1808_v32 }
 0x911   :  { %v1764_v12 = vsub.f32 1.5, %v1763_v43 }
 0x913   :  { %v1765_v38 = vmul.f32 %v4173_v26, %v1764_v12 }
 0x915   :  { %v1769_v0 = vsel %vm1768_vm11, %v4173_v26, %v1765_v38 }
 0x916   :  { %v1786_v24 = vmul.f32 %v1769_v0, %v5481_v10  ;;  %v249_v10 = vld [vmem:[%s6658_s5 + $0x40] sm:$0xff] }
 0x917   :  { %v1934_v1 = vpack.c.bf16 %v250_v9, %v249_v10 }
 0x918   :  { %v1795_v16 = vmul.f32 %v5510_v61, %v1786_v24 }
 0x919   :  { %1942 = vmatpush.bf16.msrb.mxu0 %v1934_v1 }
 0x91a   :  { %v1804_v47 = vadd.f32 %v5516_v36, %v1795_v16 }
 0x94b   :  { %v1683_v60 = vpop.xlane.xlu2 %1682 }
 0x94c   :  { %v1691_v29 = vmul.f32 %v1683_v60, %v6684_v21 }
 0x94e   :  { %v1699_v59 = vadd.f32 1e-05, %v1691_v29 }
 0x950   :  { %4174 = vrsqrt.f32 %v1699_v59  ;;  %vm1776_vm13 = vweird.f32 %v1699_v59 }
 0x956   :  { %v4175_v50 = vpop.eup %4174 }
 0x957   :  { %v1771_v15 = vmul.f32 %v4175_v50, %v1699_v59  ;;  %vm1777_vm12 = vweird.f32 %v4175_v50 }
 0x958   :  { %vm1778_vm14 = vmor %vm1776_vm13, %vm1777_vm12 }
 0x959   :  { %v1772_v18 = vmul.f32 %v4175_v50, %v1771_v15 }
 0x95b   :  { %v1773_v40 = vmul.f32 0.5, %v1772_v18 }
 0x95d   :  { %v1774_v33 = vsub.f32 1.5, %v1773_v40 }
 0x95f   :  { %v1775_v41 = vmul.f32 %v4175_v50, %v1774_v33 }
 0x961   :  { %v1779_v54 = vsel %vm1778_vm14, %v4175_v50, %v1775_v41 }
 0x962   :  { %v1787_v3 = vmul.f32 %v1779_v54, %v5502_v35  ;;  %v247_v35 = vld [vmem:[%s6658_s5 + $0x30] sm:$0xff] }
 0x963   :  { %v1933_v23 = vpack.c.bf16 %v248_v27, %v247_v35 }
 0x964   :  { %v1796_v56 = vmul.f32 %v5510_v61, %v1787_v3  ;;  %v245_v61 = vld [vmem:[%s6658_s5 + $0x20] sm:$0xff] }
 0x965   :  { %1943 = vmatpush.bf16.msrb.mxu0 %v1933_v23 }
 0x966   :  { %v1805_v51 = vadd.f32 %v5516_v36, %v1796_v56  ;;  %v246_v36 = vld [vmem:[%s6658_s5 + $0x28] sm:$0xff] }
 0x967   :  { %v1932_v57 = vpack.c.bf16 %v246_v36, %v245_v61 }
 0x968   :  { %v1809_v58 = vpack.c.bf16 %v1805_v51, %v1804_v47 }
 0x969   :  { %1944 = vmatpush.bf16.msrb.mxu0 %v1932_v57 }
 0x96a   :  { %3899 = vmatmul.msk.bf16.gmra.mxu3 %vm191_vm2, %v1809_v58 }
 0x96d   :  { %1945 = vmatpush.bf16.msrb.mxu0 %v1931_v19 }
 0x971   :  { %1946 = vmatpush.bf16.msrb.mxu0 %v1930_v17 }
 0x972   :  { %v1834_v55 = vpop.f32.mrf.mxu3 }
 0x973   :  { %v1835_v32 = vadd.f32 %v1834_v55, %v5595_v30 }
 0x975   :  { %v1854_v7 = vmul.f32 %v1835_v32, %v1835_v32 }
 0x977   :  { %v1862_v11 = vmul.f32 %v1854_v7, %v1835_v32 }
 0x979   :  { %v1870_v62 = vmul.f32 0.044715, %v1862_v11 }
 0x97a   :  { %v1836_v26 = vpop.f32.mrf.mxu3 }
 0x97b   :  { %v1878_v34 = vadd.f32 %v1870_v62, %v1835_v32  ;;  %v1837_v39 = vadd.f32 %v1836_v26, %v5595_v30 }
 0x97d   :  { %v1886_v60 = vmul.f32 0.7978846, %v1878_v34  ;;  %v1855_v29 = vmul.f32 %v1837_v39, %v1837_v39 }
 0x97f   :  { %v1863_v59 = vmul.f32 %v1855_v29, %v1837_v39  ;;  %4176 = vtanh.f32 %v1886_v60 }
 0x981   :  { %v1871_v43 = vmul.f32 0.044715, %v1863_v59 }
 0x983   :  { %v1839_v12 = vpop.f32.mrf.mxu3  ;;  %v1879_v50 = vadd.f32 %v1871_v43, %v1837_v39 }
 0x984   :  { %v1840_v44 = vadd.f32 %v1839_v12, %v5595_v30 }
 0x985   :  { %v1887_v49 = vmul.f32 0.7978846, %v1879_v50  ;;  %v4177_v15 = vpop.eup %4176 }
 0x986   :  { %v1856_v38 = vmul.f32 %v1840_v44, %v1840_v44  ;;  %v1902_v13 = vadd.f32 1.0, %v4177_v15 }
 0x987   :  { %4178 = vtanh.f32 %v1887_v49 }
 0x988   :  { %v1864_v52 = vmul.f32 %v1856_v38, %v1840_v44  ;;  %v1910_v48 = vmul.f32 0.5, %v1902_v13 }
 0x98a   :  { %v1872_v18 = vmul.f32 0.044715, %v1864_v52  ;;  %v1918_v3 = vmul.f32 %v1910_v48, %v1835_v32 }
 0x98b   :  { %v1841_v14 = vpop.f32.mrf.mxu3 }
 0x98c   :  { %v1880_v0 = vadd.f32 %v1872_v18, %v1840_v44  ;;  %v1842_v40 = vadd.f32 %v1841_v14, %v5595_v30 }
 0x98d   :  { %v4179_v46 = vpop.eup %4178 }
 0x98e   :  { %v1888_v33 = vmul.f32 0.7978846, %v1880_v0  ;;  %v1857_v24 = vmul.f32 %v1842_v40, %v1842_v40  ;;  %v1903_v28 = vadd.f32 1.0, %v4179_v46 }
 0x990   :  { %v1865_v41 = vmul.f32 %v1857_v24, %v1842_v40  ;;  %v1911_v4 = vmul.f32 0.5, %v1903_v28  ;;  %4180 = vtanh.f32 %v1888_v33 }
 0x992   :  { %v1873_v54 = vmul.f32 0.044715, %v1865_v41  ;;  %v1919_v16 = vmul.f32 %v1911_v4, %v1837_v39 }
 0x993   :  { %v1844_v9 = vpop.f32.mrf.mxu3 }
 0x994   :  { %v1881_v10 = vadd.f32 %v1873_v54, %v1842_v40  ;;  %v1926_v1 = vpack.c.bf16 %v1919_v16, %v1918_v3  ;;  %v1845_v56 = vadd.f32 %v1844_v9, %v5595_v30 }
 0x996   :  { %v1889_v47 = vmul.f32 0.7978846, %v1881_v10  ;;  %v1858_v51 = vmul.f32 %v1845_v56, %v1845_v56  ;;  %1947 = vmatmul.bf16.vlgmr.msrb.gmra.mxu0 %v1926_v1  ;;  %v4181_v35 = vpop.eup %4180 }
 0x997   :  { %v1904_v58 = vadd.f32 1.0, %v4181_v35 }
 0x998   :  { %4182 = vtanh.f32 %v1889_v47  ;;  %v1866_v27 = vmul.f32 %v1858_v51, %v1845_v56 }
 0x999   :  { %v1912_v37 = vmul.f32 0.5, %v1904_v58 }
 0x99a   :  { %v1874_v23 = vmul.f32 0.044715, %v1866_v27 }
 0x99b   :  { %v1846_v61 = vpop.f32.mrf.mxu3  ;;  %v1920_v7 = vmul.f32 %v1912_v37, %v1840_v44 }
 0x99c   :  { %v1882_v36 = vadd.f32 %v1874_v23, %v1845_v56  ;;  %v1847_v57 = vadd.f32 %v1846_v61, %v5595_v30  ;;  %v6686_v23 = vld [vmem:[#allocation5_spill] sm:$0xff] }
 0x99e   :  { %v4183_v42 = vpop.eup %4182  ;;  %v1890_v8 = vmul.f32 0.7978846, %v1882_v36  ;;  %v1859_v19 = vmul.f32 %v1847_v57, %v1847_v57 }
 0x99f   :  { %v1905_v2 = vadd.f32 1.0, %v4183_v42 }
 0x9a0   :  { %v1867_v55 = vmul.f32 %v1859_v19, %v1847_v57  ;;  %4184 = vtanh.f32 %v1890_v8  ;;  %v6687_v8 = vld [vmem:[#allocation6_spill] sm:$0xff] }
 0x9a1   :  { %v1913_v17 = vmul.f32 0.5, %v1905_v2 }
 0x9a2   :  { %v1875_v32 = vmul.f32 0.044715, %v1867_v55 }
 0x9a3   :  { %v1921_v11 = vmul.f32 %v1913_v17, %v1842_v40  ;;  %v6688_v17 = vld [vmem:[#allocation7_spill] sm:$0xff] }
 0x9a4   :  { %v1883_v62 = vadd.f32 %v1875_v32, %v1847_v57 }
 0x9a5   :  { %v1927_v26 = vpack.c.bf16 %v1921_v11, %v1920_v7 }
 0x9a6   :  { %v1891_v34 = vmul.f32 0.7978846, %v1883_v62  ;;  %v4185_v39 = vpop.eup %4184 }
 0x9a7   :  { %1952 = vmatmul.bf16.gmra.mxu0 %v1927_v26  ;;  %v1906_v60 = vadd.f32 1.0, %v4185_v39  ;;  %v6689_v26 = vld [vmem:[#allocation8_spill] sm:$0xff] }
 0x9a8   :  { %4186 = vtanh.f32 %v1891_v34 }
 0x9a9   :  { %v1914_v43 = vmul.f32 0.5, %v1906_v60 }
 0x9ab   :  { %v1922_v50 = vmul.f32 %v1914_v43, %v1845_v56 }
 0x9ae   :  { %v4187_v29 = vpop.eup %4186 }
 0x9af   :  { %v1907_v59 = vadd.f32 1.0, %v4187_v29 }
 0x9b1   :  { %v1915_v12 = vmul.f32 0.5, %v1907_v59  ;;  %v6690_v59 = vld [vmem:[#allocation9_spill] sm:$0xff] }
 0x9b3   :  { %v1923_v49 = vmul.f32 %v1915_v12, %v1847_v57 }
 0x9b5   :  { %v1928_v38 = vpack.c.bf16 %v1923_v49, %v1922_v50 }
 0x9b7   :  { %1957 = vmatmul.bf16.gmra.mxu0 %v1928_v38  ;;  %v6691_v38 = vld [vmem:[#allocation10_spill] sm:$0xff] }
 0x9ed   :  { %v1849_v15 = vpop.f32.mrf.mxu3 }
 0x9ee   :  { %v1850_v52 = vadd.f32 %v1849_v15, %v5595_v30 }
 0x9f0   :  { %v1860_v44 = vmul.f32 %v1850_v52, %v1850_v52 }
 0x9f2   :  { %v1868_v18 = vmul.f32 %v1860_v44, %v1850_v52 }
 0x9f4   :  { %v1876_v13 = vmul.f32 0.044715, %v1868_v18 }
 0x9f5   :  { %v1851_v14 = vpop.f32.mrf.mxu3 }
 0x9f6   :  { %v1884_v0 = vadd.f32 %v1876_v13, %v1850_v52  ;;  %v1852_v40 = vadd.f32 %v1851_v14, %v5595_v30  ;;  %v1938_v30 = vperm.slane %v5586_v22, 1 }
 0x9f8   :  { %v1892_v46 = vmul.f32 0.7978846, %v1884_v0  ;;  %v1861_v33 = vmul.f32 %v1852_v40, %v1852_v40 }
 0x9fa   :  { %v1869_v24 = vmul.f32 %v1861_v33, %v1852_v40  ;;  %4188 = vtanh.f32 %v1892_v46 }
 0x9fc   :  { %v1877_v48 = vmul.f32 0.044715, %v1869_v24 }
 0x9fe   :  { %v1885_v28 = vadd.f32 %v1877_v48, %v1852_v40 }
 0xa00   :  { %v1893_v41 = vmul.f32 0.7978846, %v1885_v28  ;;  %v4189_v4 = vpop.eup %4188 }
 0xa01   :  { %v1908_v54 = vadd.f32 1.0, %v4189_v4 }
 0xa02   :  { %4190 = vtanh.f32 %v1893_v41 }
 0xa03   :  { %v1916_v10 = vmul.f32 0.5, %v1908_v54 }
 0xa05   :  { %v1924_v1 = vmul.f32 %v1916_v10, %v1850_v52 }
 0xa08   :  { %v4191_v3 = vpop.eup %4190 }
 0xa09   :  { %v1909_v16 = vadd.f32 1.0, %v4191_v3  ;;  %v6693_v3 = vld [vmem:[#allocation13_spill] sm:$0xff] }
 0xa0b   :  { %v1917_v9 = vmul.f32 0.5, %v1909_v16 }
 0xa0d   :  { %v1925_v56 = vmul.f32 %v1917_v9, %v1852_v40  ;;  %v6692_v40 = vld [vmem:[#allocation11_spill] sm:$0xff] }
 0xa0f   :  { %v1929_v47 = vpack.c.bf16 %v1925_v56, %v1924_v1 }
 0xa11   :  { %1962 = vmatmul.bf16.gmra.mxu0 %v1929_v47 }
 0xa13   :  { %v1948_v51 = vpop.f32.mrf.mxu0 }
 0xa14   :  { %v1949_v35 = vadd.f32 %v1948_v51, %v1938_v30 }
 0xa16   :  { %v1968_v27 = vadd.f32 %v1949_v35, %v5384_v25 }
 0xa18   :  { %v5614_v58 = vadd.f32 %v1968_v27, %v6686_v23 }
 0xa1a   :  { %v2010_v61 = vsel %vm191_vm2, %v5614_v58, 0.0 }
 0xa1b   :  { %v1950_v36 = vpop.f32.mrf.mxu0  ;;  %2011 = vadd.xlane.f32.xlu0 %v2010_v61 }
 0xa1c   :  { %v1951_v57 = vadd.f32 %v1950_v36, %v1938_v30 }
 0xa1e   :  { %v1969_v42 = vadd.f32 %v1951_v57, %v5390_v20 }
 0xa20   :  { %v5620_v19 = vadd.f32 %v1969_v42, %v6687_v8 }
 0xa22   :  { %v2013_v2 = vsel %vm191_vm2, %v5620_v19, 0.0 }
 0xa23   :  { %2014 = vadd.xlane.f32.xlu1 %v2013_v2 }
 0xa24   :  { %v1953_v37 = vpop.f32.mrf.mxu0 }
 0xa25   :  { %v1954_v25 = vadd.f32 %v1953_v37, %v1938_v30 }
 0xa27   :  { %v1970_v55 = vadd.f32 %v1954_v25, %v5398_v5 }
 0xa29   :  { %v5626_v32 = vadd.f32 %v1970_v55, %v6688_v17 }
 0xa2b   :  { %v2016_v7 = vsel %vm191_vm2, %v5626_v32, 0.0 }
 0xa2c   :  { %v1955_v11 = vpop.f32.mrf.mxu0  ;;  %2017 = vadd.xlane.f32.xlu2 %v2016_v7 }
 0xa2d   :  { %v1956_v20 = vadd.f32 %v1955_v11, %v1938_v30 }
 0xa2f   :  { %v1971_v62 = vadd.f32 %v1956_v20, %v5404_v6  ;;  %v5705_v20 = vld [vmem:[%s6657_s4 + $0x60] sm:$0xff] }
 0xa31   :  { %v5632_v34 = vadd.f32 %v1971_v62, %v6689_v26  ;;  %v5710_v62 = vld [vmem:[%s6657_s4 + $0x70] sm:$0xff] }
 0xa33   :  { %v2019_v39 = vsel %vm191_vm2, %v5632_v34, 0.0 }
 0xa34   :  { %2020 = vadd.xlane.f32.xlu0 %v2019_v39  ;;  %v1958_v60 = vpop.f32.mrf.mxu0  ;;  %v2209_v39 = vpack.c.bf16 %v5710_v62, %v5705_v20 }
 0xa35   :  { %v1959_v5 = vadd.f32 %v1958_v60, %v1938_v30 }
 0xa36   :  { %2229 = vmatpush.bf16.msra.mxu1 %v2209_v39 }
 0xa37   :  { %v1972_v29 = vadd.f32 %v1959_v5, %v5412_v45 }
 0xa39   :  { %v5638_v43 = vadd.f32 %v1972_v29, %v6690_v59 }
 0xa3b   :  { %v2022_v12 = vsel %vm191_vm2, %v5638_v43, 0.0 }
 0xa3c   :  { %v1960_v50 = vpop.f32.mrf.mxu0  ;;  %2023 = vadd.xlane.f32.xlu1 %v2022_v12  ;;  %v5722_v12 = vld [vmem:[%s6657_s4 + $0x40] sm:$0xff] }
 0xa3d   :  { %v1961_v6 = vadd.f32 %v1960_v50, %v1938_v30  ;;  %v5727_v50 = vld [vmem:[%s6657_s4 + $0x50] sm:$0xff] }
 0xa3f   :  { %v1973_v49 = vadd.f32 %v1961_v6, %v5419_v53 }
 0xa41   :  { %v5644_v15 = vadd.f32 %v1973_v49, %v6691_v38  ;;  %v2208_v49 = vpack.c.bf16 %v5727_v50, %v5722_v12 }
 0xa43   :  { %v2025_v52 = vsel %vm191_vm2, %v5644_v15, 0.0  ;;  %2230 = vmatpush.bf16.msra.mxu1 %v2208_v49 }
 0xa44   :  { %2026 = vadd.xlane.f32.xlu2 %v2025_v52 }
 0xa8e   :  { %v1963_v44 = vpop.f32.mrf.mxu0  ;;  %v2012_v18 = vpop.xlane.xlu0 %2011 }
 0xa8f   :  { %v1964_v45 = vadd.f32 %v1963_v44, %v1938_v30  ;;  %v2034_v13 = vmul.f32 %v2012_v18, %v6684_v21 }
 0xa91   :  { %v1974_v14 = vadd.f32 %v1964_v45, %v5425_v63  ;;  %v5651_v0 = vsub.f32 %v5614_v58, %v2034_v13 }
 0xa93   :  { %v5654_v46 = vadd.f32 %v1974_v14, %v6692_v40  ;;  %v2050_v53 = vmul.f32 %v5651_v0, %v5651_v0 }
 0xa95   :  { %v2028_v33 = vsel %vm191_vm2, %v5654_v46, 0.0  ;;  %v2058_v48 = vsel %vm191_vm2, %v2050_v53, 0.0 }
 0xa96   :  { %v1965_v24 = vpop.f32.mrf.mxu0  ;;  %2029 = vadd.xlane.f32.xlu2 %v2028_v33  ;;  %v2015_v28 = vpop.xlane.xlu1 %2014  ;;  %2059 = vadd.xlane.f32.xlu0 %v2058_v48 }
 0xa97   :  { %v1966_v41 = vadd.f32 %v1965_v24, %v1938_v30  ;;  %v2035_v63 = vmul.f32 %v2015_v28, %v6684_v21 }
 0xa99   :  { %v1975_v4 = vadd.f32 %v1966_v41, %v5444_v31  ;;  %v5664_v54 = vsub.f32 %v5620_v19, %v2035_v63 }
 0xa9b   :  { %v5667_v16 = vadd.f32 %v1975_v4, %v6693_v3  ;;  %v2051_v10 = vmul.f32 %v5664_v54, %v5664_v54 }
 0xa9d   :  { %6694 = vst [vmem:[#allocation14_spill] sm:$0xff] %v5667_v16  ;;  %v2031_v9 = vsel %vm191_vm2, %v5667_v16, 0.0  ;;  %v2061_v1 = vsel %vm191_vm2, %v2051_v10, 0.0 }
 0xa9e   :  { %2062 = vadd.xlane.f32.xlu1 %v2061_v1  ;;  %2032 = vadd.xlane.f32.xlu0 %v2031_v9 }
 0xa9f   :  { %v2018_v56 = vpop.xlane.xlu2 %2017 }
 0xaa0   :  { %v2036_v47 = vmul.f32 %v2018_v56, %v6684_v21 }
 0xaa2   :  { %v5676_v31 = vsub.f32 %v5626_v32, %v2036_v47 }
 0xaa4   :  { %v2052_v30 = vmul.f32 %v5676_v31, %v5676_v31 }
 0xaa6   :  { %v2064_v51 = vsel %vm191_vm2, %v2052_v30, 0.0 }
 0xaa7   :  { %2065 = vadd.xlane.f32.xlu1 %v2064_v51  ;;  %v2021_v35 = vpop.xlane.xlu0 %2020 }
 0xaa8   :  { %v2037_v27 = vmul.f32 %v2021_v35, %v6684_v21 }
 0xaaa   :  { %v5683_v23 = vsub.f32 %v5632_v34, %v2037_v27 }
 0xaac   :  { %v2053_v61 = vmul.f32 %v5683_v23, %v5683_v23 }
 0xaae   :  { %v2067_v36 = vsel %vm191_vm2, %v2053_v61, 0.0 }
 0xaaf   :  { %2068 = vadd.xlane.f32.xlu2 %v2067_v36  ;;  %v2024_v57 = vpop.xlane.xlu1 %2023 }
 0xab0   :  { %v2038_v42 = vmul.f32 %v2024_v57, %v6684_v21  ;;  %v5745_v57 = vperm.slane %v5586_v22, 2 }
 0xab2   :  { %v5690_v8 = vsub.f32 %v5638_v43, %v2038_v42 }
 0xab4   :  { %v2054_v2 = vmul.f32 %v5690_v8, %v5690_v8 }
 0xab6   :  { %v2070_v37 = vsel %vm191_vm2, %v2054_v2, 0.0 }
 0xab7   :  { %v2027_v25 = vpop.xlane.xlu2 %2026  ;;  %2071 = vadd.xlane.f32.xlu0 %v2070_v37 }
 0xab8   :  { %v2039_v55 = vmul.f32 %v2027_v25, %v6684_v21 }
 0xaba   :  { %v5697_v17 = vsub.f32 %v5644_v15, %v2039_v55 }
 0xabc   :  { %v2055_v7 = vmul.f32 %v5697_v17, %v5697_v17 }
 0xabe   :  { %v2073_v11 = vsel %vm191_vm2, %v2055_v7, 0.0 }
 0xabf   :  { %2074 = vadd.xlane.f32.xlu1 %v2073_v11  ;;  %v5749_v11 = vperm.slane %v5586_v22, 3 }
 0xb09   :  { %v2030_v26 = vpop.xlane.xlu2 %2029  ;;  %v2060_v5 = vpop.xlane.xlu0 %2059 }
 0xb0a   :  { %v2040_v60 = vmul.f32 %v2030_v26, %v6684_v21  ;;  %v2082_v29 = vmul.f32 %v2060_v5, %v6684_v21 }
 0xb0c   :  { %v5717_v59 = vsub.f32 %v5654_v46, %v2040_v60  ;;  %v2090_v6 = vadd.f32 1e-05, %v2082_v29 }
 0xb0e   :  { %v2056_v38 = vmul.f32 %v5717_v59, %v5717_v59  ;;  %4192 = vrsqrt.f32 %v2090_v6  ;;  %vm2104_vm4 = vweird.f32 %v2090_v6 }
 0xb10   :  { %v2076_v52 = vsel %vm191_vm2, %v2056_v38, 0.0 }
 0xb11   :  { %2077 = vadd.xlane.f32.xlu2 %v2076_v52  ;;  %v2063_v44 = vpop.xlane.xlu1 %2062  ;;  %v2033_v45 = vpop.xlane.xlu0 %2032 }
 0xb12   :  { %v2083_v18 = vmul.f32 %v2063_v44, %v6684_v21  ;;  %v2041_v13 = vmul.f32 %v2033_v45, %v6684_v21 }
 0xb14   :  { %v4193_v14 = vpop.eup %4192  ;;  %v2091_v40 = vadd.f32 1e-05, %v2083_v18  ;;  %v5737_v53 = vsub.f32 %v5667_v16, %v2041_v13 }
 0xb15   :  { %v2099_v33 = vmul.f32 %v4193_v14, %v2090_v6  ;;  %vm2105_vm3 = vweird.f32 %v4193_v14 }
 0xb16   :  { %4194 = vrsqrt.f32 %v2091_v40  ;;  %v2057_v24 = vmul.f32 %v5737_v53, %v5737_v53  ;;  %vm2106_vm5 = vmor %vm2104_vm4, %vm2105_vm3  ;;  %vm2114_vm7 = vweird.f32 %v2091_v40 }
 0xb17   :  { %v2100_v48 = vmul.f32 %v4193_v14, %v2099_v33 }
 0xb18   :  { %v2079_v28 = vsel %vm191_vm2, %v2057_v24, 0.0 }
 0xb19   :  { %v2101_v41 = vmul.f32 0.5, %v2100_v48  ;;  %2080 = vadd.xlane.f32.xlu0 %v2079_v28 }
 0xb1a   :  { %v2066_v63 = vpop.xlane.xlu1 %2065 }
 0xb1b   :  { %v2084_v4 = vmul.f32 %v2066_v63, %v6684_v21  ;;  %v2102_v3 = vsub.f32 1.5, %v2101_v41 }
 0xb1c   :  { %v4195_v10 = vpop.eup %4194 }
 0xb1d   :  { %v2092_v9 = vadd.f32 1e-05, %v2084_v4  ;;  %v2103_v1 = vmul.f32 %v4193_v14, %v2102_v3  ;;  %v2109_v56 = vmul.f32 %v4195_v10, %v2091_v40  ;;  %vm2115_vm6 = vweird.f32 %v4195_v10 }
 0xb1e   :  { %vm2116_vm8 = vmor %vm2114_vm7, %vm2115_vm6 }
 0xb1f   :  { %4196 = vrsqrt.f32 %v2092_v9  ;;  %v2110_v47 = vmul.f32 %v4195_v10, %v2109_v56  ;;  %v2107_v30 = vsel %vm2106_vm5, %v4193_v14, %v2103_v1  ;;  %vm2124_vm10 = vweird.f32 %v2092_v9 }
 0xb20   :  { %v2178_v42 = vmul.f32 %v2107_v30, %v5651_v0 }
 0xb21   :  { %v2111_v51 = vmul.f32 0.5, %v2110_v47 }
 0xb22   :  { %v2069_v35 = vpop.xlane.xlu2 %2068  ;;  %v2187_v26 = vmul.f32 %v5745_v57, %v2178_v42 }
 0xb23   :  { %v2085_v27 = vmul.f32 %v2069_v35, %v6684_v21  ;;  %v2112_v61 = vsub.f32 1.5, %v2111_v51 }
 0xb24   :  { %v2196_v38 = vadd.f32 %v5749_v11, %v2187_v26 }
 0xb25   :  { %v4197_v36 = vpop.eup %4196  ;;  %v2093_v2 = vadd.f32 1e-05, %v2085_v27  ;;  %v2113_v37 = vmul.f32 %v4195_v10, %v2112_v61 }
 0xb26   :  { %v2119_v25 = vmul.f32 %v4197_v36, %v2092_v9  ;;  %vm2125_vm9 = vweird.f32 %v4197_v36 }
 0xb27   :  { %4198 = vrsqrt.f32 %v2093_v2  ;;  %v2117_v55 = vsel %vm2116_vm8, %v4195_v10, %v2113_v37  ;;  %vm2126_vm11 = vmor %vm2124_vm10, %vm2125_vm9  ;;  %vm2134_vm13 = vweird.f32 %v2093_v2 }
 0xb28   :  { %v2120_v7 = vmul.f32 %v4197_v36, %v2119_v25  ;;  %v2179_v39 = vmul.f32 %v2117_v55, %v5664_v54 }
 0xb2a   :  { %v2121_v60 = vmul.f32 0.5, %v2120_v7  ;;  %v2188_v5 = vmul.f32 %v5745_v57, %v2179_v39  ;;  %v2072_v29 = vpop.xlane.xlu0 %2071 }
 0xb2b   :  { %v2086_v6 = vmul.f32 %v2072_v29, %v6684_v21 }
 0xb2c   :  { %v2122_v0 = vsub.f32 1.5, %v2121_v60  ;;  %v2197_v52 = vadd.f32 %v5749_v11, %v2188_v5 }
 0xb2d   :  { %v4199_v49 = vpop.eup %4198  ;;  %v2094_v18 = vadd.f32 1e-05, %v2086_v6 }
 0xb2e   :  { %v2123_v44 = vmul.f32 %v4197_v36, %v2122_v0  ;;  %v2129_v45 = vmul.f32 %v4199_v49, %v2093_v2  ;;  %v2204_v13 = vpack.c.bf16 %v2197_v52, %v2196_v38  ;;  %vm2135_vm12 = vweird.f32 %v4199_v49 }
 0xb2f   :  { %4200 = vrsqrt.f32 %v2094_v18  ;;  %vm2136_vm14 = vmor %vm2134_vm13, %vm2135_vm12  ;;  %vm2144_vm4 = vweird.f32 %v2094_v18 }
 0xb30   :  { %v2130_v14 = vmul.f32 %v4199_v49, %v2129_v45  ;;  %3924 = vmatmul.msk.bf16.vlgmr.msra.gmra.mxu1 %vm191_vm2, %v2204_v13  ;;  %v2127_v54 = vsel %vm2126_vm11, %v4197_v36, %v2123_v44 }
 0xb31   :  { %v2180_v28 = vmul.f32 %v2127_v54, %v5676_v31 }
 0xb32   :  { %v2131_v40 = vmul.f32 0.5, %v2130_v14  ;;  %v2075_v33 = vpop.xlane.xlu1 %2074 }
 0xb33   :  { %v2087_v48 = vmul.f32 %v2075_v33, %v6684_v21  ;;  %v2189_v56 = vmul.f32 %v5745_v57, %v2180_v28 }
 0xb34   :  { %v2132_v24 = vsub.f32 1.5, %v2131_v40 }
 0xb35   :  { %v4201_v41 = vpop.eup %4200  ;;  %v2095_v4 = vadd.f32 1e-05, %v2087_v48  ;;  %v2198_v35 = vadd.f32 %v5749_v11, %v2189_v56 }
 0xb36   :  { %v2133_v63 = vmul.f32 %v4199_v49, %v2132_v24  ;;  %v2139_v3 = vmul.f32 %v4201_v41, %v2094_v18  ;;  %vm2145_vm3 = vweird.f32 %v4201_v41 }
 0xb37   :  { %4202 = vrsqrt.f32 %v2095_v4  ;;  %vm2146_vm5 = vmor %vm2144_vm4, %vm2145_vm3  ;;  %vm2154_vm7 = vweird.f32 %v2095_v4 }
 0xb38   :  { %v2137_v10 = vsel %vm2136_vm14, %v4199_v49, %v2133_v63  ;;  %v2140_v1 = vmul.f32 %v4201_v41, %v2139_v3 }
 0xb39   :  { %v2181_v9 = vmul.f32 %v2137_v10, %v5683_v23 }
 0xb3a   :  { %v2141_v47 = vmul.f32 0.5, %v2140_v1 }
 0xb3b   :  { %v2190_v30 = vmul.f32 %v5745_v57, %v2181_v9 }
 0xb3c   :  { %v2142_v51 = vsub.f32 1.5, %v2141_v47 }
 0xb3d   :  { %v2199_v31 = vadd.f32 %v5749_v11, %v2190_v30  ;;  %v4203_v27 = vpop.eup %4202 }
 0xb3e   :  { %v2143_v61 = vmul.f32 %v4201_v41, %v2142_v51  ;;  %v2149_v36 = vmul.f32 %v4203_v27, %v2095_v4  ;;  %vm2155_vm6 = vweird.f32 %v4203_v27 }
 0xb3f   :  { %v2205_v42 = vpack.c.bf16 %v2199_v31, %v2198_v35  ;;  %vm2156_vm8 = vmor %vm2154_vm7, %vm2155_vm6 }
 0xb40   :  { %v2150_v2 = vmul.f32 %v4203_v27, %v2149_v36  ;;  %v2147_v23 = vsel %vm2146_vm5, %v4201_v41, %v2143_v61 }
 0xb41   :  { %3925 = vmatmul.msk.bf16.gmra.mxu1 %vm191_vm2, %v2205_v42  ;;  %v2182_v55 = vmul.f32 %v2147_v23, %v5690_v8 }
 0xb42   :  { %v2151_v37 = vmul.f32 0.5, %v2150_v2 }
 0xb43   :  { %v2191_v60 = vmul.f32 %v5745_v57, %v2182_v55 }
 0xb44   :  { %v2152_v25 = vsub.f32 1.5, %v2151_v37 }
 0xb45   :  { %v2200_v29 = vadd.f32 %v5749_v11, %v2191_v60  ;;  %v2421_v60 = vpack.c.bf16 %v5722_v12, %v5722_v12 }
 0xb46   :  { %v2153_v7 = vmul.f32 %v4203_v27, %v2152_v25 }
 0xb48   :  { %v2157_v26 = vsel %vm2156_vm8, %v4203_v27, %v2153_v7 }
 0xb49   :  { %v2183_v39 = vmul.f32 %v2157_v26, %v5697_v17 }
 0xb4b   :  { %v2192_v5 = vmul.f32 %v5745_v57, %v2183_v39 }
 0xb4d   :  { %v2201_v0 = vadd.f32 %v5749_v11, %v2192_v5 }
 0xb4f   :  { %v2206_v6 = vpack.c.bf16 %v2201_v0, %v2200_v29 }
 0xb51   :  { %3926 = vmatmul.msk.bf16.gmra.mxu1 %vm191_vm2, %v2206_v6 }
 0xb84   :  { %v2078_v49 = vpop.xlane.xlu2 %2077 }
 0xb85   :  { %v2088_v8 = vmul.f32 %v2078_v49, %v6684_v21 }
 0xb87   :  { %v2096_v38 = vadd.f32 1e-05, %v2088_v8 }
 0xb89   :  { %4204 = vrsqrt.f32 %v2096_v38  ;;  %vm2164_vm10 = vweird.f32 %v2096_v38 }
 0xb8c   :  { %v2081_v52 = vpop.xlane.xlu0 %2080 }
 0xb8d   :  { %v2089_v44 = vmul.f32 %v2081_v52, %v6684_v21 }
 0xb8f   :  { %v4205_v17 = vpop.eup %4204  ;;  %v2097_v18 = vadd.f32 1e-05, %v2089_v44 }
 0xb90   :  { %v2159_v45 = vmul.f32 %v4205_v17, %v2096_v38  ;;  %vm2165_vm9 = vweird.f32 %v4205_v17 }
 0xb91   :  { %4206 = vrsqrt.f32 %v2097_v18  ;;  %vm2166_vm11 = vmor %vm2164_vm10, %vm2165_vm9  ;;  %vm2174_vm13 = vweird.f32 %v2097_v18 }
 0xb92   :  { %v2160_v13 = vmul.f32 %v4205_v17, %v2159_v45 }
 0xb94   :  { %v2161_v14 = vmul.f32 0.5, %v2160_v13 }
 0xb96   :  { %v2162_v54 = vsub.f32 1.5, %v2161_v14 }
 0xb97   :  { %v4207_v40 = vpop.eup %4206 }
 0xb98   :  { %v2163_v33 = vmul.f32 %v4205_v17, %v2162_v54  ;;  %v2169_v24 = vmul.f32 %v4207_v40, %v2097_v18  ;;  %vm2175_vm12 = vweird.f32 %v4207_v40 }
 0xb99   :  { %vm2176_vm14 = vmor %vm2174_vm13, %vm2175_vm12 }
 0xb9a   :  { %v2170_v48 = vmul.f32 %v4207_v40, %v2169_v24  ;;  %v2167_v28 = vsel %vm2166_vm11, %v4205_v17, %v2163_v33 }
 0xb9b   :  { %v2184_v4 = vmul.f32 %v2167_v28, %v5717_v59  ;;  %v2210_v59 = vperm.slane %v5586_v22, 4 }
 0xb9c   :  { %v2171_v41 = vmul.f32 0.5, %v2170_v48 }
 0xb9d   :  { %v2193_v1 = vmul.f32 %v5745_v57, %v2184_v4 }
 0xb9e   :  { %v2172_v63 = vsub.f32 1.5, %v2171_v41 }
 0xb9f   :  { %v2202_v47 = vadd.f32 %v5749_v11, %v2193_v1 }
 0xba0   :  { %v2173_v3 = vmul.f32 %v4207_v40, %v2172_v63 }
 0xba2   :  { %v2177_v10 = vsel %vm2176_vm14, %v4207_v40, %v2173_v3 }
 0xba3   :  { %v2185_v9 = vmul.f32 %v2177_v10, %v5737_v53 }
 0xba5   :  { %v2194_v56 = vmul.f32 %v5745_v57, %v2185_v9 }
 0xba7   :  { %v2203_v30 = vadd.f32 %v5749_v11, %v2194_v56 }
 0xba9   :  { %v2207_v51 = vpack.c.bf16 %v2203_v30, %v2202_v47 }
 0xbab   :  { %3927 = vmatmul.msk.bf16.gmra.mxu1 %vm191_vm2, %v2207_v51 }
 0xbad   :  { %v2232_v35 = vpop.f32.mrf.mxu1 }
 0xbae   :  { %v2233_v31 = vadd.f32 %v2232_v35, %v2210_v59 }
 0xbb0   :  { %v2252_v36 = vmul.f32 0.35355338, %v2233_v31 }
 0xbb5   :  { %v2234_v27 = vpop.f32.mrf.mxu1 }
 0xbb6   :  { %v2235_v61 = vadd.f32 %v2234_v27, %v2210_v59 }
 0xbb8   :  { %v2253_v42 = vmul.f32 0.35355338, %v2235_v61  ;;  %v5789_v55 = vpack.c.bf16 %v2235_v61, %v2233_v31 }
 0xbba   :  { %v5783_v53 = vpack.c.bf16 %v2253_v42, %v2252_v36 }
 0xbbe   :  { %v2237_v2 = vpop.f32.mrf.mxu1 }
 0xbbf   :  { %v2238_v57 = vadd.f32 %v2237_v2, %v2210_v59 }
 0xbc1   :  { %v2254_v6 = vmul.f32 0.35355338, %v2238_v57 }
 0xbc6   :  { %v2239_v23 = vpop.f32.mrf.mxu1 }
 0xbc7   :  { %v2240_v37 = vadd.f32 %v2239_v23, %v2210_v59 }
 0xbc9   :  { %v5785_v25 = vpack.c.bf16 %v2240_v37, %v2238_v57  ;;  %v2255_v12 = vmul.f32 0.35355338, %v2240_v37 }
 0xbcb   :  { %2274 = vrot.lane.b32.xlu0 %v5785_v25, %s4413_s26  ;;  %v5814_v49 = vpack.c.bf16 %v2255_v12, %v2254_v6  ;;  %v5873_v6 = vld [vmem:[%s6655_s2] sm:$0xff] }
 0xbce   :  { %v2242_v11 = vpop.f32.mrf.mxu1 }
 0xbcf   :  { %v2243_v7 = vadd.f32 %v2242_v11, %v2210_v59 }
 0xbd1   :  { %v2256_v29 = vmul.f32 0.35355338, %v2243_v7 }
 0xbd3   :  { %2272 = vrot.lane.b32.xlu0 %v5789_v55, %s4413_s26 }
 0xbd6   :  { %v2244_v22 = vpop.f32.mrf.mxu1 }
 0xbd7   :  { %v2245_v26 = vadd.f32 %v2244_v22, %v2210_v59 }
 0xbd9   :  { %v5793_v39 = vpack.c.bf16 %v2245_v26, %v2243_v7  ;;  %v2257_v5 = vmul.f32 0.35355338, %v2245_v26 }
 0xbdb   :  { %2424 = vrot.lane.b32.xlu0 %v5785_v25, %s4414_s27  ;;  %2276 = vrot.lane.b32.xlu2 %v5793_v39, %s4413_s26  ;;  %v5804_v0 = vpack.c.bf16 %v2257_v5, %v2256_v29 }
 0xbe3   :  { %2499 = vrot.lane.b32.xlu0 %v5785_v25, %s4415_s3  ;;  %2431 = vrot.lane.b32.xlu2 %v2421_v60, %s4417_s29 }
 0xbeb   :  { %2493 = vrot.lane.b32.xlu0 %v5804_v0, %s4419_s8  ;;  %2426 = vrot.lane.b32.xlu2 %v5793_v39, %s4414_s27 }
 0xbf3   :  { %2501 = vrot.lane.b32.xlu2 %v5793_v39, %s4415_s3 }
 0xbfb   :  { %2497 = vrot.lane.b32.xlu2 %v5789_v55, %s4415_s3 }
 0xc03   :  { %2491 = vrot.lane.b32.xlu2 %v5814_v49, %s4419_s8 }
 0xc28   :  { %v2247_v8 = vpop.f32.mrf.mxu1 }
 0xc29   :  { %v2248_v52 = vadd.f32 %v2247_v8, %v2210_v59 }
 0xc2b   :  { %v2258_v54 = vmul.f32 0.35355338, %v2248_v52 }
 0xc30   :  { %v2249_v38 = vpop.f32.mrf.mxu1 }
 0xc31   :  { %v2250_v44 = vadd.f32 %v2249_v38, %v2210_v59 }
 0xc33   :  { %v5818_v17 = vpack.c.bf16 %v2250_v44, %v2248_v52  ;;  %v2259_v14 = vmul.f32 0.35355338, %v2250_v44 }
 0xc35   :  { %v2277_v45 = vpop.permute.xlu2 %2276  ;;  %3076 = vrot.lane.b32.xlu2 %v5818_v17, %s4418_s30  ;;  %2278 = vrot.lane.b32.xlu1 %v5818_v17, %s4413_s26  ;;  %v5839_v40 = vpack.c.bf16 %v2259_v14, %v2258_v54 }
 0xc36   :  { %v2299_v41 = vsel %vm66_vm1, %v2277_v45, 0  ;;  %v5880_v45 = vld [vmem:[%s6655_s2 + $0x8] sm:$0xff] }
 0xc3d   :  { %v2432_v18 = vpop.permute.xlu2 %2431  ;;  %2422 = vrot.lane.b32.xlu1 %v5789_v55, %s4414_s27  ;;  %v2275_v48 = vpop.permute.xlu0 %2274 }
 0xc3e   :  { %v2446_v13 = vsel %vm79_vm0, %v2432_v18, 0  ;;  %v2296_v3 = vsel %vm66_vm1, %v2275_v48, 0 }
 0xc3f   :  { %2455 = vmatpush.bf16.msra.mxu3 %v2446_v13 }
 0xc45   :  { %2428 = vrot.lane.b32.xlu1 %v5818_v17, %s4414_s27  ;;  %v2273_v63 = vpop.permute.xlu0 %2272  ;;  %v2427_v47 = vpop.permute.xlu2 %2426 }
 0xc46   :  { %v2293_v1 = vsel %vm66_vm1, %v2273_v63, 0  ;;  %v5894_v63 = vld [vmem:[%s6655_s2 + $0x18] sm:$0xff] }
 0xc4d   :  { %2489 = vrot.lane.b32.xlu1 %v5783_v53, %s4419_s8  ;;  %v2425_v10 = vpop.permute.xlu0 %2424  ;;  %v2502_v59 = vpop.permute.xlu2 %2501 }
 0xc4e   :  { %v2524_v31 = vsel %vm66_vm1, %v2502_v59, 0 }
 0xc55   :  { %2804 = vrot.lane.b32.xlu1 %v5793_v39, %s4416_s28  ;;  %v2500_v27 = vpop.permute.xlu0 %2499  ;;  %v2498_v36 = vpop.permute.xlu2 %2497 }
 0xc56   :  { %v2521_v61 = vsel %vm66_vm1, %v2500_v27, 0  ;;  %v2518_v2 = vsel %vm66_vm1, %v2498_v36, 0 }
 0xc5d   :  { %2802 = vrot.lane.b32.xlu1 %v5785_v25, %s4416_s28  ;;  %v2492_v11 = vpop.permute.xlu2 %2491  ;;  %v2494_v22 = vpop.permute.xlu0 %2493 }
 0xc65   :  { %2503 = vrot.lane.b32.xlu1 %v5818_v17, %s4415_s3 }
 0xc6d   :  { %2806 = vrot.lane.b32.xlu1 %v5818_v17, %s4416_s28 }
 0xc75   :  { %2495 = vrot.lane.b32.xlu1 %v5839_v40, %s4419_s8 }
 0xc8f   :  { %v3077_v36 = vpop.permute.xlu2 %3076 }
 0xca7   :  { %v2279_v33 = vpop.permute.xlu1 %2278 }
 0xca8   :  { %v2302_v24 = vsel %vm66_vm1, %v2279_v33, 0  ;;  %v5887_v33 = vld [vmem:[%s6655_s2 + $0x10] sm:$0xff] }
 0xca9   :  { %2308 = vmatpush.bf16.xpose.msra.mxu2 %v2302_v24 }
 0xcaf   :  { %v2423_v28 = vpop.permute.xlu1 %2422 }
 0xcb0   :  { %3932 = vmatmul.msk.bf16.vlgmr.msra.gmra.mxu3 %vm66_vm1, %v2423_v28 }
 0xcb1   :  { %2309 = vmatpush.bf16.xpose.msra.mxu2 %v2299_v41 }
 0xcb7   :  { %v2429_v4 = vpop.permute.xlu1 %2428 }
 0xcb9   :  { %2310 = vmatpush.bf16.xpose.msra.mxu2 %v2296_v3 }
 0xcbf   :  { %v2490_v9 = vpop.permute.xlu1 %2489 }
 0xcc0   :  { %3933 = vmatmul.msk.bf16.gmra.mxu3 %vm66_vm1, %v2425_v10 }
 0xcc1   :  { %2311 = vmatpush.bf16.xpose.msra.mxu2 %v2293_v1  ;;  %v5901_v1 = vld [vmem:[%s6655_s2 + $0x20] sm:$0xff] }
 0xcc7   :  { %v2805_v56 = vpop.permute.xlu1 %2804 }
 0xcc8   :  { %3928 = vmatmul.msk.bf16.vlgmr.msra.gmra.mxu2 %vm66_vm1, %v5783_v53  ;;  %v2827_v57 = vsel %vm66_vm1, %v2805_v56, 0 }
 0xccf   :  { %v2803_v30 = vpop.permute.xlu1 %2802 }
 0xcd0   :  { %3934 = vmatmul.msk.bf16.gmra.mxu3 %vm66_vm1, %v2427_v47  ;;  %v2824_v37 = vsel %vm66_vm1, %v2803_v30, 0 }
 0xcd7   :  { %v2504_v51 = vpop.permute.xlu1 %2503 }
 0xcd8   :  { %v2527_v35 = vsel %vm66_vm1, %v2504_v51, 0  ;;  %3929 = vmatmul.msk.bf16.gmra.mxu2 %vm66_vm1, %v5814_v49 }
 0xcd9   :  { %2533 = vmatpush.bf16.xpose.msra.mxu0 %v2527_v35 }
 0xcdf   :  { %v2807_v42 = vpop.permute.xlu1 %2806 }
 0xce0   :  { %3935 = vmatmul.msk.bf16.gmra.mxu3 %vm66_vm1, %v2429_v4  ;;  %v2830_v23 = vsel %vm66_vm1, %v2807_v42, 0 }
 0xce1   :  { %2534 = vmatpush.bf16.xpose.msra.mxu0 %v2524_v31  ;;  %v5911_v31 = vld [vmem:[%s6655_s2 + $0x28] sm:$0xff] }
 0xce7   :  { %v2496_v7 = vpop.permute.xlu1 %2495 }
 0xce8   :  { %3930 = vmatmul.msk.bf16.gmra.mxu2 %vm66_vm1, %v5804_v0 }
 0xce9   :  { %2535 = vmatpush.bf16.xpose.msra.mxu0 %v2521_v61 }
 0xcf1   :  { %2536 = vmatpush.bf16.xpose.msra.mxu0 %v2518_v2  ;;  %v3100_v2 = vsel %vm66_vm1, %v3077_v36, 0 }
 0xcf8   :  { %3931 = vmatmul.msk.bf16.gmra.mxu2 %vm66_vm1, %v5839_v40  ;;  %3936 = vmatmul.msk.bf16.vlgmr.msra.gmra.mxu0 %vm66_vm1, %v2490_v9 }
 0xcf9   :  { %2836 = vmatpush.bf16.xpose.msrb.mxu0 %v2830_v23 }
 0xd01   :  { %2837 = vmatpush.bf16.xpose.msrb.mxu0 %v2827_v57  ;;  %v5919_v57 = vld [vmem:[%s6655_s2 + $0x30] sm:$0xff] }
 0xd08   :  { %3937 = vmatmul.msk.bf16.gmra.mxu0 %vm66_vm1, %v2492_v11 }
 0xd09   :  { %2838 = vmatpush.bf16.xpose.msrb.mxu0 %v2824_v37 }
 0xd18   :  { %3938 = vmatmul.msk.bf16.gmra.mxu0 %vm66_vm1, %v2494_v22 }
 0xd28   :  { %3939 = vmatmul.msk.bf16.gmra.mxu0 %vm66_vm1, %v2496_v7  ;;  %v5926_v7 = vld [vmem:[%s6655_s2 + $0x38] sm:$0xff] }
 0xd33   :  { %v2457_v26 = vpop.f32.mrf.mxu3 }
 0xd3b   :  { %v2459_v60 = vpop.f32.mrf.mxu3 }
 0xd3c   :  { %v2481_v42 = vpack.c.bf16 %v2459_v60, %v2457_v26 }
 0xd43   :  { %v2462_v5 = vpop.f32.mrf.mxu3 }
 0xd4b   :  { %v2313_v29 = vpop.f32.mrf.mxu2  ;;  %v2464_v12 = vpop.f32.mrf.mxu3 }
 0xd4c   :  { %v2314_v8 = vadd.f32 %v5873_v6, %v2313_v29  ;;  %v2482_v59 = vpack.c.bf16 %v2464_v12, %v2462_v5 }
 0xd4e   :  { %v2333_v38 = vsel %vm595_vm15, %v2314_v8, -inf }
 0xd4f   :  { %2334 = vmax.xlane.f32.xlu0 %v2333_v38 }
 0xd53   :  { %v2315_v52 = vpop.f32.mrf.mxu2  ;;  %v2467_v44 = vpop.f32.mrf.mxu3 }
 0xd54   :  { %v2316_v18 = vadd.f32 %v5880_v45, %v2315_v52 }
 0xd56   :  { %v2336_v13 = vsel %vm595_vm15, %v2316_v18, -inf }
 0xd57   :  { %2337 = vmax.xlane.f32.xlu2 %v2336_v13 }
 0xd5b   :  { %v2318_v14 = vpop.f32.mrf.mxu2  ;;  %v2469_v54 = vpop.f32.mrf.mxu3 }
 0xd5c   :  { %v2319_v24 = vadd.f32 %v5887_v33, %v2318_v14  ;;  %v2483_v51 = vpack.c.bf16 %v2469_v54, %v2467_v44 }
 0xd5e   :  { %v2339_v48 = vsel %vm595_vm15, %v2319_v24, -inf }
 0xd5f   :  { %2340 = vmax.xlane.f32.xlu1 %v2339_v48 }
 0xd63   :  { %v2320_v28 = vpop.f32.mrf.mxu2  ;;  %v2472_v41 = vpop.f32.mrf.mxu3 }
 0xd64   :  { %v2321_v4 = vadd.f32 %v5894_v63, %v2320_v28 }
 0xd66   :  { %v2342_v3 = vsel %vm595_vm15, %v2321_v4, -inf }
 0xd67   :  { %2343 = vmax.xlane.f32.xlu0 %v2342_v3 }
 0xd6b   :  { %v2323_v10 = vpop.f32.mrf.mxu2  ;;  %v2474_v9 = vpop.f32.mrf.mxu3 }
 0xd6c   :  { %v5904_v56 = vadd.f32 %v5901_v1, %v2323_v10  ;;  %v2484_v47 = vpack.c.bf16 %v2474_v9, %v2472_v41 }
 0xd6e   :  { %2767 = vmatpush.bf16.msrb.mxu3 %v2484_v47  ;;  %v2345_v30 = vsel %vm595_vm15, %v5904_v56, -inf }
 0xd6f   :  { %2346 = vmax.xlane.f32.xlu1 %v2345_v30 }
 0xd72   :  { %2768 = vmatpush.bf16.msrb.mxu3 %v2483_v51  ;;  %v2646_v51 = vpack.c.bf16 %v5727_v50, %v5727_v50 }
 0xd73   :  { %v2325_v35 = vpop.f32.mrf.mxu2 }
 0xd74   :  { %v2326_v27 = vadd.f32 %v5911_v31, %v2325_v35 }
 0xd76   :  { %2769 = vmatpush.bf16.msrb.mxu3 %v2482_v59  ;;  %v2348_v61 = vsel %vm595_vm15, %v2326_v27, -inf }
 0xd77   :  { %2349 = vmax.xlane.f32.xlu1 %v2348_v61 }
 0xd7a   :  { %2770 = vmatpush.bf16.msrb.mxu3 %v2481_v42 }
 0xd7b   :  { %v2328_v23 = vpop.f32.mrf.mxu2 }
 0xd7c   :  { %v2329_v37 = vadd.f32 %v5919_v57, %v2328_v23 }
 0xd7e   :  { %3106 = vmatpush.bf16.xpose.msra.mxu3 %v3100_v2  ;;  %v2351_v11 = vsel %vm595_vm15, %v2329_v37, -inf }
 0xd7f   :  { %2352 = vmax.xlane.f32.xlu0 %v2351_v11 }
 0xd83   :  { %v2330_v22 = vpop.f32.mrf.mxu2 }
 0xd84   :  { %v5929_v26 = vadd.f32 %v5926_v7, %v2330_v22 }
 0xd86   :  { %v2354_v60 = vsel %vm595_vm15, %v5929_v26, -inf }
 0xd87   :  { %2355 = vmax.xlane.f32.xlu2 %v2354_v60 }
 0xd93   :  { %2800 = vrot.lane.b32.xlu0 %v5789_v55, %s4416_s28 }
 0xd9b   :  { %3072 = vrot.lane.b32.xlu0 %v5785_v25, %s4418_s30 }
 0xd9f   :  { %2647 = vrot.lane.b32.xlu2 %v5789_v55, %s4420_s9 }
 0xda7   :  { %3074 = vrot.lane.b32.xlu2 %v5793_v39, %s4418_s30 }
 0xdaf   :  { %2792 = vrot.lane.b32.xlu2 %v5783_v53, %s4421_s0 }
 0xdc2   :  { %v2335_v5 = vpop.xlane.xlu0 %2334 }
 0xdc3   :  { %v2357_v29 = vsub.f32 %v2314_v8, %v2335_v5 }
 0xdc5   :  { %v2365_v12 = vmul.f32 1.442695, %v2357_v29 }
 0xdc7   :  { %4208 = vpow2.f32 %v2365_v12 }
 0xdca   :  { %v2338_v38 = vpop.xlane.xlu2 %2337 }
 0xdcb   :  { %v2358_v52 = vsub.f32 %v2316_v18, %v2338_v38 }
 0xdcd   :  { %v5943_v44 = vpop.eup %4208  ;;  %v2367_v13 = vmul.f32 1.442695, %v2358_v52 }
 0xdce   :  { %v2381_v14 = vsel %vm595_vm15, %v5943_v44, 0.0 }
 0xdcf   :  { %4210 = vpow2.f32 %v2367_v13  ;;  %2382 = vadd.xlane.f32.xlu1 %v2381_v14 }
 0xdd2   :  { %v2341_v54 = vpop.xlane.xlu1 %2340 }
 0xdd3   :  { %v2359_v48 = vsub.f32 %v2319_v24, %v2341_v54 }
 0xdd5   :  { %v5947_v28 = vpop.eup %4210  ;;  %v2369_v41 = vmul.f32 1.442695, %v2359_v48 }
 0xdd6   :  { %v2384_v8 = vsel %vm595_vm15, %v5947_v28, 0.0 }
 0xdd7   :  { %4212 = vpow2.f32 %v2369_v41  ;;  %2385 = vadd.xlane.f32.xlu0 %v2384_v8 }
 0xdda   :  { %v2344_v3 = vpop.xlane.xlu0 %2343 }
 0xddb   :  { %v2360_v18 = vsub.f32 %v2321_v4, %v2344_v3  ;;  %v2538_v3 = vpop.f32.mrf.mxu0 }
 0xddd   :  { %v5951_v10 = vpop.eup %4212  ;;  %v2371_v9 = vmul.f32 1.442695, %v2360_v18 }
 0xdde   :  { %v2387_v47 = vsel %vm595_vm15, %v5951_v10, 0.0 }
 0xddf   :  { %4214 = vpow2.f32 %v2371_v9  ;;  %2388 = vadd.xlane.f32.xlu0 %v2387_v47  ;;  %v3219_v9 = vpack.c.bf16 %v5710_v62, %v5710_v62 }
 0xde2   :  { %v2347_v30 = vpop.xlane.xlu1 %2346 }
 0xde3   :  { %v2361_v24 = vsub.f32 %v5904_v56, %v2347_v30 }
 0xde5   :  { %v5958_v35 = vpop.eup %4214  ;;  %v2373_v59 = vmul.f32 1.442695, %v2361_v24 }
 0xde6   :  { %v2390_v4 = vsel %vm595_vm15, %v5958_v35, 0.0 }
 0xde7   :  { %4216 = vpow2.f32 %v2373_v59  ;;  %2391 = vadd.xlane.f32.xlu0 %v2390_v4 }
 0xde8   :  { %2656 = vrot.lane.b32.xlu1 %v2646_v51, %s4417_s29 }
 0xdea   :  { %v2350_v61 = vpop.xlane.xlu1 %2349 }
 0xdeb   :  { %v2362_v36 = vsub.f32 %v2326_v27, %v2350_v61 }
 0xded   :  { %v5963_v42 = vpop.eup %4216  ;;  %v2375_v2 = vmul.f32 1.442695, %v2362_v36 }
 0xdee   :  { %v2393_v56 = vsel %vm595_vm15, %v5963_v42, 0.0 }
 0xdef   :  { %4218 = vpow2.f32 %v2375_v2  ;;  %2394 = vadd.xlane.f32.xlu2 %v2393_v56 }
 0xdf2   :  { %v2353_v22 = vpop.xlane.xlu0 %2352 }
 0xdf3   :  { %v2363_v60 = vsub.f32 %v2329_v37, %v2353_v22 }
 0xdf5   :  { %v5967_v50 = vpop.eup %4218  ;;  %v2377_v27 = vmul.f32 1.442695, %v2363_v60 }
 0xdf6   :  { %v2396_v23 = vsel %vm595_vm15, %v5967_v50, 0.0 }
 0xdf7   :  { %2397 = vadd.xlane.f32.xlu0 %v2396_v23  ;;  %4220 = vpow2.f32 %v2377_v27 }
 0xdfa   :  { %v2356_v11 = vpop.xlane.xlu2 %2355 }
 0xdfb   :  { %v2364_v41 = vsub.f32 %v5929_v26, %v2356_v11  ;;  %v2540_v26 = vpop.f32.mrf.mxu0 }
 0xdfc   :  { %v6037_v27 = vadd.f32 %v5880_v45, %v2540_v26 }
 0xdfd   :  { %v5979_v13 = vpop.eup %4220  ;;  %v2379_v8 = vmul.f32 1.442695, %v2364_v41 }
 0xdfe   :  { %v2399_v14 = vsel %vm595_vm15, %v5979_v13, 0.0 }
 0xdff   :  { %4222 = vpow2.f32 %v2379_v8 }
 0xe02   :  { %v5971_v5 = vpop.permute.xlu2 %2647 }
 0xe03   :  { %v6010_v47 = vpop.f32.mrf.mxu0 }
 0xe05   :  { %v2801_v29 = vpop.permute.xlu0 %2800  ;;  %v5999_v18 = vpop.eup %4222 }
 0xe06   :  { %v2821_v12 = vsel %vm66_vm1, %v2801_v29, 0 }
 0xe07   :  { %2649 = vrot.lane.b32.xlu2 %v5785_v25, %s4420_s9  ;;  %2839 = vmatpush.bf16.xpose.msrb.mxu0 %v2821_v12 }
 0xe0a   :  { %v3075_v38 = vpop.permute.xlu2 %3074 }
 0xe0b   :  { %v3097_v52 = vsel %vm66_vm1, %v3075_v38, 0  ;;  %3070 = vrot.lane.b32.xlu0 %v5789_v55, %s4418_s30  ;;  %v2545_v30 = vpop.f32.mrf.mxu0  ;;  %v2561_v38 = vsel %vm595_vm15, %v6037_v27, -inf }
 0xe0c   :  { %3107 = vmatpush.bf16.xpose.msra.mxu3 %v3097_v52 }
 0xe0d   :  { %v3073_v37 = vpop.permute.xlu0 %3072 }
 0xe0e   :  { %v3094_v48 = vsel %vm66_vm1, %v3073_v37, 0  ;;  %v6051_v37 = vadd.f32 %v5873_v6, %v2538_v3 }
 0xe0f   :  { %3062 = vrot.lane.b32.xlu2 %v5783_v53, %s4422_s25  ;;  %v2949_v53 = vpack.c.bf16 %v5705_v20, %v5705_v20  ;;  %v2402_v20 = vsel %vm595_vm15, %v5999_v18, 0.0 }
 0xe10   :  { %v2558_v8 = vsel %vm595_vm15, %v6051_v37, -inf }
 0xe12   :  { %v2793_v54 = vpop.permute.xlu2 %2792  ;;  %2400 = vadd.xlane.f32.xlu1 %v2399_v14 }
 0xe13   :  { %3952 = vmatmul.msk.bf16.vlgmr.msrb.gmra.mxu0 %vm66_vm1, %v2793_v54  ;;  %v2548_v59 = vpop.f32.mrf.mxu0 }
 0xe14   :  { %3108 = vmatpush.bf16.xpose.msra.mxu3 %v3094_v48 }
 0xe17   :  { %2796 = vrot.lane.b32.xlu2 %v5804_v0, %s4421_s0 }
 0xe1b   :  { %v6028_v11 = vpop.f32.mrf.mxu0 }
 0xe1f   :  { %2653 = vrot.lane.b32.xlu2 %v5818_v17, %s4420_s9 }
 0xe23   :  { %v2553_v12 = vpop.f32.mrf.mxu0 }
 0xe27   :  { %2959 = vrot.lane.b32.xlu2 %v2949_v53, %s4417_s29 }
 0xe2b   :  { %2794 = vrot.lane.b32.xlu1 %v5814_v49, %s4421_s0  ;;  %v2555_v14 = vpop.f32.mrf.mxu0 }
 0xe2c   :  { %v6058_v53 = vadd.f32 %v5926_v7, %v2555_v14 }
 0xe2e   :  { %v2579_v3 = vsel %vm595_vm15, %v6058_v53, -inf }
 0xe2f   :  { %3220 = vrot.lane.b32.xlu2 %v5789_v55, %s4424_s11 }
 0xe33   :  { %3066 = vrot.lane.b32.xlu1 %v5804_v0, %s4422_s25 }
 0xe35   :  { %2403 = vadd.xlane.f32.xlu0 %v2402_v20 }
 0xe37   :  { %3222 = vrot.lane.b32.xlu2 %v5785_v25, %s4424_s11 }
 0xe3b   :  { %3229 = vrot.lane.b32.xlu1 %v3219_v9, %s4417_s29 }
 0xe3f   :  { %2956 = vrot.lane.b32.xlu2 %v5818_v17, %s4423_s10 }
 0xe42   :  { %v2383_v0 = vpop.xlane.xlu1 %2382 }
 0xe43   :  { %2952 = vrot.lane.b32.xlu1 %v5785_v25, %s4423_s10  ;;  %4224 = vrcp.f32 %v2383_v0  ;;  %v6074_v0 = vadd.f32 %v5919_v57, %v2553_v12 }
 0xe49   :  { %2651 = vrot.lane.b32.xlu0 %v5793_v39, %s4420_s9  ;;  %v4225_v62 = vpop.eup %4224 }
 0xe4a   :  { %v2386_v24 = vpop.xlane.xlu0 %2385  ;;  %v2413_v4 = vmul.f32 %v4225_v62, %v5943_v44 }
 0xe4b   :  { %4226 = vrcp.f32 %v2386_v24  ;;  %3224 = vrot.lane.b32.xlu1 %v5793_v39, %s4424_s11 }
 0xe51   :  { %v4227_v51 = vpop.eup %4226  ;;  %3064 = vrot.lane.b32.xlu0 %v5814_v49, %s4422_s25 }
 0xe52   :  { %v2414_v25 = vmul.f32 %v4227_v51, %v5947_v28  ;;  %v2389_v61 = vpop.xlane.xlu0 %2388 }
 0xe53   :  { %4228 = vrcp.f32 %v2389_v61 }
 0xe54   :  { %v2477_v36 = vpack.c.bf16 %v2414_v25, %v2413_v4 }
 0xe56   :  { %3948 = vmatmul.msk.bf16.vlgmr.msrb.gmra.mxu3 %vm595_vm15, %v2477_v36  ;;  %v6086_v36 = vadd.f32 %v5887_v33, %v6010_v47 }
 0xe59   :  { %2798 = vrot.lane.b32.xlu0 %v5839_v40, %s4421_s0  ;;  %v4229_v49 = vpop.eup %4228 }
 0xe5a   :  { %v2657_v2 = vpop.permute.xlu1 %2656  ;;  %v2392_v56 = vpop.xlane.xlu0 %2391  ;;  %v2415_v28 = vmul.f32 %v4229_v49, %v5951_v10 }
 0xe5b   :  { %v2671_v23 = vsel %vm79_vm0, %v2657_v2, 0  ;;  %4230 = vrcp.f32 %v2392_v56  ;;  %v2564_v2 = vsel %vm595_vm15, %v6086_v36, -inf }
 0xe5c   :  { %2680 = vmatpush.bf16.msrb.mxu1 %v2671_v23  ;;  %v6093_v23 = vadd.f32 %v5911_v31, %v6028_v11 }
 0xe5f   :  { %3940 = vmatmul.msk.bf16.vlgmr.msrb.gmra.mxu1 %vm66_vm1, %v5971_v5 }
 0xe61   :  { %v4231_v44 = vpop.eup %4230  ;;  %2950 = vrot.lane.b32.xlu0 %v5789_v55, %s4423_s10 }
 0xe62   :  { %v2416_v22 = vmul.f32 %v4231_v44, %v5958_v35  ;;  %v2395_v60 = vpop.xlane.xlu2 %2394  ;;  %v6045_v35 = vadd.f32 %v5901_v1, %v2548_v59  ;;  %v2573_v44 = vsel %vm595_vm15, %v6093_v23, -inf }
 0xe63   :  { %4232 = vrcp.f32 %v2395_v60 }
 0xe64   :  { %v2478_v29 = vpack.c.bf16 %v2416_v22, %v2415_v28  ;;  %v2570_v52 = vsel %vm595_vm15, %v6045_v35, -inf }
 0xe66   :  { %3949 = vmatmul.msk.bf16.gmra.mxu3 %vm595_vm15, %v2478_v29 }
 0xe68   :  { %2562 = vmax.xlane.f32.xlu2 %v2561_v38 }
 0xe69   :  { %3068 = vrot.lane.b32.xlu0 %v5839_v40, %s4422_s25  ;;  %v4233_v5 = vpop.eup %4232 }
 0xe6a   :  { %v2650_v55 = vpop.permute.xlu2 %2649  ;;  %v2398_v10 = vpop.xlane.xlu0 %2397  ;;  %v2417_v40 = vmul.f32 %v4233_v5, %v5963_v42 }
 0xe6b   :  { %4234 = vrcp.f32 %v2398_v10 }
 0xe6f   :  { %3941 = vmatmul.msk.bf16.gmra.mxu1 %vm66_vm1, %v2650_v55 }
 0xe70   :  { %2571 = vmax.xlane.f32.xlu2 %v2570_v52 }
 0xe71   :  { %v4235_v54 = vpop.eup %4234  ;;  %2954 = vrot.lane.b32.xlu0 %v5793_v39, %s4423_s10  ;;  %v6066_v39 = vadd.f32 %v5894_v63, %v2545_v30  ;;  %v2576_v30 = vsel %vm595_vm15, %v6074_v0, -inf }
 0xe72   :  { %v2418_v48 = vmul.f32 %v4235_v54, %v5967_v50  ;;  %v3063_v41 = vpop.permute.xlu2 %3062 }
 0xe73   :  { %v2567_v50 = vsel %vm595_vm15, %v6066_v39, -inf }
 0xe74   :  { %v2479_v26 = vpack.c.bf16 %v2418_v48, %v2417_v40 }
 0xe75   :  { %2559 = vmax.xlane.f32.xlu1 %v2558_v8 }
 0xe76   :  { %3950 = vmatmul.msk.bf16.gmra.mxu3 %vm595_vm15, %v2479_v26 }
 0xe78   :  { %2580 = vmax.xlane.f32.xlu2 %v2579_v3 }
 0xe79   :  { %3226 = vrot.lane.b32.xlu0 %v5818_v17, %s4424_s11 }
 0xe7a   :  { %v2797_v42 = vpop.permute.xlu2 %2796 }
 0xe7d   :  { %2568 = vmax.xlane.f32.xlu1 %v2567_v50  ;;  %v3071_v20 = vpop.permute.xlu0 %3070 }
 0xe7e   :  { %v3091_v9 = vsel %vm66_vm1, %v3071_v20, 0 }
 0xe7f   :  { %3109 = vmatpush.bf16.xpose.msra.mxu3 %v3091_v9 }
 0xe82   :  { %v2654_v24 = vpop.permute.xlu2 %2653 }
 0xe85   :  { %2577 = vmax.xlane.f32.xlu1 %v2576_v30  ;;  %v2401_v25 = vpop.xlane.xlu1 %2400 }
 0xe86   :  { %4236 = vrcp.f32 %v2401_v25 }
 0xe8a   :  { %v2960_v62 = vpop.permute.xlu2 %2959 }
 0xe8b   :  { %v2974_v17 = vsel %vm79_vm0, %v2960_v62, 0 }
 0xe8c   :  { %2983 = vmatpush.bf16.msra.mxu1 %v2974_v17  ;;  %v4237_v47 = vpop.eup %4236 }
 0xe8d   :  { %v2419_v29 = vmul.f32 %v4237_v47, %v5979_v13 }
 0xe90   :  { %v2841_v51 = vpop.f32.mrf.mxu0 }
 0xe91   :  { %v6080_v59 = vadd.f32 %v5873_v6, %v2841_v51 }
 0xe92   :  { %v3221_v55 = vpop.permute.xlu2 %3220 }
 0xe93   :  { %v2861_v4 = vsel %vm595_vm15, %v6080_v59, -inf }
 0xe94   :  { %2862 = vmax.xlane.f32.xlu2 %v2861_v4 }
 0xe98   :  { %v2843_v17 = vpop.f32.mrf.mxu0 }
 0xe9a   :  { %v3223_v5 = vpop.permute.xlu2 %3222 }
 0xe9d   :  { %v2795_v61 = vpop.permute.xlu1 %2794 }
 0xe9e   :  { %3953 = vmatmul.msk.bf16.gmra.mxu0 %vm66_vm1, %v2795_v61 }
 0xea2   :  { %v2957_v14 = vpop.permute.xlu2 %2956 }
 0xea3   :  { %2565 = vmax.xlane.f32.xlu0 %v2564_v2 }
 0xea5   :  { %v3067_v56 = vpop.permute.xlu1 %3066 }
 0xea8   :  { %v2404_v49 = vpop.xlane.xlu0 %2403 }
 0xea9   :  { %4238 = vrcp.f32 %v2404_v49 }
 0xeab   :  { %2574 = vmax.xlane.f32.xlu0 %v2573_v44 }
 0xead   :  { %v3230_v28 = vpop.permute.xlu1 %3229 }
 0xeae   :  { %v3244_v22 = vsel %vm79_vm0, %v3230_v28, 0  ;;  %3954 = vmatmul.msk.bf16.gmra.mxu0 %vm66_vm1, %v2797_v42 }
 0xeaf   :  { %v4239_v60 = vpop.eup %4238  ;;  %3253 = vmatpush.bf16.msra.mxu0 %v3244_v22 }
 0xeb0   :  { %v2420_v11 = vmul.f32 %v4239_v60, %v5999_v18 }
 0xeb2   :  { %v2480_v12 = vpack.c.bf16 %v2420_v11, %v2419_v29 }
 0xeb4   :  { %3951 = vmatmul.msk.bf16.gmra.mxu3 %vm595_vm15, %v2480_v12 }
 0xeb5   :  { %v2953_v13 = vpop.permute.xlu1 %2952 }
 0xebb   :  { %v2652_v38 = vpop.permute.xlu0 %2651 }
 0xebc   :  { %3942 = vmatmul.msk.bf16.gmra.mxu1 %vm66_vm1, %v2652_v38 }
 0xec3   :  { %v3065_v10 = vpop.permute.xlu0 %3064 }
 0xec4   :  { %3964 = vmatmul.msk.bf16.vlgmr.msra.gmra.mxu3 %vm66_vm1, %v3063_v41  ;;  %v3225_v41 = vpop.permute.xlu1 %3224 }
 0xecb   :  { %v2799_v52 = vpop.permute.xlu0 %2798 }
 0xecc   :  { %3943 = vmatmul.msk.bf16.gmra.mxu1 %vm66_vm1, %v2654_v24  ;;  %3955 = vmatmul.msk.bf16.gmra.mxu0 %vm66_vm1, %v2799_v52 }
 0xed3   :  { %v2951_v18 = vpop.permute.xlu0 %2950 }
 0xed4   :  { %3965 = vmatmul.msk.bf16.gmra.mxu3 %vm66_vm1, %v3065_v10 }
 0xed9   :  { %v6135_v61 = vpop.f32.mrf.mxu3 }
 0xedb   :  { %v2563_v54 = vpop.xlane.xlu2 %2562  ;;  %v3069_v20 = vpop.permute.xlu0 %3068 }
 0xedc   :  { %v2583_v40 = vsub.f32 %v6037_v27, %v2563_v54  ;;  %3956 = vmatmul.msk.bf16.vlgmr.msra.gmra.mxu1 %vm66_vm1, %v2951_v18  ;;  %3968 = vmatmul.msk.bf16.vlgmr.msra.gmra.mxu0 %vm66_vm1, %v3221_v55  ;;  %v6143_v44 = vpop.f32.mrf.mxu1 }
 0xede   :  { %v2592_v48 = vmul.f32 1.442695, %v2583_v40 }
 0xee0   :  { %4240 = vpow2.f32 %v2592_v48 }
 0xee1   :  { %v6137_v2 = vpop.f32.mrf.mxu3 }
 0xee3   :  { %v2955_v4 = vpop.permute.xlu0 %2954  ;;  %v2572_v11 = vpop.xlane.xlu2 %2571 }
 0xee4   :  { %3966 = vmatmul.msk.bf16.gmra.mxu3 %vm66_vm1, %v3067_v56  ;;  %v6151_v38 = vpop.f32.mrf.mxu1 }
 0xee6   :  { %v6111_v8 = vpop.eup %4240 }
 0xee7   :  { %v2609_v26 = vsel %vm595_vm15, %v6111_v8, 0.0 }
 0xee8   :  { %2610 = vadd.xlane.f32.xlu1 %v2609_v26  ;;  %v2560_v3 = vpop.xlane.xlu1 %2559 }
 0xee9   :  { %v2582_v42 = vsub.f32 %v6051_v37, %v2560_v3  ;;  %v6125_v37 = vadd.f32 %v5880_v45, %v2843_v17  ;;  %v6141_v49 = vpop.f32.mrf.mxu3 }
 0xeeb   :  { %v2590_v50 = vmul.f32 1.442695, %v2582_v42  ;;  %v3227_v56 = vpop.permute.xlu0 %3226  ;;  %v2581_v54 = vpop.xlane.xlu2 %2580 }
 0xeec   :  { %3957 = vmatmul.msk.bf16.gmra.mxu1 %vm66_vm1, %v2953_v13  ;;  %3969 = vmatmul.msk.bf16.gmra.mxu0 %vm66_vm1, %v3223_v5  ;;  %v2687_v40 = vpop.f32.mrf.mxu1 }
 0xeed   :  { %4242 = vpow2.f32 %v2590_v50 }
 0xef0   :  { %v2569_v27 = vpop.xlane.xlu1 %2568 }
 0xef1   :  { %v2585_v9 = vsub.f32 %v6066_v39, %v2569_v27  ;;  %v2864_v39 = vsel %vm595_vm15, %v6125_v37, -inf  ;;  %v6146_v60 = vpop.f32.mrf.mxu3 }
 0xef3   :  { %v6119_v24 = vpop.eup %4242  ;;  %v2596_v30 = vmul.f32 1.442695, %v2585_v9 }
 0xef4   :  { %3967 = vmatmul.msk.bf16.gmra.mxu3 %vm66_vm1, %v3069_v20  ;;  %v2606_v62 = vsel %vm595_vm15, %v6119_v24, 0.0  ;;  %v2689_v27 = vpop.f32.mrf.mxu1 }
 0xef5   :  { %4244 = vpow2.f32 %v2596_v30  ;;  %2607 = vadd.xlane.f32.xlu0 %v2606_v62 }
 0xef9   :  { %v6160_v18 = vpop.f32.mrf.mxu3 }
 0xefb   :  { %v6127_v51 = vpop.eup %4244 }
 0xefc   :  { %3958 = vmatmul.msk.bf16.gmra.mxu1 %vm66_vm1, %v2955_v4  ;;  %3970 = vmatmul.msk.bf16.gmra.mxu0 %vm66_vm1, %v3225_v41  ;;  %v2615_v25 = vsel %vm595_vm15, %v6127_v51, 0.0  ;;  %v2589_v41 = vsub.f32 %v6058_v53, %v2581_v54 }
 0xefd   :  { %2865 = vmax.xlane.f32.xlu0 %v2864_v39  ;;  %2616 = vadd.xlane.f32.xlu2 %v2615_v25 }
 0xefe   :  { %v2604_v3 = vmul.f32 1.442695, %v2589_v41 }
 0xf01   :  { %v6170_v50 = vpop.f32.mrf.mxu3 }
 0xf0c   :  { %3959 = vmatmul.msk.bf16.gmra.mxu1 %vm66_vm1, %v2957_v14  ;;  %3971 = vmatmul.msk.bf16.gmra.mxu0 %vm66_vm1, %v3227_v56 }
 0xf16   :  { %v2566_v47 = vpop.xlane.xlu0 %2565 }
 0xf17   :  { %v2584_v28 = vsub.f32 %v6086_v36, %v2566_v47  ;;  %v2586_v47 = vsub.f32 %v6045_v35, %v2572_v11 }
 0xf19   :  { %v2594_v22 = vmul.f32 1.442695, %v2584_v28 }
 0xf1b   :  { %4246 = vpow2.f32 %v2594_v22  ;;  %v2846_v29 = vpop.f32.mrf.mxu0 }
 0xf1c   :  { %v6149_v12 = vadd.f32 %v5887_v33, %v2846_v29 }
 0xf1e   :  { %v2575_v55 = vpop.xlane.xlu0 %2574  ;;  %v2867_v10 = vsel %vm595_vm15, %v6149_v12, -inf }
 0xf1f   :  { %v2587_v5 = vsub.f32 %v6093_v23, %v2575_v55  ;;  %2868 = vmax.xlane.f32.xlu2 %v2867_v10 }
 0xf21   :  { %v6156_v52 = vpop.eup %4246  ;;  %v2600_v36 = vmul.f32 1.442695, %v2587_v5  ;;  %v2598_v5 = vmul.f32 1.442695, %v2586_v47 }
 0xf22   :  { %v2612_v14 = vsel %vm595_vm15, %v6156_v52, 0.0 }
 0xf23   :  { %4248 = vpow2.f32 %v2600_v36  ;;  %v2848_v13 = vpop.f32.mrf.mxu0  ;;  %2613 = vadd.xlane.f32.xlu1 %v2612_v14 }
 0xf24   :  { %4250 = vpow2.f32 %v2604_v3  ;;  %v6194_v36 = vadd.f32 %v5894_v63, %v2848_v13 }
 0xf25   :  { %4252 = vpow2.f32 %v2598_v5 }
 0xf26   :  { %v2870_v41 = vsel %vm595_vm15, %v6194_v36, -inf }
 0xf29   :  { %v6162_v48 = vpop.eup %4248 }
 0xf2a   :  { %v2621_v23 = vsel %vm595_vm15, %v6162_v48, 0.0  ;;  %v6174_v9 = vpop.eup %4250 }
 0xf2b   :  { %v2851_v26 = vpop.f32.mrf.mxu0  ;;  %2622 = vadd.xlane.f32.xlu2 %v2621_v23  ;;  %v2627_v62 = vsel %vm595_vm15, %v6174_v9, 0.0  ;;  %v6203_v3 = vpop.eup %4252 }
 0xf2c   :  { %v6168_v42 = vadd.f32 %v5901_v1, %v2851_v26  ;;  %v2578_v26 = vpop.xlane.xlu1 %2577 }
 0xf2e   :  { %v2873_v20 = vsel %vm595_vm15, %v6168_v42, -inf }
 0xf33   :  { %2874 = vmax.xlane.f32.xlu2 %v2873_v20  ;;  %v2853_v4 = vpop.f32.mrf.mxu0 }
 0xf37   :  { %v6176_v53 = vpop.f32.mrf.mxu3 }
 0xf39   :  { %v2692_v30 = vpop.f32.mrf.mxu1 }
 0xf3b   :  { %2628 = vadd.xlane.f32.xlu2 %v2627_v62  ;;  %v2588_v62 = vsub.f32 %v6074_v0, %v2578_v26  ;;  %v6220_v0 = vadd.f32 %v5911_v31, %v2853_v4 }
 0xf3d   :  { %v2876_v5 = vsel %vm595_vm15, %v6220_v0, -inf }
 0xf3f   :  { %v6180_v17 = vpop.f32.mrf.mxu3 }
 0xf41   :  { %v2694_v39 = vpop.f32.mrf.mxu1 }
 0xf42   :  { %v2708_v13 = vpack.c.bf16 %v2694_v39, %v2692_v30  ;;  %v2618_v30 = vsel %vm595_vm15, %v6203_v3, 0.0  ;;  %v2602_v39 = vmul.f32 1.442695, %v2588_v62 }
 0xf44   :  { %4254 = vpow2.f32 %v2602_v39 }
 0xf47   :  { %v3111_v25 = vpop.f32.mrf.mxu3 }
 0xf48   :  { %v6183_v56 = vadd.f32 %v5873_v6, %v3111_v25 }
 0xf49   :  { %v2697_v28 = vpop.f32.mrf.mxu1  ;;  %v2856_v22 = vpop.f32.mrf.mxu0 }
 0xf4a   :  { %v6187_v29 = vadd.f32 %v5919_v57, %v2856_v22  ;;  %v3131_v55 = vsel %vm595_vm15, %v6183_v56, -inf  ;;  %v6233_v4 = vpop.eup %4254 }
 0xf4b   :  { %3132 = vmax.xlane.f32.xlu0 %v3131_v55 }
 0xf4c   :  { %v2879_v10 = vsel %vm595_vm15, %v6187_v29, -inf }
 0xf4d   :  { %2880 = vmax.xlane.f32.xlu2 %v2879_v10 }
 0xf4f   :  { %v3113_v6 = vpop.f32.mrf.mxu3 }
 0xf50   :  { %v6197_v35 = vadd.f32 %v5880_v45, %v3113_v6 }
 0xf51   :  { %v2699_v11 = vpop.f32.mrf.mxu1  ;;  %v2858_v14 = vpop.f32.mrf.mxu0 }
 0xf52   :  { %v2709_v54 = vpack.c.bf16 %v2699_v11, %v2697_v28  ;;  %v3134_v23 = vsel %vm595_vm15, %v6197_v35, -inf  ;;  %v2707_v28 = vpack.c.bf16 %v2689_v27, %v2687_v40 }
 0xf53   :  { %2871 = vmax.xlane.f32.xlu0 %v2870_v41  ;;  %3135 = vmax.xlane.f32.xlu1 %v3134_v23 }
 0xf54   :  { %2726 = vmatpush.bf16.msrb.mxu2 %v2709_v54 }
 0xf57   :  { %v3116_v20 = vpop.f32.mrf.mxu3 }
 0xf58   :  { %v6206_v45 = vadd.f32 %v5887_v33, %v3116_v20  ;;  %2727 = vmatpush.bf16.msrb.mxu2 %v2708_v13  ;;  %v2706_v33 = vpack.c.bf16 %v6151_v38, %v6143_v44  ;;  %v2863_v38 = vpop.xlane.xlu2 %2862  ;;  %v2624_v20 = vsel %vm595_vm15, %v6233_v4, 0.0 }
 0xf59   :  { %v6209_v25 = vpop.f32.mrf.mxu1  ;;  %v6211_v47 = vpop.f32.mrf.mxu0  ;;  %v2885_v41 = vsub.f32 %v6080_v59, %v2863_v38 }
 0xf5a   :  { %v3137_v22 = vsel %vm595_vm15, %v6206_v45, -inf }
 0xf5b   :  { %3138 = vmax.xlane.f32.xlu0 %v3137_v22  ;;  %2619 = vadd.xlane.f32.xlu1 %v2618_v30  ;;  %v2611_v44 = vpop.xlane.xlu1 %2610 }
 0xf5c   :  { %2728 = vmatpush.bf16.msrb.mxu2 %v2707_v28  ;;  %4256 = vrcp.f32 %v2611_v44  ;;  %v2893_v28 = vmul.f32 1.442695, %v2885_v41 }
 0xf5f   :  { %v3118_v55 = vpop.f32.mrf.mxu3 }
 0xf60   :  { %v6223_v10 = vadd.f32 %v5894_v63, %v3118_v55  ;;  %2729 = vmatpush.bf16.msrb.mxu2 %v2706_v33 }
 0xf61   :  { %v6225_v40 = vpop.f32.mrf.mxu1  ;;  %v6227_v27 = vpop.f32.mrf.mxu0 }
 0xf62   :  { %v3140_v6 = vsel %vm595_vm15, %v6223_v10, -inf  ;;  %v4257_v62 = vpop.eup %4256 }
 0xf63   :  { %2877 = vmax.xlane.f32.xlu0 %v2876_v5  ;;  %3141 = vmax.xlane.f32.xlu1 %v3140_v6  ;;  %v2639_v30 = vmul.f32 %v4257_v62, %v6111_v8 }
 0xf67   :  { %v3121_v63 = vpop.f32.mrf.mxu3 }
 0xf68   :  { %v6236_v11 = vadd.f32 %v5901_v1, %v3121_v63  ;;  %v2608_v54 = vpop.xlane.xlu0 %2607  ;;  %v6248_v1 = vadd.f32 %v5926_v7, %v2858_v14 }
 0xf69   :  { %4258 = vrcp.f32 %v2608_v54  ;;  %v6239_v23 = vpop.f32.mrf.mxu1  ;;  %v6241_v26 = vpop.f32.mrf.mxu0 }
 0xf6a   :  { %v3143_v13 = vsel %vm595_vm15, %v6236_v11, -inf  ;;  %4260 = vpow2.f32 %v2893_v28  ;;  %v2882_v14 = vsel %vm595_vm15, %v6248_v1, -inf }
 0xf6b   :  { %3144 = vmax.xlane.f32.xlu0 %v3143_v13  ;;  %2625 = vadd.xlane.f32.xlu1 %v2624_v20 }
 0xf6f   :  { %v4259_v22 = vpop.eup %4258  ;;  %v3123_v59 = vpop.f32.mrf.mxu3 }
 0xf70   :  { %v2638_v39 = vmul.f32 %v4259_v22, %v6119_v24  ;;  %v6253_v33 = vadd.f32 %v5911_v31, %v3123_v59  ;;  %v2866_v55 = vpop.xlane.xlu0 %2865  ;;  %v6261_v31 = vpop.eup %4260 }
 0xf71   :  { %v2886_v5 = vsub.f32 %v6125_v37, %v2866_v55  ;;  %v2992_v6 = vpop.f32.mrf.mxu1  ;;  %v3262_v44 = vpop.f32.mrf.mxu0  ;;  %v2909_v20 = vsel %vm595_vm15, %v6261_v31, 0.0 }
 0xf72   :  { %v2702_v38 = vpack.c.bf16 %v2639_v30, %v2638_v39  ;;  %v3146_v63 = vsel %vm595_vm15, %v6253_v33, -inf  ;;  %v3280_v16 = vpack.c.bf16 %v3262_v44, %v6241_v26 }
 0xf73   :  { %v2895_v54 = vmul.f32 1.442695, %v2886_v5  ;;  %2883 = vmax.xlane.f32.xlu0 %v2882_v14  ;;  %3147 = vmax.xlane.f32.xlu1 %v3146_v63 }
 0xf74   :  { %3944 = vmatmul.msk.bf16.vlgmr.msrb.gmra.mxu2 %vm595_vm15, %v2702_v38  ;;  %v2617_v38 = vpop.xlane.xlu2 %2616 }
 0xf75   :  { %4262 = vpow2.f32 %v2895_v54 }
 0xf76   :  { %4264 = vrcp.f32 %v2617_v38  ;;  %v3009_v38 = vpack.c.bf16 %v6225_v40, %v6209_v25 }
 0xf77   :  { %v3126_v8 = vpop.f32.mrf.mxu3 }
 0xf78   :  { %v6264_v24 = vadd.f32 %v5919_v57, %v3126_v8 }
 0xf79   :  { %v2995_v37 = vpop.f32.mrf.mxu1  ;;  %v3265_v41 = vpop.f32.mrf.mxu0 }
 0xf7a   :  { %v3149_v13 = vsel %vm595_vm15, %v6264_v24, -inf }
 0xf7b   :  { %v6270_v62 = vpop.eup %4262  ;;  %3150 = vmax.xlane.f32.xlu0 %v3149_v13  ;;  %2910 = vadd.xlane.f32.xlu1 %v2909_v20 }
 0xf7c   :  { %v2912_v28 = vsel %vm595_vm15, %v6270_v62, 0.0 }
 0xf7d   :  { %2913 = vadd.xlane.f32.xlu2 %v2912_v28 }
 0xf7f   :  { %v3128_v22 = vpop.f32.mrf.mxu3 }
 0xf80   :  { %v6275_v57 = vadd.f32 %v5926_v7, %v3128_v22 }
 0xf81   :  { %v2997_v59 = vpop.f32.mrf.mxu1  ;;  %v3267_v30 = vpop.f32.mrf.mxu0 }
 0xf82   :  { %v3152_v39 = vsel %vm595_vm15, %v6275_v57, -inf  ;;  %v3011_v28 = vpack.c.bf16 %v2997_v59, %v2995_v37  ;;  %v3281_v22 = vpack.c.bf16 %v3267_v30, %v3265_v41  ;;  %v3279_v37 = vpack.c.bf16 %v6227_v27, %v6211_v47 }
 0xf83   :  { %3153 = vmax.xlane.f32.xlu1 %v3152_v39  ;;  %v3010_v39 = vpack.c.bf16 %v2992_v6, %v6239_v23 }
 0xf89   :  { %v3000_v55 = vpop.f32.mrf.mxu1  ;;  %v3270_v5 = vpop.f32.mrf.mxu0 }
 0xf91   :  { %v3002_v14 = vpop.f32.mrf.mxu1  ;;  %v3272_v63 = vpop.f32.mrf.mxu0 }
 0xf92   :  { %v3012_v54 = vpack.c.bf16 %v3002_v14, %v3000_v55  ;;  %v3282_v8 = vpack.c.bf16 %v3272_v63, %v3270_v5  ;;  %v2869_v13 = vpop.xlane.xlu2 %2868  ;;  %v4265_v55 = vpop.eup %4264 }
 0xf93   :  { %v2887_v20 = vsub.f32 %v6149_v12, %v2869_v13  ;;  %v2641_v41 = vmul.f32 %v4265_v55, %v6127_v51 }
 0xf94   :  { %3029 = vmatpush.bf16.msra.mxu2 %v3012_v54  ;;  %3299 = vmatpush.bf16.msrb.mxu1 %v3282_v8 }
 0xf95   :  { %v2897_v7 = vmul.f32 1.442695, %v2887_v20 }
 0xf96   :  { %v2614_v21 = vpop.xlane.xlu1 %2613 }
 0xf97   :  { %4266 = vpow2.f32 %v2897_v7 }
 0xf98   :  { %4268 = vrcp.f32 %v2614_v21  ;;  %3030 = vmatpush.bf16.msra.mxu2 %v3011_v28  ;;  %3300 = vmatpush.bf16.msrb.mxu1 %v3281_v22 }
 0xf9c   :  { %3031 = vmatpush.bf16.msra.mxu2 %v3010_v39  ;;  %3301 = vmatpush.bf16.msrb.mxu1 %v3280_v16 }
 0xf9d   :  { %v6282_v5 = vpop.eup %4266 }
 0xf9e   :  { %v4269_v12 = vpop.eup %4268  ;;  %v2915_v21 = vsel %vm595_vm15, %v6282_v5, 0.0  ;;  %v2623_v26 = vpop.xlane.xlu2 %2622 }
 0xf9f   :  { %v2640_v23 = vmul.f32 %v4269_v12, %v6156_v52  ;;  %2916 = vadd.xlane.f32.xlu1 %v2915_v21 }
 0xfa0   :  { %3032 = vmatpush.bf16.msra.mxu2 %v3009_v38  ;;  %3302 = vmatpush.bf16.msrb.mxu1 %v3279_v37 }
 0xfa1   :  { %v2703_v16 = vpack.c.bf16 %v2641_v41, %v2640_v23 }
 0xfa3   :  { %3945 = vmatmul.msk.bf16.gmra.mxu2 %vm595_vm15, %v2703_v16 }
 0xfa6   :  { %v2875_v47 = vpop.xlane.xlu2 %2874 }
 0xfa7   :  { %v2889_v63 = vsub.f32 %v6168_v42, %v2875_v47 }
 0xfae   :  { %v2629_v20 = vpop.xlane.xlu2 %2628 }
 0xfbe   :  { %v3133_v6 = vpop.xlane.xlu0 %3132 }
 0xfbf   :  { %v3155_v25 = vsub.f32 %v6183_v56, %v3133_v6  ;;  %v2901_v56 = vmul.f32 1.442695, %v2889_v63 }
 0xfc0   :  { %v2881_v21 = vpop.xlane.xlu2 %2880 }
 0xfc1   :  { %v3163_v40 = vmul.f32 1.442695, %v3155_v25  ;;  %v2891_v47 = vsub.f32 %v6187_v29, %v2881_v21 }
 0xfc3   :  { %4270 = vpow2.f32 %v3163_v40 }
 0xfc6   :  { %v3136_v27 = vpop.xlane.xlu1 %3135  ;;  %v2872_v44 = vpop.xlane.xlu0 %2871 }
 0xfc7   :  { %v3156_v59 = vsub.f32 %v6197_v35, %v3136_v27  ;;  %v2888_v51 = vsub.f32 %v6194_v36, %v2872_v44 }
 0xfc9   :  { %v6296_v52 = vpop.eup %4270  ;;  %v3165_v30 = vmul.f32 1.442695, %v3156_v59  ;;  %v2899_v14 = vmul.f32 1.442695, %v2888_v51 }
 0xfca   :  { %v3179_v54 = vsel %vm595_vm15, %v6296_v52, 0.0 }
 0xfcb   :  { %4272 = vpow2.f32 %v3165_v30  ;;  %3180 = vadd.xlane.f32.xlu2 %v3179_v54 }
 0xfcc   :  { %4274 = vpow2.f32 %v2899_v14 }
 0xfcd   :  { %4276 = vrcp.f32 %v2623_v26 }
 0xfce   :  { %v2620_v8 = vpop.xlane.xlu1 %2619  ;;  %v3139_v13 = vpop.xlane.xlu0 %3138 }
 0xfcf   :  { %4278 = vrcp.f32 %v2620_v8  ;;  %v3157_v36 = vsub.f32 %v6206_v45, %v3139_v13 }
 0xfd0   :  { %4280 = vpow2.f32 %v2901_v56 }
 0xfd1   :  { %v6302_v35 = vpop.eup %4272  ;;  %v3167_v7 = vmul.f32 1.442695, %v3157_v36 }
 0xfd2   :  { %v6304_v28 = vpop.eup %4274  ;;  %v3182_v42 = vsel %vm595_vm15, %v6302_v35, 0.0 }
 0xfd3   :  { %v4277_v22 = vpop.eup %4276  ;;  %4282 = vpow2.f32 %v3167_v7  ;;  %3183 = vadd.xlane.f32.xlu0 %v3182_v42  ;;  %v2918_v39 = vsel %vm595_vm15, %v6304_v28, 0.0 }
 0xfd4   :  { %2919 = vadd.xlane.f32.xlu2 %v2918_v39  ;;  %v2643_v12 = vmul.f32 %v4277_v22, %v6162_v48 }
 0xfd5   :  { %v4279_v55 = vpop.eup %4278 }
 0xfd6   :  { %v2642_v45 = vmul.f32 %v4279_v55, %v6203_v3  ;;  %v3142_v38 = vpop.xlane.xlu1 %3141  ;;  %v2878_v37 = vpop.xlane.xlu0 %2877 }
 0xfd7   :  { %v3158_v41 = vsub.f32 %v6223_v10, %v3142_v38  ;;  %v2890_v23 = vsub.f32 %v6220_v0, %v2878_v37  ;;  %v6314_v16 = vpop.eup %4280  ;;  %v2905_v0 = vmul.f32 1.442695, %v2891_v47 }
 0xfd8   :  { %v2704_v26 = vpack.c.bf16 %v2643_v12, %v2642_v45  ;;  %v2921_v3 = vsel %vm595_vm15, %v6314_v16, 0.0 }
 0xfd9   :  { %v6316_v6 = vpop.eup %4282  ;;  %v3169_v25 = vmul.f32 1.442695, %v3158_v41  ;;  %v2903_v40 = vmul.f32 1.442695, %v2890_v23 }
 0xfda   :  { %3946 = vmatmul.msk.bf16.gmra.mxu2 %vm595_vm15, %v2704_v26  ;;  %v3185_v48 = vsel %vm595_vm15, %v6316_v6, 0.0 }
 0xfdb   :  { %4284 = vpow2.f32 %v3169_v25  ;;  %3186 = vadd.xlane.f32.xlu0 %v3185_v48 }
 0xfdc   :  { %4286 = vpow2.f32 %v2903_v40  ;;  %2922 = vadd.xlane.f32.xlu2 %v2921_v3 }
 0xfdd   :  { %4288 = vrcp.f32 %v2629_v20 }
 0xfde   :  { %v2626_v10 = vpop.xlane.xlu1 %2625  ;;  %v3145_v27 = vpop.xlane.xlu0 %3144 }
 0xfdf   :  { %4290 = vrcp.f32 %v2626_v10  ;;  %v3159_v44 = vsub.f32 %v6236_v11, %v3145_v27 }
 0xfe0   :  { %4292 = vpow2.f32 %v2905_v0 }
 0xfe1   :  { %v6325_v29 = vpop.eup %4284  ;;  %v3171_v59 = vmul.f32 1.442695, %v3159_v44 }
 0xfe2   :  { %v6327_v51 = vpop.eup %4286  ;;  %v3188_v30 = vsel %vm595_vm15, %v6325_v29, 0.0 }
 0xfe3   :  { %v4289_v14 = vpop.eup %4288  ;;  %4294 = vpow2.f32 %v3171_v59  ;;  %3189 = vadd.xlane.f32.xlu1 %v3188_v30  ;;  %v2924_v63 = vsel %vm595_vm15, %v6327_v51, 0.0 }
 0xfe4   :  { %2925 = vadd.xlane.f32.xlu0 %v2924_v63  ;;  %v2645_v56 = vmul.f32 %v4289_v14, %v6174_v9 }
 0xfe5   :  { %v4291_v54 = vpop.eup %4290 }
 0xfe6   :  { %v2644_v11 = vmul.f32 %v4291_v54, %v6233_v4  ;;  %v3148_v8 = vpop.xlane.xlu1 %3147  ;;  %v2884_v13 = vpop.xlane.xlu0 %2883 }
 0xfe7   :  { %v3160_v20 = vsub.f32 %v6253_v33, %v3148_v8  ;;  %v2892_v36 = vsub.f32 %v6248_v1, %v2884_v13  ;;  %v6337_v7 = vpop.eup %4292 }
 0xfe8   :  { %v2705_v42 = vpack.c.bf16 %v2645_v56, %v2644_v11  ;;  %v2927_v4 = vsel %vm595_vm15, %v6337_v7, 0.0 }
 0xfe9   :  { %v6339_v22 = vpop.eup %4294  ;;  %v3173_v39 = vmul.f32 1.442695, %v3160_v20  ;;  %v2907_v55 = vmul.f32 1.442695, %v2892_v36 }
 0xfea   :  { %3947 = vmatmul.msk.bf16.gmra.mxu2 %vm595_vm15, %v2705_v42  ;;  %v3191_v9 = vsel %vm595_vm15, %v6339_v22, 0.0 }
 0xfeb   :  { %4296 = vpow2.f32 %v3173_v39  ;;  %3192 = vadd.xlane.f32.xlu1 %v3191_v9 }
 0xfec   :  { %4298 = vpow2.f32 %v2907_v55  ;;  %2928 = vadd.xlane.f32.xlu0 %v2927_v4 }
 0xfee   :  { %v2911_v1 = vpop.xlane.xlu1 %2910  ;;  %v3151_v33 = vpop.xlane.xlu0 %3150 }
 0xfef   :  { %4300 = vrcp.f32 %v2911_v1  ;;  %v3161_v12 = vsub.f32 %v6264_v24, %v3151_v33 }
 0xff0   :  { %v2914_v45 = vpop.xlane.xlu2 %2913 }
 0xff1   :  { %v6347_v38 = vpop.eup %4296  ;;  %v3175_v37 = vmul.f32 1.442695, %v3161_v12  ;;  %4302 = vrcp.f32 %v2914_v45 }
 0xff2   :  { %v6349_v21 = vpop.eup %4298  ;;  %v3194_v41 = vsel %vm595_vm15, %v6347_v38, 0.0 }
 0xff3   :  { %4304 = vpow2.f32 %v3175_v37  ;;  %3195 = vadd.xlane.f32.xlu2 %v3194_v41  ;;  %v2930_v23 = vsel %vm595_vm15, %v6349_v21, 0.0 }
 0xff4   :  { %2931 = vadd.xlane.f32.xlu1 %v2930_v23 }
 0xff5   :  { %v4301_v26 = vpop.eup %4300 }
 0xff6   :  { %v3154_v25 = vpop.xlane.xlu1 %3153  ;;  %v2941_v47 = vmul.f32 %v4301_v26, %v6261_v31 }
 0xff7   :  { %v4303_v40 = vpop.eup %4302  ;;  %v3162_v24 = vsub.f32 %v6275_v57, %v3154_v25 }
 0xff8   :  { %v2942_v48 = vmul.f32 %v4303_v40, %v6270_v62 }
 0xff9   :  { %v6358_v3 = vpop.eup %4304  ;;  %v3177_v0 = vmul.f32 1.442695, %v3162_v24 }
 0xffa   :  { %v3005_v10 = vpack.c.bf16 %v2942_v48, %v2941_v47  ;;  %v3197_v27 = vsel %vm595_vm15, %v6358_v3, 0.0 }
 0xffb   :  { %4306 = vpow2.f32 %v3177_v0  ;;  %3198 = vadd.xlane.f32.xlu2 %v3197_v27 }
 0xffc   :  { %3960 = vmatmul.msk.bf16.vlgmr.msra.gmra.mxu2 %vm595_vm15, %v3005_v10 }
0x1001   :  { %v6363_v44 = vpop.eup %4306 }
0x1002   :  { %v3200_v57 = vsel %vm595_vm15, %v6363_v44, 0.0 }
0x1003   :  { %3201 = vadd.xlane.f32.xlu0 %v3200_v57 }
0x1012   :  { %v2917_v59 = vpop.xlane.xlu1 %2916 }
0x103e   :  { %v3181_v31 = vpop.xlane.xlu2 %3180 }
0x103f   :  { %4308 = vrcp.f32 %v3181_v31 }
0x1040   :  { %4310 = vrcp.f32 %v2917_v59  ;;  %v2731_v59 = vpop.f32.mrf.mxu2 }
0x1045   :  { %v4309_v14 = vpop.eup %4308 }
0x1046   :  { %v3184_v62 = vpop.xlane.xlu0 %3183  ;;  %v4311_v63 = vpop.eup %4310  ;;  %v3211_v11 = vmul.f32 %v4309_v14, %v6296_v52 }
0x1047   :  { %v2920_v30 = vpop.xlane.xlu2 %2919  ;;  %4312 = vrcp.f32 %v3184_v62  ;;  %v2943_v20 = vmul.f32 %v4311_v63, %v6282_v5 }
0x1048   :  { %4314 = vrcp.f32 %v2920_v30 }
0x104d   :  { %v4313_v54 = vpop.eup %4312 }
0x104e   :  { %v4315_v56 = vpop.eup %4314  ;;  %v3212_v8 = vmul.f32 %v4313_v54, %v6302_v35  ;;  %v3187_v13 = vpop.xlane.xlu0 %3186 }
0x104f   :  { %v2944_v36 = vmul.f32 %v4315_v56, %v6304_v28  ;;  %v2923_v55 = vpop.xlane.xlu2 %2922  ;;  %4316 = vrcp.f32 %v3187_v13 }
0x1050   :  { %v3275_v42 = vpack.c.bf16 %v3212_v8, %v3211_v11  ;;  %4318 = vrcp.f32 %v2923_v55 }
0x1051   :  { %v3006_v39 = vpack.c.bf16 %v2944_v36, %v2943_v20  ;;  %v2773_v20 = vadd.f32 %v6135_v61, %v2731_v59 }
0x1052   :  { %3972 = vmatmul.msk.bf16.vlgmr.msrb.gmra.mxu1 %vm595_vm15, %v3275_v42 }
0x1053   :  { %3961 = vmatmul.msk.bf16.gmra.mxu2 %vm595_vm15, %v3006_v39 }
0x1055   :  { %v4317_v52 = vpop.eup %4316 }
0x1056   :  { %v3190_v9 = vpop.xlane.xlu1 %3189  ;;  %v4319_v35 = vpop.eup %4318  ;;  %v3213_v5 = vmul.f32 %v4317_v52, %v6316_v6 }
0x1057   :  { %4320 = vrcp.f32 %v3190_v9  ;;  %v2926_v4 = vpop.xlane.xlu0 %2925  ;;  %v2945_v45 = vmul.f32 %v4319_v35, %v6314_v16 }
0x1058   :  { %4322 = vrcp.f32 %v2926_v4 }
0x105d   :  { %v4321_v1 = vpop.eup %4320 }
0x105e   :  { %v4323_v33 = vpop.eup %4322  ;;  %v3214_v28 = vmul.f32 %v4321_v1, %v6325_v29  ;;  %v3193_v12 = vpop.xlane.xlu1 %3192 }
0x105f   :  { %v2946_v37 = vmul.f32 %v4323_v33, %v6327_v51  ;;  %v2929_v26 = vpop.xlane.xlu0 %2928  ;;  %4324 = vrcp.f32 %v3193_v12 }
0x1060   :  { %v3276_v41 = vpack.c.bf16 %v3214_v28, %v3213_v5  ;;  %4326 = vrcp.f32 %v2929_v26 }
0x1061   :  { %v3007_v23 = vpack.c.bf16 %v2946_v37, %v2945_v45 }
0x1062   :  { %3973 = vmatmul.msk.bf16.gmra.mxu1 %vm595_vm15, %v3276_v41 }
0x1063   :  { %3962 = vmatmul.msk.bf16.gmra.mxu2 %vm595_vm15, %v3007_v23 }
0x1065   :  { %v4325_v6 = vpop.eup %4324 }
0x1066   :  { %v3196_v25 = vpop.xlane.xlu2 %3195  ;;  %v4327_v29 = vpop.eup %4326  ;;  %v3215_v16 = vmul.f32 %v4325_v6, %v6339_v22 }
0x1067   :  { %4328 = vrcp.f32 %v3196_v25  ;;  %v2932_v40 = vpop.xlane.xlu1 %2931  ;;  %v2947_v48 = vmul.f32 %v4327_v29, %v6337_v7 }
0x1068   :  { %4330 = vrcp.f32 %v2932_v40 }
0x106d   :  { %v4329_v24 = vpop.eup %4328 }
0x106e   :  { %v4331_v47 = vpop.eup %4330  ;;  %v3216_v51 = vmul.f32 %v4329_v24, %v6347_v38  ;;  %v3199_v57 = vpop.xlane.xlu2 %3198 }
0x106f   :  { %v2948_v0 = vmul.f32 %v4331_v47, %v6349_v21  ;;  %4332 = vrcp.f32 %v3199_v57  ;;  %v2733_v21 = vpop.f32.mrf.mxu2 }
0x1070   :  { %v3277_v10 = vpack.c.bf16 %v3216_v51, %v3215_v16  ;;  %v2775_v4 = vadd.f32 %v6137_v2, %v2733_v21 }
0x1071   :  { %v3008_v27 = vpack.c.bf16 %v2948_v0, %v2947_v48 }
0x1072   :  { %3974 = vmatmul.msk.bf16.gmra.mxu1 %vm595_vm15, %v3277_v10 }
0x1073   :  { %3963 = vmatmul.msk.bf16.gmra.mxu2 %vm595_vm15, %v3008_v27 }
0x1075   :  { %v4333_v62 = vpop.eup %4332 }
0x1076   :  { %v3202_v31 = vpop.xlane.xlu0 %3201  ;;  %v3217_v22 = vmul.f32 %v4333_v62, %v6358_v3 }
0x1077   :  { %4334 = vrcp.f32 %v3202_v31  ;;  %v2736_v14 = vpop.f32.mrf.mxu2 }
0x1078   :  { %v2778_v12 = vadd.f32 %v6141_v49, %v2736_v14 }
0x107d   :  { %v4335_v30 = vpop.eup %4334 }
0x107e   :  { %v3218_v38 = vmul.f32 %v4335_v30, %v6363_v44  ;;  %v6394_v44 = vld [vmem:[%s6659_s6 + $0x8] sm:$0xff] }
0x107f   :  { %v2738_v63 = vpop.f32.mrf.mxu2  ;;  %v6397_v55 = vperm.slane %v6394_v44, 5 }
0x1080   :  { %v3278_v7 = vpack.c.bf16 %v3218_v38, %v3217_v22  ;;  %v2780_v25 = vadd.f32 %v6146_v60, %v2738_v63 }
0x1082   :  { %3975 = vmatmul.msk.bf16.gmra.mxu1 %vm595_vm15, %v3278_v7 }
0x1087   :  { %v2741_v54 = vpop.f32.mrf.mxu2 }
0x1088   :  { %v2783_v16 = vadd.f32 %v6160_v18, %v2741_v54 }
0x108f   :  { %v2743_v56 = vpop.f32.mrf.mxu2 }
0x1090   :  { %v2785_v57 = vadd.f32 %v6170_v50, %v2743_v56 }
0x1097   :  { %v2746_v11 = vpop.f32.mrf.mxu2 }
0x1098   :  { %v2788_v38 = vadd.f32 %v6176_v53, %v2746_v11 }
0x109f   :  { %v6388_v8 = vpop.f32.mrf.mxu2 }
0x10a0   :  { %v2790_v56 = vadd.f32 %v6180_v17, %v6388_v8 }
0x10a7   :  { %v3034_v13 = vpop.f32.mrf.mxu2 }
0x10a8   :  { %v3054_v36 = vadd.f32 %v3034_v13, %v2773_v20 }
0x10af   :  { %v3036_v42 = vpop.f32.mrf.mxu2 }
0x10b0   :  { %v3055_v61 = vadd.f32 %v3036_v42, %v2775_v4 }
0x10cf   :  { %v3304_v39 = vpop.f32.mrf.mxu1 }
0x10d0   :  { %v3324_v3 = vadd.f32 %v3304_v39, %v3054_v36  ;;  %v6695_v36 = vld [vmem:[#allocation14_spill] sm:$0xff] }
0x10d2   :  { %v3332_v9 = vadd.f32 %v3324_v3, %v5614_v58 }
0x10d4   :  { %v6402_v52 = vadd.f32 %v6397_v55, %v3332_v9  ;;  %v6696_v9 = vld [vmem:[#allocation12_spill] sm:$0xff] }
0x10d6   :  { %v3039_v35 = vpop.f32.mrf.mxu2  ;;  %v3349_v1 = vsel %vm191_vm2, %v6402_v52, 0.0 }
0x10d7   :  { %3350 = vadd.xlane.f32.xlu1 %v3349_v1  ;;  %v3306_v33 = vpop.f32.mrf.mxu1  ;;  %v3056_v58 = vadd.f32 %v3039_v35, %v2778_v12 }
0x10d8   :  { %v3325_v5 = vadd.f32 %v3306_v33, %v3055_v61 }
0x10da   :  { %v3333_v28 = vadd.f32 %v3325_v5, %v5620_v19 }
0x10dc   :  { %v6409_v45 = vadd.f32 %v6397_v55, %v3333_v28 }
0x10de   :  { %v3041_v2 = vpop.f32.mrf.mxu2  ;;  %v3352_v37 = vsel %vm191_vm2, %v6409_v45, 0.0 }
0x10df   :  { %3353 = vadd.xlane.f32.xlu2 %v3352_v37  ;;  %v3309_v41 = vpop.f32.mrf.mxu1  ;;  %v3057_v19 = vadd.f32 %v3041_v2, %v2780_v25 }
0x10e0   :  { %v3326_v23 = vadd.f32 %v3309_v41, %v3056_v58 }
0x10e2   :  { %v3334_v26 = vadd.f32 %v3326_v23, %v5626_v32 }
0x10e4   :  { %v3343_v40 = vadd.f32 %v6397_v55, %v3334_v26 }
0x10e6   :  { %v3044_v6 = vpop.f32.mrf.mxu2  ;;  %v3355_v49 = vsel %vm191_vm2, %v3343_v40, 0.0 }
0x10e7   :  { %3356 = vadd.xlane.f32.xlu0 %v3355_v49  ;;  %v3311_v29 = vpop.f32.mrf.mxu1  ;;  %v3058_v48 = vadd.f32 %v3044_v6, %v2783_v16 }
0x10e8   :  { %v3327_v24 = vadd.f32 %v3311_v29, %v3057_v19 }
0x10ea   :  { %v3335_v47 = vadd.f32 %v3327_v24, %v5632_v34 }
0x10ec   :  { %v6420_v51 = vadd.f32 %v6397_v55, %v3335_v47 }
0x10ee   :  { %v3358_v32 = vsel %vm191_vm2, %v6420_v51, 0.0  ;;  %v3046_v60 = vpop.f32.mrf.mxu2 }
0x10ef   :  { %3359 = vadd.xlane.f32.xlu1 %v3358_v32  ;;  %v3314_v0 = vpop.f32.mrf.mxu1  ;;  %v3059_v34 = vadd.f32 %v3046_v60, %v2785_v57 }
0x10f0   :  { %v3328_v10 = vadd.f32 %v3314_v0, %v3058_v48 }
0x10f2   :  { %v3336_v27 = vadd.f32 %v3328_v10, %v5638_v43 }
0x10f4   :  { %v3345_v31 = vadd.f32 %v6397_v55, %v3336_v27 }
0x10f6   :  { %v3361_v18 = vsel %vm191_vm2, %v3345_v31, 0.0  ;;  %v3049_v30 = vpop.f32.mrf.mxu2 }
0x10f7   :  { %v3316_v59 = vpop.f32.mrf.mxu1  ;;  %3362 = vadd.xlane.f32.xlu2 %v3361_v18  ;;  %v3060_v21 = vadd.f32 %v3049_v30, %v2788_v38  ;;  %v3901_v30 = vld [vmem:[%s6657_s4 + $0x48] sm:$0xff] }
0x10f8   :  { %v3329_v62 = vadd.f32 %v3316_v59, %v3059_v34  ;;  %v3907_v34 = vld [vmem:[%s6657_s4 + $0x78] sm:$0xff] }
0x10fa   :  { %v3337_v22 = vadd.f32 %v3329_v62, %v5644_v15 }
0x10fc   :  { %v6431_v7 = vadd.f32 %v6397_v55, %v3337_v22  ;;  %v3903_v22 = vld [vmem:[%s6657_s4 + $0x58] sm:$0xff] }
0x10fe   :  { %v3364_v43 = vsel %vm191_vm2, %v6431_v7, 0.0  ;;  %v3051_v54 = vpop.f32.mrf.mxu2 }
0x10ff   :  { %3365 = vadd.xlane.f32.xlu0 %v3364_v43  ;;  %v3319_v50 = vpop.f32.mrf.mxu1  ;;  %v3061_v13 = vadd.f32 %v3051_v54, %v2790_v56 }
0x1100   :  { %v3330_v14 = vadd.f32 %v3319_v50, %v3060_v21  ;;  %v3547_v21 = vpack.c.bf16 %v3903_v22, %v3901_v30 }
0x1102   :  { %v3338_v63 = vadd.f32 %v3330_v14, %v5654_v46 }
0x1104   :  { %v3347_v15 = vadd.f32 %v6397_v55, %v3338_v63 }
0x1106   :  { %v3367_v53 = vsel %vm191_vm2, %v3347_v15, 0.0 }
0x1107   :  { %3368 = vadd.xlane.f32.xlu0 %v3367_v53  ;;  %v3321_v11 = vpop.f32.mrf.mxu1 }
0x1108   :  { %v3331_v20 = vadd.f32 %v3321_v11, %v3061_v13 }
0x110a   :  { %v3339_v42 = vadd.f32 %v3331_v20, %v6695_v36 }
0x110c   :  { %v6442_v39 = vadd.f32 %v6397_v55, %v3339_v42 }
0x114a   :  { %v3351_v3 = vpop.xlane.xlu1 %3350 }
0x114b   :  { %v3373_v46 = vmul.f32 %v3351_v3, %v6696_v9 }
0x114d   :  { %v6446_v4 = vsub.f32 %v6402_v52, %v3373_v46  ;;  %v3370_v52 = vsel %vm191_vm2, %v6442_v39, 0.0 }
0x114f   :  { %v3389_v17 = vmul.f32 %v6446_v4, %v6446_v4 }
0x1151   :  { %v3397_v8 = vsel %vm191_vm2, %v3389_v17, 0.0 }
0x1152   :  { %v3354_v61 = vpop.xlane.xlu2 %3353  ;;  %3398 = vadd.xlane.f32.xlu1 %v3397_v8 }
0x1153   :  { %v3374_v35 = vmul.f32 %v3354_v61, %v6696_v9 }
0x1155   :  { %v6453_v1 = vsub.f32 %v6409_v45, %v3374_v35 }
0x1157   :  { %v3390_v55 = vmul.f32 %v6453_v1, %v6453_v1 }
0x1159   :  { %v3400_v33 = vsel %vm191_vm2, %v3390_v55, 0.0 }
0x115a   :  { %3401 = vadd.xlane.f32.xlu2 %v3400_v33  ;;  %3371 = vadd.xlane.f32.xlu1 %v3370_v52  ;;  %v3357_v5 = vpop.xlane.xlu0 %3356 }
0x115b   :  { %v3375_v28 = vmul.f32 %v3357_v5, %v6696_v9 }
0x115d   :  { %v6461_v12 = vsub.f32 %v3343_v40, %v3375_v28 }
0x115f   :  { %v3391_v58 = vmul.f32 %v6461_v12, %v6461_v12 }
0x1161   :  { %v3403_v2 = vsel %vm191_vm2, %v3391_v58, 0.0 }
0x1162   :  { %v3360_v37 = vpop.xlane.xlu1 %3359  ;;  %3404 = vadd.xlane.f32.xlu2 %v3403_v2 }
0x1163   :  { %v3376_v41 = vmul.f32 %v3360_v37, %v6696_v9  ;;  %v6516_v37 = vperm.slane %v6394_v44, 6 }
0x1165   :  { %v6468_v23 = vsub.f32 %v6420_v51, %v3376_v41 }
0x1167   :  { %v3392_v26 = vmul.f32 %v6468_v23, %v6468_v23 }
0x1169   :  { %v3406_v25 = vsel %vm191_vm2, %v3392_v26, 0.0 }
0x116a   :  { %v3363_v19 = vpop.xlane.xlu2 %3362  ;;  %3407 = vadd.xlane.f32.xlu0 %v3406_v25 }
0x116b   :  { %v3377_v40 = vmul.f32 %v3363_v19, %v6696_v9 }
0x116d   :  { %v6474_v6 = vsub.f32 %v3345_v31, %v3377_v40  ;;  %v3905_v31 = vld [vmem:[%s6657_s4 + $0x68] sm:$0xff] }
0x116e   :  { %v3548_v18 = vpack.c.bf16 %v3907_v34, %v3905_v31 }
0x116f   :  { %v3393_v49 = vmul.f32 %v6474_v6, %v6474_v6 }
0x1170   :  { %3568 = vmatpush.bf16.msrb.mxu2 %v3548_v18 }
0x1171   :  { %v3409_v29 = vsel %vm191_vm2, %v3393_v49, 0.0 }
0x1172   :  { %3410 = vadd.xlane.f32.xlu1 %v3409_v29  ;;  %v3366_v24 = vpop.xlane.xlu0 %3365  ;;  %v6520_v29 = vperm.slane %v6394_v44, 7 }
0x1173   :  { %v3378_v47 = vmul.f32 %v3366_v24, %v6696_v9 }
0x1174   :  { %3569 = vmatpush.bf16.msrb.mxu2 %v3547_v21 }
0x1175   :  { %v6481_v16 = vsub.f32 %v6431_v7, %v3378_v47 }
0x1177   :  { %v3394_v48 = vmul.f32 %v6481_v16, %v6481_v16 }
0x1179   :  { %v3412_v32 = vsel %vm191_vm2, %v3394_v48, 0.0 }
0x117a   :  { %3413 = vadd.xlane.f32.xlu2 %v3412_v32  ;;  %v3369_v60 = vpop.xlane.xlu0 %3368 }
0x117b   :  { %v3379_v0 = vmul.f32 %v3369_v60, %v6696_v9 }
0x117d   :  { %v6487_v10 = vsub.f32 %v3347_v15, %v3379_v0 }
0x117f   :  { %v3395_v27 = vmul.f32 %v6487_v10, %v6487_v10 }
0x1181   :  { %v3415_v57 = vsel %vm191_vm2, %v3395_v27, 0.0 }
0x1182   :  { %3416 = vadd.xlane.f32.xlu0 %v3415_v57 }
0x11c5   :  { %v3399_v59 = vpop.xlane.xlu1 %3398 }
0x11c6   :  { %v3421_v62 = vmul.f32 %v3399_v59, %v6696_v9 }
0x11c8   :  { %v3429_v38 = vadd.f32 1e-05, %v3421_v62 }
0x11ca   :  { %4336 = vrsqrt.f32 %v3429_v38  ;;  %vm3443_vm1 = vweird.f32 %v3429_v38 }
0x11cd   :  { %v3402_v43 = vpop.xlane.xlu2 %3401  ;;  %v3372_v50 = vpop.xlane.xlu1 %3371 }
0x11ce   :  { %v3422_v14 = vmul.f32 %v3402_v43, %v6696_v9  ;;  %v3380_v63 = vmul.f32 %v3372_v50, %v6696_v9 }
0x11d0   :  { %v4337_v54 = vpop.eup %4336  ;;  %v3430_v56 = vadd.f32 1e-05, %v3422_v14  ;;  %v6508_v15 = vsub.f32 %v6442_v39, %v3380_v63 }
0x11d1   :  { %v3438_v13 = vmul.f32 %v4337_v54, %v3429_v38  ;;  %vm3444_vm0 = vweird.f32 %v4337_v54 }
0x11d2   :  { %4338 = vrsqrt.f32 %v3430_v56  ;;  %v3396_v53 = vmul.f32 %v6508_v15, %v6508_v15  ;;  %vm3445_vm3 = vmor %vm3443_vm1, %vm3444_vm0  ;;  %vm3453_vm5 = vweird.f32 %v3430_v56 }
0x11d3   :  { %v3439_v11 = vmul.f32 %v4337_v54, %v3438_v13 }
0x11d4   :  { %v3418_v20 = vsel %vm191_vm2, %v3396_v53, 0.0 }
0x11d5   :  { %v3440_v36 = vmul.f32 0.5, %v3439_v11  ;;  %3419 = vadd.xlane.f32.xlu1 %v3418_v20  ;;  %v3405_v42 = vpop.xlane.xlu2 %3404 }
0x11d6   :  { %v3423_v3 = vmul.f32 %v3405_v42, %v6696_v9 }
0x11d7   :  { %v3441_v46 = vsub.f32 1.5, %v3440_v36 }
0x11d8   :  { %v4339_v17 = vpop.eup %4338  ;;  %v3431_v8 = vadd.f32 1e-05, %v3423_v3 }
0x11d9   :  { %v3442_v61 = vmul.f32 %v4337_v54, %v3441_v46  ;;  %v3448_v35 = vmul.f32 %v4339_v17, %v3430_v56  ;;  %vm3454_vm4 = vweird.f32 %v4339_v17 }
0x11da   :  { %4340 = vrsqrt.f32 %v3431_v8  ;;  %vm3455_vm6 = vmor %vm3453_vm5, %vm3454_vm4  ;;  %vm3463_vm8 = vweird.f32 %v3431_v8 }
0x11db   :  { %v3449_v55 = vmul.f32 %v4339_v17, %v3448_v35  ;;  %v3446_v33 = vsel %vm3445_vm3, %v4337_v54, %v3442_v61 }
0x11dc   :  { %v3517_v41 = vmul.f32 %v3446_v33, %v6446_v4 }
0x11dd   :  { %v3450_v52 = vmul.f32 0.5, %v3449_v55  ;;  %v3408_v5 = vpop.xlane.xlu0 %3407 }
0x11de   :  { %v3424_v28 = vmul.f32 %v3408_v5, %v6696_v9  ;;  %v3526_v24 = vmul.f32 %v6516_v37, %v3517_v41 }
0x11df   :  { %v3451_v58 = vsub.f32 1.5, %v3450_v52 }
0x11e0   :  { %v4341_v2 = vpop.eup %4340  ;;  %v3432_v26 = vadd.f32 1e-05, %v3424_v28  ;;  %v3535_v57 = vadd.f32 %v6520_v29, %v3526_v24 }
0x11e1   :  { %v3452_v25 = vmul.f32 %v4339_v17, %v3451_v58  ;;  %v3458_v19 = vmul.f32 %v4341_v2, %v3431_v8  ;;  %vm3464_vm7 = vweird.f32 %v4341_v2 }
0x11e2   :  { %4342 = vrsqrt.f32 %v3432_v26  ;;  %vm3465_vm9 = vmor %vm3463_vm8, %vm3464_vm7  ;;  %vm3473_vm11 = vweird.f32 %v3432_v26 }
0x11e3   :  { %v3456_v40 = vsel %vm3455_vm6, %v4339_v17, %v3452_v25  ;;  %v3459_v49 = vmul.f32 %v4341_v2, %v3458_v19 }
0x11e4   :  { %v3518_v47 = vmul.f32 %v3456_v40, %v6453_v1 }
0x11e5   :  { %v3460_v48 = vmul.f32 0.5, %v3459_v49  ;;  %v3411_v32 = vpop.xlane.xlu1 %3410 }
0x11e6   :  { %v3527_v60 = vmul.f32 %v6516_v37, %v3518_v47  ;;  %v3425_v4 = vmul.f32 %v3411_v32, %v6696_v9 }
0x11e7   :  { %v3461_v0 = vsub.f32 1.5, %v3460_v48 }
0x11e8   :  { %v4343_v27 = vpop.eup %4342  ;;  %v3536_v31 = vadd.f32 %v6520_v29, %v3527_v60  ;;  %v3433_v34 = vadd.f32 1e-05, %v3425_v4 }
0x11e9   :  { %v3462_v18 = vmul.f32 %v4341_v2, %v3461_v0  ;;  %v3468_v44 = vmul.f32 %v4343_v27, %v3432_v26  ;;  %vm3474_vm10 = vweird.f32 %v4343_v27 }
0x11ea   :  { %v3543_v59 = vpack.c.bf16 %v3536_v31, %v3535_v57  ;;  %4344 = vrsqrt.f32 %v3433_v34  ;;  %vm3475_vm12 = vmor %vm3473_vm11, %vm3474_vm10  ;;  %vm3483_vm14 = vweird.f32 %v3433_v34  ;;  %v3923_v57 = vld [vmem:[%s6658_s5 + $0xf8] sm:$0xff] }
0x11eb   :  { %v3469_v1 = vmul.f32 %v4343_v27, %v3468_v44  ;;  %v3466_v62 = vsel %vm3465_vm9, %v4341_v2, %v3462_v18 }
0x11ec   :  { %3976 = vmatmul.msk.bf16.vlgmr.msrb.gmra.mxu2 %vm191_vm2, %v3543_v59  ;;  %v3519_v50 = vmul.f32 %v3466_v62, %v6461_v12  ;;  %v3921_v62 = vld [vmem:[%s6658_s5 + $0xe8] sm:$0xff] }
0x11ed   :  { %v3470_v30 = vmul.f32 0.5, %v3469_v1  ;;  %v3414_v22 = vpop.xlane.xlu2 %3413  ;;  %v3920_v1 = vld [vmem:[%s6658_s5 + $0xe0] sm:$0xff] }
0x11ee   :  { %v3426_v38 = vmul.f32 %v3414_v22, %v6696_v9  ;;  %v3528_v11 = vmul.f32 %v6516_v37, %v3519_v50  ;;  %v3919_v50 = vld [vmem:[%s6658_s5 + $0xd8] sm:$0xff] }
0x11ef   :  { %v3471_v21 = vsub.f32 1.5, %v3470_v30  ;;  %v3673_v30 = vpack.c.bf16 %v3921_v62, %v3920_v1 }
0x11f0   :  { %v4345_v43 = vpop.eup %4344  ;;  %v3434_v14 = vadd.f32 1e-05, %v3426_v38  ;;  %v3537_v46 = vadd.f32 %v6520_v29, %v3528_v11 }
0x11f1   :  { %v3472_v63 = vmul.f32 %v4343_v27, %v3471_v21  ;;  %v3478_v54 = vmul.f32 %v4345_v43, %v3433_v34  ;;  %vm3484_vm13 = vweird.f32 %v4345_v43 }
0x11f2   :  { %4346 = vrsqrt.f32 %v3434_v14  ;;  %vm3485_vm0 = vmor %vm3483_vm14, %vm3484_vm13  ;;  %vm3493_vm3 = vweird.f32 %v3434_v14 }
0x11f3   :  { %v3476_v56 = vsel %vm3475_vm12, %v4343_v27, %v3472_v63  ;;  %v3479_v13 = vmul.f32 %v4345_v43, %v3478_v54  ;;  %v3922_v27 = vld [vmem:[%s6658_s5 + $0xf0] sm:$0xff] }
0x11f4   :  { %v3520_v53 = vmul.f32 %v3476_v56, %v6468_v23  ;;  %v3674_v34 = vpack.c.bf16 %v3923_v57, %v3922_v27 }
0x11f5   :  { %v3480_v20 = vmul.f32 0.5, %v3479_v13  ;;  %v3417_v40 = vpop.xlane.xlu0 %3416  ;;  %v3916_v13 = vld [vmem:[%s6658_s5 + $0xc0] sm:$0xff] }
0x11f6   :  { %v3529_v36 = vmul.f32 %v6516_v37, %v3520_v53  ;;  %3676 = vmatpush.bf16.msrb.mxu3 %v3674_v34  ;;  %v3917_v53 = vld [vmem:[%s6658_s5 + $0xc8] sm:$0xff] }
0x11f7   :  { %v3481_v42 = vsub.f32 1.5, %v3480_v20 }
0x11f8   :  { %v4347_v3 = vpop.eup %4346  ;;  %v3538_v12 = vadd.f32 %v6520_v29, %v3529_v36  ;;  %v3671_v36 = vpack.c.bf16 %v3917_v53, %v3916_v13 }
0x11f9   :  { %v3482_v17 = vmul.f32 %v4345_v43, %v3481_v42  ;;  %v3488_v8 = vmul.f32 %v4347_v3, %v3434_v14  ;;  %vm3494_vm1 = vweird.f32 %v4347_v3  ;;  %v3914_v42 = vld [vmem:[%s6658_s5 + $0xb0] sm:$0xff] }
0x11fa   :  { %v3544_v61 = vpack.c.bf16 %v3538_v12, %v3537_v46  ;;  %vm3495_vm4 = vmor %vm3493_vm3, %vm3494_vm1  ;;  %3677 = vmatpush.bf16.msrb.mxu3 %v3673_v30 }
0x11fb   :  { %v3489_v35 = vmul.f32 %v4347_v3, %v3488_v8  ;;  %v3486_v23 = vsel %vm3485_vm0, %v4345_v43, %v3482_v17  ;;  %v3918_v43 = vld [vmem:[%s6658_s5 + $0xd0] sm:$0xff]  ;;  %v3913_v8 = vld [vmem:[%s6658_s5 + $0xa8] sm:$0xff] }
0x11fc   :  { %3977 = vmatmul.msk.bf16.gmra.mxu2 %vm191_vm2, %v3544_v61  ;;  %v3521_v52 = vmul.f32 %v3486_v23, %v6474_v6  ;;  %v3427_v6 = vmul.f32 %v3417_v40, %v6696_v9  ;;  %v3672_v63 = vpack.c.bf16 %v3919_v50, %v3918_v43  ;;  %v3911_v23 = vld [vmem:[%s6658_s5 + $0x98] sm:$0xff] }
0x11fd   :  { %v3490_v55 = vmul.f32 0.5, %v3489_v35  ;;  %v6592_v35 = vld [vmem:[%s6659_s6 + $0x10] sm:$0xff] }
0x11fe   :  { %v3530_v2 = vmul.f32 %v6516_v37, %v3521_v52  ;;  %v3435_v49 = vadd.f32 1e-05, %v3427_v6  ;;  %3678 = vmatpush.bf16.msrb.mxu3 %v3672_v63  ;;  %v3908_v52 = vld [vmem:[%s6658_s5 + $0x80] sm:$0xff] }
0x11ff   :  { %v3491_v33 = vsub.f32 1.5, %v3490_v55 }
0x1200   :  { %v3539_v26 = vadd.f32 %v6520_v29, %v3530_v2  ;;  %4348 = vrsqrt.f32 %v3435_v49  ;;  %vm3503_vm6 = vweird.f32 %v3435_v49 }
0x1201   :  { %v3492_v5 = vmul.f32 %v4347_v3, %v3491_v33  ;;  %v6601_v33 = vperm.slane %v6592_v35, 0 }
0x1202   :  { %3679 = vmatpush.bf16.msrb.mxu3 %v3671_v36 }
0x1203   :  { %v3496_v28 = vsel %vm3495_vm4, %v4347_v3, %v3492_v5  ;;  %v3915_v3 = vld [vmem:[%s6658_s5 + $0xb8] sm:$0xff]  ;;  %v3909_v5 = vld [vmem:[%s6658_s5 + $0x88] sm:$0xff] }
0x1204   :  { %v3522_v58 = vmul.f32 %v3496_v28, %v6481_v16  ;;  %v3670_v17 = vpack.c.bf16 %v3915_v3, %v3914_v42 }
0x1206   :  { %v3531_v41 = vmul.f32 %v6516_v37, %v3522_v58  ;;  %v4349_v24 = vpop.eup %4348  ;;  %3680 = vmatpush.bf16.msrb.mxu3 %v3670_v17  ;;  %v3667_v58 = vpack.c.bf16 %v3909_v5, %v3908_v52 }
0x1207   :  { %v3498_v47 = vmul.f32 %v4349_v24, %v3435_v49  ;;  %vm3504_vm5 = vweird.f32 %v4349_v24 }
0x1208   :  { %v3540_v25 = vadd.f32 %v6520_v29, %v3531_v41  ;;  %vm3505_vm7 = vmor %vm3503_vm6, %vm3504_vm5 }
0x1209   :  { %v3499_v48 = vmul.f32 %v4349_v24, %v3498_v47 }
0x120a   :  { %v3545_v19 = vpack.c.bf16 %v3540_v25, %v3539_v26 }
0x120b   :  { %v3500_v4 = vmul.f32 0.5, %v3499_v48 }
0x120c   :  { %3978 = vmatmul.msk.bf16.gmra.mxu2 %vm191_vm2, %v3545_v19 }
0x120d   :  { %v3501_v0 = vsub.f32 1.5, %v3500_v4 }
0x120f   :  { %v3502_v18 = vmul.f32 %v4349_v24, %v3501_v0 }
0x1211   :  { %v3506_v22 = vsel %vm3505_vm7, %v4349_v24, %v3502_v18 }
0x1212   :  { %v3523_v14 = vmul.f32 %v3506_v22, %v6487_v10 }
0x1214   :  { %v3532_v20 = vmul.f32 %v6516_v37, %v3523_v14 }
0x1216   :  { %v3541_v46 = vadd.f32 %v6520_v29, %v3532_v20 }
0x1248   :  { %v3420_v16 = vpop.xlane.xlu1 %3419 }
0x1249   :  { %v3428_v32 = vmul.f32 %v3420_v16, %v6696_v9 }
0x124b   :  { %v3436_v60 = vadd.f32 1e-05, %v3428_v32 }
0x124d   :  { %4350 = vrsqrt.f32 %v3436_v60  ;;  %vm3513_vm9 = vweird.f32 %v3436_v60 }
0x1253   :  { %v4351_v31 = vpop.eup %4350 }
0x1254   :  { %v3508_v44 = vmul.f32 %v4351_v31, %v3436_v60  ;;  %vm3514_vm8 = vweird.f32 %v4351_v31 }
0x1255   :  { %vm3515_vm10 = vmor %vm3513_vm9, %vm3514_vm8  ;;  %vm3817_vm9 = vcmask 785408  }
0x1256   :  { %v3509_v59 = vmul.f32 %v4351_v31, %v3508_v44 }
0x1258   :  { %v3510_v38 = vmul.f32 0.5, %v3509_v59 }
0x125a   :  { %v3511_v21 = vsub.f32 1.5, %v3510_v38 }
0x125c   :  { %v3512_v54 = vmul.f32 %v4351_v31, %v3511_v21 }
0x125e   :  { %v3516_v56 = vsel %vm3515_vm10, %v4351_v31, %v3512_v54 }
0x125f   :  { %v3524_v11 = vmul.f32 %v3516_v56, %v6508_v15 }
0x1261   :  { %v3533_v10 = vmul.f32 %v6516_v37, %v3524_v11  ;;  %v3912_v37 = vld [vmem:[%s6658_s5 + $0xa0] sm:$0xff] }
0x1262   :  { %v3669_v61 = vpack.c.bf16 %v3913_v8, %v3912_v37 }
0x1263   :  { %v3542_v12 = vadd.f32 %v6520_v29, %v3533_v10  ;;  %v3910_v29 = vld [vmem:[%s6658_s5 + $0x90] sm:$0xff]  ;;  %s4425_s5 = smov [#allocation2]  }
0x1264   :  { %3681 = vmatpush.bf16.msrb.mxu3 %v3669_v61  ;;  %v3668_v55 = vpack.c.bf16 %v3911_v23, %v3910_v29 }
0x1265   :  { %v3546_v15 = vpack.c.bf16 %v3542_v12, %v3541_v46 }
0x1267   :  { %3979 = vmatmul.msk.bf16.gmra.mxu2 %vm191_vm2, %v3546_v15 }
0x1268   :  { %3682 = vmatpush.bf16.msrb.mxu3 %v3668_v55 }
0x126c   :  { %3683 = vmatpush.bf16.msrb.mxu3 %v3667_v58 }
0x126f   :  { %v3571_v28 = vpop.f32.mrf.mxu2 }
0x1270   :  { %v3572_v2 = vadd.f32 %v3571_v28, %v6601_v33 }
0x1272   :  { %v3591_v41 = vmul.f32 %v3572_v2, %v3572_v2 }
0x1274   :  { %v3599_v26 = vmul.f32 %v3591_v41, %v3572_v2 }
0x1276   :  { %v3607_v25 = vmul.f32 0.044715, %v3599_v26 }
0x1277   :  { %v3573_v19 = vpop.f32.mrf.mxu2 }
0x1278   :  { %v3615_v40 = vadd.f32 %v3607_v25, %v3572_v2  ;;  %v3574_v6 = vadd.f32 %v3573_v19, %v6601_v33 }
0x127a   :  { %v3623_v49 = vmul.f32 0.7978846, %v3615_v40  ;;  %v3592_v24 = vmul.f32 %v3574_v6, %v3574_v6 }
0x127c   :  { %v3600_v47 = vmul.f32 %v3592_v24, %v3574_v6  ;;  %4352 = vtanh.f32 %v3623_v49 }
0x127e   :  { %v3608_v48 = vmul.f32 0.044715, %v3600_v47 }
0x127f   :  { %v3576_v16 = vpop.f32.mrf.mxu2 }
0x1280   :  { %v3616_v32 = vadd.f32 %v3608_v48, %v3574_v6  ;;  %v3577_v60 = vadd.f32 %v3576_v16, %v6601_v33 }
0x1282   :  { %v3624_v4 = vmul.f32 0.7978846, %v3616_v32  ;;  %v3593_v0 = vmul.f32 %v3577_v60, %v3577_v60  ;;  %v4353_v27 = vpop.eup %4352 }
0x1283   :  { %v3639_v34 = vadd.f32 1.0, %v4353_v27 }
0x1284   :  { %4354 = vtanh.f32 %v3624_v4  ;;  %v3601_v57 = vmul.f32 %v3593_v0, %v3577_v60 }
0x1285   :  { %v3647_v22 = vmul.f32 0.5, %v3639_v34 }
0x1286   :  { %v3609_v31 = vmul.f32 0.044715, %v3601_v57 }
0x1287   :  { %v3578_v18 = vpop.f32.mrf.mxu2  ;;  %v3655_v14 = vmul.f32 %v3647_v22, %v3572_v2 }
0x1288   :  { %v3617_v44 = vadd.f32 %v3609_v31, %v3577_v60  ;;  %v3579_v59 = vadd.f32 %v3578_v18, %v6601_v33 }
0x128a   :  { %v4355_v1 = vpop.eup %4354  ;;  %v3625_v62 = vmul.f32 0.7978846, %v3617_v44  ;;  %v3594_v30 = vmul.f32 %v3579_v59, %v3579_v59 }
0x128b   :  { %v3640_v38 = vadd.f32 1.0, %v4355_v1 }
0x128c   :  { %v3602_v21 = vmul.f32 %v3594_v30, %v3579_v59  ;;  %4356 = vtanh.f32 %v3625_v62 }
0x128d   :  { %v3648_v43 = vmul.f32 0.5, %v3640_v38 }
0x128e   :  { %v3610_v50 = vmul.f32 0.044715, %v3602_v21 }
0x128f   :  { %v3656_v63 = vmul.f32 %v3648_v43, %v3574_v6  ;;  %v3581_v54 = vpop.f32.mrf.mxu2 }
0x1290   :  { %v3618_v56 = vadd.f32 %v3610_v50, %v3579_v59  ;;  %v3582_v13 = vadd.f32 %v3581_v54, %v6601_v33 }
0x1291   :  { %v3663_v53 = vpack.c.bf16 %v3656_v63, %v3655_v14 }
0x1292   :  { %v3626_v11 = vmul.f32 0.7978846, %v3618_v56  ;;  %v3595_v20 = vmul.f32 %v3582_v13, %v3582_v13  ;;  %v4357_v36 = vpop.eup %4356 }
0x1293   :  { %3684 = vmatmul.bf16.vlgmr.msrb.gmra.mxu3 %v3663_v53  ;;  %v3641_v46 = vadd.f32 1.0, %v4357_v36  ;;  %v3675_v53 = vperm.slane %v6592_v35, 1 }
0x1294   :  { %4358 = vtanh.f32 %v3626_v11  ;;  %v3603_v10 = vmul.f32 %v3595_v20, %v3582_v13 }
0x1295   :  { %v3649_v29 = vmul.f32 0.5, %v3641_v46 }
0x1296   :  { %v3611_v42 = vmul.f32 0.044715, %v3603_v10 }
0x1297   :  { %v3583_v3 = vpop.f32.mrf.mxu2  ;;  %v3657_v5 = vmul.f32 %v3649_v29, %v3577_v60 }
0x1298   :  { %v3619_v12 = vadd.f32 %v3611_v42, %v3582_v13  ;;  %v3584_v17 = vadd.f32 %v3583_v3, %v6601_v33 }
0x129a   :  { %v4359_v15 = vpop.eup %4358  ;;  %v3627_v37 = vmul.f32 0.7978846, %v3619_v12  ;;  %v3596_v8 = vmul.f32 %v3584_v17, %v3584_v17 }
0x129b   :  { %v3642_v61 = vadd.f32 1.0, %v4359_v15 }
0x129c   :  { %v3604_v23 = vmul.f32 %v3596_v8, %v3584_v17  ;;  %4360 = vtanh.f32 %v3627_v37 }
0x129d   :  { %v3650_v55 = vmul.f32 0.5, %v3642_v61 }
0x129e   :  { %v3612_v52 = vmul.f32 0.044715, %v3604_v23 }
0x129f   :  { %v3658_v28 = vmul.f32 %v3650_v55, %v3579_v59 }
0x12a0   :  { %v3620_v58 = vadd.f32 %v3612_v52, %v3584_v17 }
0x12a1   :  { %v3664_v2 = vpack.c.bf16 %v3658_v28, %v3657_v5 }
0x12a2   :  { %v3628_v41 = vmul.f32 0.7978846, %v3620_v58  ;;  %v4361_v26 = vpop.eup %4360 }
0x12a3   :  { %3688 = vmatmul.bf16.gmra.mxu3 %v3664_v2  ;;  %v3643_v25 = vadd.f32 1.0, %v4361_v26 }
0x12a4   :  { %4362 = vtanh.f32 %v3628_v41 }
0x12a5   :  { %v3651_v6 = vmul.f32 0.5, %v3643_v25 }
0x12a7   :  { %v3659_v24 = vmul.f32 %v3651_v6, %v3582_v13 }
0x12aa   :  { %v4363_v19 = vpop.eup %4362 }
0x12ab   :  { %v3644_v40 = vadd.f32 1.0, %v4363_v19 }
0x12ad   :  { %v3652_v49 = vmul.f32 0.5, %v3644_v40 }
0x12af   :  { %v3660_v47 = vmul.f32 %v3652_v49, %v3584_v17 }
0x12b1   :  { %v3665_v48 = vpack.c.bf16 %v3660_v47, %v3659_v24 }
0x12b3   :  { %3692 = vmatmul.bf16.gmra.mxu3 %v3665_v48 }
0x12ea   :  { %v3586_v16 = vpop.f32.mrf.mxu2 }
0x12eb   :  { %v3587_v32 = vadd.f32 %v3586_v16, %v6601_v33 }
0x12ed   :  { %v3597_v60 = vmul.f32 %v3587_v32, %v3587_v32 }
0x12ef   :  { %v3605_v4 = vmul.f32 %v3597_v60, %v3587_v32 }
0x12f1   :  { %v3613_v0 = vmul.f32 0.044715, %v3605_v4 }
0x12f2   :  { %v3588_v27 = vpop.f32.mrf.mxu2 }
0x12f3   :  { %v3621_v57 = vadd.f32 %v3613_v0, %v3587_v32  ;;  %v3589_v31 = vadd.f32 %v3588_v27, %v6601_v33 }
0x12f5   :  { %v3629_v34 = vmul.f32 0.7978846, %v3621_v57  ;;  %v3598_v18 = vmul.f32 %v3589_v31, %v3589_v31 }
0x12f7   :  { %v3606_v44 = vmul.f32 %v3598_v18, %v3589_v31  ;;  %4364 = vtanh.f32 %v3629_v34 }
0x12f9   :  { %v3614_v59 = vmul.f32 0.044715, %v3606_v44 }
0x12fb   :  { %v3622_v1 = vadd.f32 %v3614_v59, %v3589_v31 }
0x12fd   :  { %v3630_v62 = vmul.f32 0.7978846, %v3622_v1  ;;  %v4365_v30 = vpop.eup %4364 }
0x12fe   :  { %v3645_v22 = vadd.f32 1.0, %v4365_v30  ;;  %v3793_v30 = vperm.slane %v6592_v35, 2 }
0x12ff   :  { %4366 = vtanh.f32 %v3630_v62 }
0x1300   :  { %v3653_v43 = vmul.f32 0.5, %v3645_v22 }
0x1302   :  { %v3661_v14 = vmul.f32 %v3653_v43, %v3587_v32 }
0x1305   :  { %v4367_v38 = vpop.eup %4366 }
0x1306   :  { %v3646_v21 = vadd.f32 1.0, %v4367_v38 }
0x1308   :  { %v3654_v50 = vmul.f32 0.5, %v3646_v21  ;;  %v3798_v21 = vperm.slane %v6592_v35, 3 }
0x130a   :  { %v3662_v63 = vmul.f32 %v3654_v50, %v3589_v31 }
0x130c   :  { %v3666_v54 = vpack.c.bf16 %v3662_v63, %v3661_v14 }
0x130e   :  { %3696 = vmatmul.bf16.gmra.mxu3 %v3666_v54 }
0x1316   :  { %v3685_v56 = vpop.f32.mrf.mxu3 }
0x131e   :  { %v3686_v33 = vpop.f32.mrf.mxu3 }
0x131f   :  { %v3687_v10 = vadd.f32 %v3686_v33, %v3675_v53 }
0x1321   :  { %v3701_v46 = vadd.f32 %v3687_v10, %v6409_v45 }
0x1323   :  { %v3705_v12 = vsel %vm191_vm2, %v3701_v46, 0.0 }
0x1326   :  { %v3689_v13 = vpop.f32.mrf.mxu3 }
0x132e   :  { %v3690_v11 = vpop.f32.mrf.mxu3 }
0x132f   :  { %v3691_v20 = vadd.f32 %v3690_v11, %v3675_v53 }
0x1331   :  { %v3702_v36 = vadd.f32 %v3691_v20, %v6420_v51 }
0x1333   :  { %v3708_v42 = vsel %vm191_vm2, %v3702_v36, 0.0 }
0x1334   :  { %3709 = vadd.xlane.f32.xlu2 %v3708_v42 }
0x1336   :  { %v3693_v3 = vpop.f32.mrf.mxu3 }
0x133c   :  { %3706 = vadd.xlane.f32.xlu2 %v3705_v12 }
0x133e   :  { %v3694_v17 = vpop.f32.mrf.mxu3 }
0x133f   :  { %v3695_v15 = vadd.f32 %v3694_v17, %v3675_v53 }
0x1341   :  { %v3703_v37 = vadd.f32 %v3695_v15, %v6431_v7 }
0x1343   :  { %v3711_v8 = vsel %vm191_vm2, %v3703_v37, 0.0 }
0x1344   :  { %3712 = vadd.xlane.f32.xlu0 %v3711_v8 }
0x1391   :  { %v3697_v61 = vpop.f32.mrf.mxu3 }
0x1399   :  { %v3698_v29 = vpop.f32.mrf.mxu3 }
0x139a   :  { %v3699_v51 = vadd.f32 %v3698_v29, %v3675_v53 }
0x139c   :  { %v3704_v23 = vadd.f32 %v3699_v51, %v6442_v39 }
0x139e   :  { %v3714_v55 = vsel %vm191_vm2, %v3704_v23, 0.0 }
0x139f   :  { %3715 = vadd.xlane.f32.xlu1 %v3714_v55 }
0x13a7   :  { %v3710_v52 = vpop.xlane.xlu2 %3709 }
0x13a8   :  { %v3718_v45 = vmul.f32 %v3710_v52, %v6696_v9 }
0x13aa   :  { %v3722_v5 = vsub.f32 %v3702_v36, %v3718_v45 }
0x13ac   :  { %v3726_v28 = vmul.f32 %v3722_v5, %v3722_v5 }
0x13ae   :  { %v3732_v58 = vsel %vm191_vm2, %v3726_v28, 0.0 }
0x13af   :  { %3733 = vadd.xlane.f32.xlu0 %v3732_v58  ;;  %v3707_v7 = vpop.xlane.xlu2 %3706 }
0x13b0   :  { %v3717_v2 = vmul.f32 %v3707_v7, %v6696_v9 }
0x13b2   :  { %v6629_v41 = vsub.f32 %v3701_v46, %v3717_v2 }
0x13b4   :  { %v3725_v26 = vmul.f32 %v6629_v41, %v6629_v41 }
0x13b6   :  { %v3729_v39 = vsel %vm191_vm2, %v3725_v26, 0.0 }
0x13b7   :  { %3730 = vadd.xlane.f32.xlu0 %v3729_v39  ;;  %v3713_v25 = vpop.xlane.xlu0 %3712 }
0x13b8   :  { %v3719_v19 = vmul.f32 %v3713_v25, %v6696_v9 }
0x13ba   :  { %v3723_v40 = vsub.f32 %v3703_v37, %v3719_v19 }
0x13bc   :  { %v3727_v6 = vmul.f32 %v3723_v40, %v3723_v40 }
0x13be   :  { %v3735_v49 = vsel %vm191_vm2, %v3727_v6, 0.0 }
0x13bf   :  { %3736 = vadd.xlane.f32.xlu1 %v3735_v49 }
0x1412   :  { %v3716_v24 = vpop.xlane.xlu1 %3715 }
0x1413   :  { %v3720_v47 = vmul.f32 %v3716_v24, %v6696_v9 }
0x1415   :  { %v3724_v48 = vsub.f32 %v3704_v23, %v3720_v47 }
0x1417   :  { %v3728_v16 = vmul.f32 %v3724_v48, %v3724_v48 }
0x1419   :  { %v3738_v32 = vsel %vm191_vm2, %v3728_v16, 0.0 }
0x141a   :  { %3739 = vadd.xlane.f32.xlu2 %v3738_v32 }
0x1422   :  { %v3734_v60 = vpop.xlane.xlu0 %3733 }
0x1423   :  { %v3742_v4 = vmul.f32 %v3734_v60, %v6696_v9 }
0x1425   :  { %v3746_v0 = vadd.f32 1e-05, %v3742_v4 }
0x1427   :  { %4368 = vrsqrt.f32 %v3746_v0  ;;  %vm3765_vm12 = vweird.f32 %v3746_v0 }
0x142a   :  { %v3731_v23 = vpop.xlane.xlu0 %3730 }
0x142b   :  { %v3741_v55 = vmul.f32 %v3731_v23, %v6696_v9 }
0x142d   :  { %v4369_v27 = vpop.eup %4368  ;;  %v3745_v52 = vadd.f32 1e-05, %v3741_v55 }
0x142e   :  { %v3760_v57 = vmul.f32 %v4369_v27, %v3746_v0  ;;  %vm3766_vm11 = vweird.f32 %v4369_v27 }
0x142f   :  { %vm3767_vm13 = vmor %vm3765_vm12, %vm3766_vm11  ;;  %vm3755_vm7 = vweird.f32 %v3745_v52 }
0x1430   :  { %v3761_v31 = vmul.f32 %v4369_v27, %v3760_v57 }
0x1432   :  { %v3762_v34 = vmul.f32 0.5, %v3761_v31  ;;  %v3737_v18 = vpop.xlane.xlu1 %3736 }
0x1433   :  { %v3743_v44 = vmul.f32 %v3737_v18, %v6696_v9 }
0x1434   :  { %v3763_v59 = vsub.f32 1.5, %v3762_v34 }
0x1435   :  { %v3747_v1 = vadd.f32 1e-05, %v3743_v44 }
0x1436   :  { %v3764_v62 = vmul.f32 %v4369_v27, %v3763_v59 }
0x1437   :  { %4370 = vrsqrt.f32 %v3747_v1  ;;  %vm3775_vm0 = vweird.f32 %v3747_v1 }
0x1438   :  { %v3768_v22 = vsel %vm3767_vm13, %v4369_v27, %v3764_v62 }
0x1439   :  { %v3790_v38 = vmul.f32 %v3768_v22, %v3722_v5 }
0x143b   :  { %v3795_v43 = vmul.f32 %v3793_v30, %v3790_v38 }
0x143d   :  { %v4371_v50 = vpop.eup %4370  ;;  %v3800_v14 = vadd.f32 %v3798_v21, %v3795_v43 }
0x143e   :  { %v3770_v63 = vmul.f32 %v4371_v50, %v3747_v1  ;;  %vm3776_vm14 = vweird.f32 %v4371_v50 }
0x143f   :  { %3804 = vrot.lane.b32.xlu1 %v3800_v14, %s4417_s29  ;;  %vm3777_vm1 = vmor %vm3775_vm0, %vm3776_vm14 }
0x1440   :  { %v3771_v54 = vmul.f32 %v4371_v50, %v3770_v63 }
0x1442   :  { %v3772_v56 = vmul.f32 0.5, %v3771_v54 }
0x1444   :  { %v3773_v33 = vsub.f32 1.5, %v3772_v56 }
0x1446   :  { %v3774_v13 = vmul.f32 %v4371_v50, %v3773_v33 }
0x1448   :  { %v3778_v53 = vsel %vm3777_vm1, %v4371_v50, %v3774_v13 }
0x1449   :  { %v3791_v11 = vmul.f32 %v3778_v53, %v3723_v40 }
0x144b   :  { %v3796_v20 = vmul.f32 %v3793_v30, %v3791_v11 }
0x144d   :  { %v3801_v36 = vadd.f32 %v3798_v21, %v3796_v20 }
0x144f   :  { %3808 = vrot.lane.b32.xlu2 %v3801_v36, %s4414_s27 }
0x148d   :  { %v3740_v35 = vpop.xlane.xlu2 %3739 }
0x148e   :  { %v3744_v10 = vmul.f32 %v3740_v35, %v6696_v9 }
0x1490   :  { %v3748_v42 = vadd.f32 1e-05, %v3744_v10 }
0x1492   :  { %4372 = vrsqrt.f32 %v3748_v42  ;;  %vm3785_vm4 = vweird.f32 %v3748_v42 }
0x1493   :  { %4374 = vrsqrt.f32 %v3745_v52 }
0x1498   :  { %v4373_v3 = vpop.eup %4372 }
0x1499   :  { %v3780_v46 = vmul.f32 %v4373_v3, %v3748_v42  ;;  %vm3786_vm3 = vweird.f32 %v4373_v3  ;;  %v4375_v45 = vpop.eup %4374 }
0x149a   :  { %vm3787_vm5 = vmor %vm3785_vm4, %vm3786_vm3  ;;  %v3750_v5 = vmul.f32 %v4375_v45, %v3745_v52  ;;  %vm3756_vm6 = vweird.f32 %v4375_v45 }
0x149b   :  { %v3781_v12 = vmul.f32 %v4373_v3, %v3780_v46  ;;  %vm3757_vm8 = vmor %vm3755_vm7, %vm3756_vm6 }
0x149c   :  { %v3751_v28 = vmul.f32 %v4375_v45, %v3750_v5 }
0x149d   :  { %v3782_v17 = vmul.f32 0.5, %v3781_v12 }
0x149e   :  { %v3752_v58 = vmul.f32 0.5, %v3751_v28 }
0x149f   :  { %v3783_v15 = vsub.f32 1.5, %v3782_v17 }
0x14a0   :  { %v3753_v7 = vsub.f32 1.5, %v3752_v58 }
0x14a1   :  { %v3784_v37 = vmul.f32 %v4373_v3, %v3783_v15 }
0x14a2   :  { %v3754_v2 = vmul.f32 %v4375_v45, %v3753_v7 }
0x14a3   :  { %v3788_v8 = vsel %vm3787_vm5, %v4373_v3, %v3784_v37 }
0x14a4   :  { %v3792_v61 = vmul.f32 %v3788_v8, %v3724_v48  ;;  %v3758_v26 = vsel %vm3757_vm8, %v4375_v45, %v3754_v2 }
0x14a5   :  { %v3789_v39 = vmul.f32 %v3758_v26, %v6629_v41 }
0x14a6   :  { %v3797_v29 = vmul.f32 %v3793_v30, %v3792_v61 }
0x14a7   :  { %v3794_v25 = vmul.f32 %v3793_v30, %v3789_v39 }
0x14a8   :  { %v3802_v51 = vadd.f32 %v3798_v21, %v3797_v29 }
0x14a9   :  { %v3799_v40 = vadd.f32 %v3798_v21, %v3794_v25  ;;  %v3809_v9 = vpop.permute.xlu2 %3808 }
0x14aa   :  { %3812 = vrot.lane.b32.xlu0 %v3802_v51, %s4413_s26  ;;  %s3825_s26 = sshll.u32 %s4425_s5, 4  ;;  %s3826_s26 = int_to_ptr.vmem [resolvable:$true] %s3825_s26 }
0x14b1   :  { %v3805_v19 = vpop.permute.xlu1 %3804 }
0x14b2   :  { %v3815_v6 = vsel %vm191_vm2, %v3799_v40, %v3805_v19 }
0x14b3   :  { %v3816_v49 = vsel %vm595_vm15, %v3815_v6, %v3809_v9 }
0x151c   :  { %v3813_v24 = vpop.permute.xlu0 %3812 }
0x151d   :  { %v3818_v47 = vsel %vm3817_vm9, %v3816_v49, %v3813_v24 }
0x151e   :  { %3819 = vst [vmem:[#allocation2] sm:$0xff] %v3818_v47 }
0x151f   :  { %3830 = dma.vmem_to_hbm [thread:$0]  %s3826_s26, 128, %s3828_s15, [#allocation3]  }
0x1520   :  { %4410 = dma.done.wait [#allocation3], 128  }
0x1521   :  { %4411 = vsyncadd [#allocation3], 4294967168 }
0x1522   :  { %3835 = vsyncpa [#allocation3], 1 }

</bundles_post_ra>
